<compile_context>
chip_gen: v7x
topology: tpu7x:2x2x1
jax: 0.10.0
libtpu: 0.0.40
codegen_flags: <defaults>
</compile_context>

<pallas_src>
import functools

import numpy as np
import jax
import jax.numpy as jnp
from jax import lax
from jax.experimental import pallas as pl
from jax.experimental.pallas import tpu as pltpu

_TWO_PI = 2.0 * np.pi


# ---------------------------------------------------------------------------
# Small helpers (host + in-kernel)
# ---------------------------------------------------------------------------
def _pick_tile(n, candidates=(512, 256, 128)):
    """Largest lane/sublane-friendly candidate that divides n, else full n."""
    for c in candidates:
        if n % c == 0:
            return c
    # TODO(synk): for large non-divisible n, pad + mask instead of one huge block.
    return n


def _bf16_transcendentals_ok():
    """bf16 EUP/VPU exists on v6e/v7x; v5e and older stay f32."""
    try:
        kind = jax.devices()[0].device_kind.lower()
    except Exception:
        return False
    return ("v6" in kind) or ("v7" in kind) or ("7x" in kind)


def _vmem_capacity_bytes():
    try:
        return int(pltpu.get_tpu_info().vmem_capacity_bytes)
    except Exception:
        return 64 * 1024 * 1024  # conservative (v7x per-TC VMEM)


def _fiota(shape, dim):
    """float32 iota along `dim` (int iota + cast: always lowers on Mosaic)."""
    return lax.broadcasted_iota(jnp.int32, shape, dim).astype(jnp.float32)


def _frac(x):
    """x mod 1 in [0, 1). cos(2*pi*frac(x)*n) == cos(2*pi*x*n) for integer n."""
    return x - jnp.floor(x)


def _reduce_angle(x):
    """Range-reduce to ~[-pi, pi) in f32 (VPU work; VPU has slack)."""
    return x - jnp.float32(_TWO_PI) * jnp.floor(
        x * jnp.float32(1.0 / _TWO_PI) + jnp.float32(0.5))


def _cos(x, use_bf16):
    r = _reduce_angle(x)
    if use_bf16:
        return jnp.cos(r.astype(jnp.bfloat16)).astype(jnp.float32)
    return jnp.cos(r)


def _cossin(x, use_bf16):
    r = _reduce_angle(x)
    if use_bf16:
        rb = r.astype(jnp.bfloat16)
        return (jnp.cos(rb).astype(jnp.float32),
                jnp.sin(rb).astype(jnp.float32))
    return jnp.cos(r), jnp.sin(r)


def _sum_cos_cols(p, l0, n_cols, use_bf16, blk=128):
    """(Tt, n_cols)[t, l] = sum_d cos(2*pi * p[t, d] * (l0 + l)).

    p: (Tt, D) phases (already reduced mod 1).  Uses the angle-addition
    factorization l = blk*b + j when n_cols is a multiple of 128, so only the
    small per-t base tables (128 + n_cols/128 lanes) hit the EUP.
    """
    Tt, D = p.shape
    two_pi = jnp.float32(_TWO_PI)
    if n_cols <= blk or n_cols % blk != 0:
        l_row = l0 + _fiota((1, n_cols), 1)
        s = None
        for d in range(D):
            c = _cos(two_pi * p[:, d:d + 1] * l_row, use_bf16)
            s = c if s is None else s + c
        return s
    nb = n_cols // blk
    j_row = _fiota((1, blk), 1)                                  # 0..127
    b_row = l0 + jnp.float32(blk) * _fiota((1, nb), 1)           # block phases
    pieces = [None] * nb
    # TODO(synk): for large qk_dim switch to lax.fori_loop over d-chunks with a
    # VMEM score accumulator to bound unrolled code size.
    for d in range(D):
        a = two_pi * p[:, d:d + 1]                               # (Tt, 1)
        cj, sj = _cossin(a * j_row, use_bf16)                    # (Tt, 128)
        cb, sb = _cossin(a * b_row, use_bf16)                    # (Tt, nb)
        for b_i in range(nb):
            piece = cb[:, b_i:b_i + 1] * cj - sb[:, b_i:b_i + 1] * sj
            pieces[b_i] = piece if pieces[b_i] is None else pieces[b_i] + piece
    return jnp.concatenate(pieces, axis=1)


def _sum_cos_rows(p, t0, n_rows, use_bf16, blk=128):
    """(n_rows, Tl)[t, l] = sum_d cos(2*pi * p[d, l] * (t0 + t)).

    p: (D, Tl) phases (already reduced mod 1).  Same factorization, over t.
    """
    D, Tl = p.shape
    two_pi = jnp.float32(_TWO_PI)
    if n_rows <= blk or n_rows % blk != 0:
        t_col = t0 + _fiota((n_rows, 1), 0)
        s = None
        for d in range(D):
            c = _cos(two_pi * p[d:d + 1, :] * t_col, use_bf16)
            s = c if s is None else s + c
        return s
    nb = n_rows // blk
    r_col = _fiota((blk, 1), 0)                                  # 0..127
    b_col = t0 + jnp.float32(blk) * _fiota((nb, 1), 0)           # block phases
    pieces = [None] * nb
    for d in range(D):
        a = two_pi * p[d:d + 1, :]                               # (1, Tl)
        cj, sj = _cossin(r_col * a, use_bf16)                    # (128, Tl)
        cb, sb = _cossin(b_col * a, use_bf16)                    # (nb, Tl)
        for b_i in range(nb):
            piece = cb[b_i:b_i + 1, :] * cj - sb[b_i:b_i + 1, :] * sj
            pieces[b_i] = piece if pieces[b_i] is None else pieces[b_i] + piece
    return jnp.concatenate(pieces, axis=0)


# ---------------------------------------------------------------------------
# Data-dependent branch
# ---------------------------------------------------------------------------
def _dd_kernel(q_ref, k_ref, vl_ref, vres_ref, o_ref, acc_ref, *,
               eps, std_dev, t_tile, l_tile, use_bf16_cos):
    """One (t-tile, batch, head, l-tile) step.

    q_ref: (Tt, D) q[t, d]            k_ref: (D, Tl) k[d, l]
    vl_ref: (Tl, H) bf16 contraction  vres_ref/o_ref: (Tt, H)
    acc_ref: (Tt, H) f32, accumulated over l tiles (output-resident pattern).

    score[t, l] = sum_d cos(c*q[t,d]*l) - cos(c*k[d,l]*t),   c = 2*pi*eps
    out[t, :]   = std_dev * sum_l score[t, l] * v[l, :] + v[t, :]
    """
    li = pl.program_id(3)

    @pl.when(li == 0)
    def _():
        acc_ref[...] = jnp.zeros_like(acc_ref)

    t0 = (pl.program_id(0) * t_tile).astype(jnp.float32)
    l0 = (li * l_tile).astype(jnp.float32)

    # mod-1 reduction of eps*q / eps*k keeps the angle accurate at large L
    # (the integer index makes it exact mathematically).
    qp = _frac(jnp.float32(eps) * q_ref[...].astype(jnp.float32))   # (Tt, D)
    kp = _frac(jnp.float32(eps) * k_ref[...].astype(jnp.float32))   # (D, Tl)

    sq = _sum_cos_cols(qp, l0, l_tile, use_bf16_cos)    # (Tt, Tl)
    sk = _sum_cos_rows(kp, t0, t_tile, use_bf16_cos)    # (Tt, Tl)

    # Single fused MXU matmul (bf16 operands, f32 accumulation).
    score = (sq - sk).astype(jnp.bfloat16)
    acc_ref[...] += jnp.dot(score, vl_ref[...],
                            preferred_element_type=jnp.float32)

    @pl.when(li == pl.num_programs(3) - 1)
    def _():
        o_ref[...] = (jnp.float32(std_dev) * acc_ref[...]
                      + vres_ref[...].astype(jnp.float32)).astype(o_ref.dtype)


# ---------------------------------------------------------------------------
# DFT branch (batch-blocked, HBM-bandwidth oriented)
# ---------------------------------------------------------------------------
def _dft_kernel(dft_ref, vl_ref, vres_ref, o_ref, acc_ref, *, std_dev, b_blk):
    """out[b,t,c] = std_dev * sum_l dft[t,l]*v[b,l,c] + v[b,t,c], tiled over l.

    dft_ref: (tt, tl) bf16 (shared across the b_blk batch block)
    vl_ref : (b_blk, tl, tc) bf16     vres_ref/o_ref/acc_ref: (b_blk, tt, tc)
    """
    li = pl.program_id(3)

    @pl.when(li == 0)
    def _():
        acc_ref[...] = jnp.zeros_like(acc_ref)

    dft = dft_ref[...]
    for bb in range(b_blk):   # amortize the dft tile DMA over b_blk batches
        acc_ref[bb] += jnp.dot(dft, vl_ref[bb],
                               preferred_element_type=jnp.float32)

    @pl.when(li == pl.num_programs(3) - 1)
    def _():
        o_ref[...] = (jnp.float32(std_dev) * acc_ref[...]
                      + vres_ref[...].astype(jnp.float32)).astype(o_ref.dtype)


def _select_dft_tiles(L, Dm, B, out_itemsize, vmem_budget):
    """Pick (tt, tl, tc, b_blk) maximizing steady-state arithmetic intensity
    bb*tt*tc/(tt + bb*tc) under an explicit double-buffered VMEM budget."""
    tc = _pick_tile(Dm, (512, 256, 128))
    tl = _pick_tile(L, (512, 256, 128))
    tt_cands = [c for c in (2048, 1024, 512, 256, 128) if L % c == 0] or [L]
    bb_cands = [c for c in (4, 2, 1) if B % c == 0]
    if 1 not in bb_cands:
        bb_cands.append(1)

    def est_bytes(tt, bb):
        return (2 * tt * tl * 2                 # dft tile (bf16), 2 buffers
                + 2 * bb * tl * tc * 2          # v contraction operand (bf16)
                + 2 * bb * tt * tc * 4          # v residual (f32)
                + 2 * bb * tt * tc * out_itemsize
                + bb * tt * tc * 4)             # f32 accumulator scratch

    best = None
    for tt in tt_cands:
        for bb in bb_cands:
            est = est_bytes(tt, bb)
            if est > vmem_budget:
                continue
            inten = (bb * tt * tc) / float(tt + bb * tc)
            if best is None or inten > best[0]:
                best = (inten, tt, bb, est)
    if best is None:
        tt, bb = tt_cands[-1], 1
        best = (0.0, tt, bb, est_bytes(tt, bb))
    _, tt, bb, est = best
    return tt, tl, tc, bb, est


# ---------------------------------------------------------------------------
# Static-bias branch
# ---------------------------------------------------------------------------
def _bias_qhalf_host(q_bias, seq_len):
    """q-half of the row: sum_d sum_{l<L} cos(2*pi*q[n,d,t]*l), host float64
    via the Dirichlet closed form (stable; no f32 cancellation)."""
    qb = np.asarray(jax.device_get(q_bias), dtype=np.float64)   # (N, D, L)
    x = np.pi * qb
    sx = np.sin(x)
    near = np.abs(sx) < 1e-12
    num = np.cos((seq_len - 1) * x) * np.sin(seq_len * x)
    dirich = np.where(near, float(seq_len),
                      num / np.where(near, 1.0, sx))
    return jnp.asarray(dirich.sum(axis=1)[..., None], dtype=jnp.float32)  # (N,L,1)


def _bias_krow_kernel(k_ref, row_ref, *, t_tile, use_bf16_cos):
    """k-half of the row: row[t] += sum_d sum_{l in tile} cos(2*pi*k[d,l]*t).

    k_ref: (D, Tl)     row_ref: (Tt, 1) f32 accumulated over l tiles.
    (The (Tt, 1) lane-sparse store is fine here: this is a cached, once-per-
    parameter-update precompute, and the apply kernel wants t on sublanes.)
    """
    li = pl.program_id(2)

    @pl.when(li == 0)
    def _():
        row_ref[...] = jnp.zeros_like(row_ref)

    t0 = (pl.program_id(0) * t_tile).astype(jnp.float32)
    kp = _frac(k_ref[...].astype(jnp.float32))                   # (D, Tl)
    m = _sum_cos_rows(kp, t0, row_ref.shape[0], use_bf16_cos)    # (Tt, Tl)
    row_ref[...] += jnp.sum(m, axis=1, keepdims=True)


def _bias_apply_kernel(row_ref, v_ref, o_ref, *, std_dev):
    """o[t, h] = v[t, h] * (1 + std_dev * row[t])."""
    scale = jnp.float32(1.0) + jnp.float32(std_dev) * row_ref[...]   # (Tt, 1)
    o_ref[...] = (v_ref[...].astype(jnp.float32) * scale).astype(o_ref.dtype)


# ---------------------------------------------------------------------------
# Module wrapper
# ---------------------------------------------------------------------------
class VandermondePallas:
    def __init__(self, is_data_dependent, d_model, qk_dim, is_dft=True,
                 max_seq_len=None, expand=2, headdim=128):
        self.is_data_dependent = is_data_dependent
        self.d_model = d_model
        self.qk_dim = qk_dim
        self.is_dft = is_dft
        self.max_seq_len = max_seq_len
        self.expand = expand
        self.d_inner = expand * d_model
        self.headdim = headdim
        assert self.d_inner % self.headdim == 0
        self.nheads = self.d_inner // self.headdim
        self.d_state = self.nheads * qk_dim

        self._bf16_cos = _bf16_transcendentals_ok()
        self._vmem_cap = _vmem_capacity_bytes()

        if self.is_data_dependent:
            self.std_dev = 1.0 / np.sqrt(2 * max_seq_len * qk_dim)
            self.eps = 0.001
        elif self.is_dft:
            # mod-L phase keeps the angle exact for large L (t*l overflows the
            # f32 mantissa around L ~ 4k otherwise); stored bf16 for the MXU.
            idx = np.arange(max_seq_len, dtype=np.int64)
            phase = (idx[:, None] * idx[None, :]) % max_seq_len
            dft = np.cos(2.0 * np.pi * phase / max_seq_len)
            self.dft_matrix = jnp.asarray(dft, dtype=jnp.bfloat16)
            self.std_dev = 1.0 / np.sqrt(max_seq_len)
        else:
            # Module initializes these parameters to zeros.
            self.q_bias = jnp.zeros((self.nheads, qk_dim, max_seq_len), jnp.float32)
            self.k_bias = jnp.zeros((self.nheads, qk_dim, max_seq_len), jnp.float32)
            self.std_dev = 1.0 / np.sqrt(2 * max_seq_len * qk_dim)
            self._row_cache = None
            self._row_src = (None, None)

    # -- forward ------------------------------------------------------------
    def __call__(self, v, q=None, k=None):
        B, L, Dm = v.shape
        assert Dm == self.d_inner
        out_shape = jax.ShapeDtypeStruct((B, L, Dm), v.dtype)
        if self.is_data_dependent:
            return self._forward_dd(v, q, k, out_shape)
        if self.is_dft:
            return self._forward_dft(v, out_shape)
        return self._forward_bias(v, out_shape)

    # -- data-dependent -------------------------------------------------------
    def _forward_dd(self, v, q, k, out_shape):
        B, L, Dm = v.shape
        N, H, D = self.nheads, self.headdim, self.qk_dim
        # Big t-tile fills MXU rows; tl capped at 256 so the live (Tt, Tl)
        # score tiles / spill traffic stay bounded once the EUP work drops.
        tt = _pick_tile(L, (512, 256, 128))
        tl = _pick_tile(L, (256, 128))
        nt, nl = L // tt, L // tl
        # Tiny qk_dim-wide transposes only; v never takes an HBM transpose.
        q4 = q.reshape(B, L, N, D).transpose(0, 2, 1, 3)    # (B, N, L, D)
        k4 = k.reshape(B, L, N, D).transpose(0, 2, 3, 1)    # (B, N, D, L)
        v_bf = v.astype(jnp.bfloat16)                       # contraction operand
        # NOTE: no input_output_aliases — v is re-read at every l-tile for
        # later t-tiles, so in-place writeback would corrupt the operand.
        return pl.pallas_call(
            functools.partial(_dd_kernel, eps=self.eps, std_dev=self.std_dev,
                              t_tile=tt, l_tile=tl, use_bf16_cos=self._bf16_cos),
            out_shape=out_shape,
            grid=(nt, B, N, nl),             # nt leads: megacore balance (v7x)
            in_specs=[
                pl.BlockSpec((None, None, tt, D),
                             lambda ti, b, n, li: (b, n, ti, 0)),
                pl.BlockSpec((None, None, D, tl),
                             lambda ti, b, n, li: (b, n, 0, li)),
                pl.BlockSpec((None, tl, H), lambda ti, b, n, li: (b, li, n)),
                pl.BlockSpec((None, tt, H), lambda ti, b, n, li: (b, ti, n)),
            ],
            out_specs=pl.BlockSpec((None, tt, H),
                                   lambda ti, b, n, li: (b, ti, n)),
            scratch_shapes=[pltpu.VMEM((tt, H), jnp.float32)],
            compiler_params=pltpu.CompilerParams(
                dimension_semantics=("parallel", "parallel", "parallel",
                                     "arbitrary")),
        )(q4, k4, v_bf, v)

    # -- DFT ------------------------------------------------------------------
    def _forward_dft(self, v, out_shape):
        B, L, Dm = v.shape
        assert L == self.max_seq_len
        budget = int(0.70 * self._vmem_cap)
        tt, tl, tc, bb, est = _select_dft_tiles(L, Dm, B, v.dtype.itemsize,
                                                budget)
        nt, nl, nc = L // tt, L // tl, Dm // tc
        v_bf = v.astype(jnp.bfloat16)        # bf16 contraction stream (-33% HBM)
        vmem_limit = int(min(0.9 * self._vmem_cap,
                             max(32 << 20, est + (8 << 20))))
        return pl.pallas_call(
            functools.partial(_dft_kernel, std_dev=self.std_dev, b_blk=bb),
            out_shape=out_shape,
            grid=(nt, B // bb, nc, nl),
            in_specs=[
                pl.BlockSpec((tt, tl), lambda ti, bi, ci, li: (ti, li)),
                pl.BlockSpec((bb, tl, tc), lambda ti, bi, ci, li: (bi, li, ci)),
                pl.BlockSpec((bb, tt, tc), lambda ti, bi, ci, li: (bi, ti, ci)),
            ],
            out_specs=pl.BlockSpec((bb, tt, tc),
                                   lambda ti, bi, ci, li: (bi, ti, ci)),
            scratch_shapes=[pltpu.VMEM((bb, tt, tc), jnp.float32)],
            compiler_params=pltpu.CompilerParams(
                dimension_semantics=("parallel", "parallel", "parallel",
                                     "arbitrary"),
                vmem_limit_bytes=vmem_limit),
        )(self.dft_matrix, v_bf, v)

    # -- static bias ------------------------------------------------------------
    def _bias_row(self, L):
        """Batch-invariant row[n, t]; cached, recomputed only on param change."""
        if (self._row_cache is not None
                and self._row_src[0] is self.q_bias
                and self._row_src[1] is self.k_bias):
            return self._row_cache
        N, D = self.nheads, self.qk_dim
        tt = _pick_tile(L, (512, 256, 128))
        tl = _pick_tile(L, (512, 256, 128))
        nt, nl = L // tt, L // tl
        q_half = _bias_qhalf_host(self.q_bias, L)           # (N, L, 1) f32
        k_half = pl.pallas_call(
            functools.partial(_bias_krow_kernel, t_tile=tt,
                              use_bf16_cos=False),           # cached: f32 cos
            out_shape=jax.ShapeDtypeStruct((N, L, 1), jnp.float32),
            grid=(nt, N, nl),
            in_specs=[pl.BlockSpec((None, D, tl),
                                   lambda ti, n, li: (n, 0, li))],
            out_specs=pl.BlockSpec((None, tt, 1),
                                   lambda ti, n, li: (n, ti, 0)),
            compiler_params=pltpu.CompilerParams(
                dimension_semantics=("parallel", "parallel", "arbitrary")),
        )(self.k_bias)
        row = q_half + k_half
        self._row_cache = row
        self._row_src = (self.q_bias, self.k_bias)
        return row

    def _forward_bias(self, v, out_shape):
        B, L, Dm = v.shape
        N, H = self.nheads, self.headdim
        assert L == self.max_seq_len
        row = self._bias_row(L)
        tt = _pick_tile(L, (512, 256, 128))
        nt = L // tt
        return pl.pallas_call(
            functools.partial(_bias_apply_kernel, std_dev=self.std_dev),
            out_shape=out_shape,
            grid=(nt, B, N),
            in_specs=[
                pl.BlockSpec((None, tt, 1), lambda ti, b, n: (n, ti, 0)),
                pl.BlockSpec((None, tt, H), lambda ti, b, n: (b, ti, n)),
            ],
            out_specs=pl.BlockSpec((None, tt, H), lambda ti, b, n: (b, ti, n)),
            compiler_params=pltpu.CompilerParams(
                dimension_semantics=("parallel", "parallel", "parallel")),
        )(row, v)


# ---------------------------------------------------------------------------
# Pure-JAX references (mirror the torch forward exactly, in f32)
# ---------------------------------------------------------------------------
def _ref_dd(v, q, k, nheads, qk_dim, max_seq_len):
    B, L, Dm = v.shape
    H = Dm // nheads
    eps = 0.001
    std = 1.0 / np.sqrt(2 * max_seq_len * qk_dim)
    vr = v.reshape(B, L, nheads, H)
    qr = q.reshape(B, L, nheads, qk_dim).transpose(0, 2, 3, 1)
    kr = k.reshape(B, L, nheads, qk_dim).transpose(0, 2, 3, 1)
    ar = jnp.arange(L, dtype=v.dtype)
    qm = jnp.cos(2 * jnp.pi * eps * jnp.einsum('bndt,l->bndtl', qr, ar))
    km = jnp.cos(2 * jnp.pi * eps * jnp.einsum('bndt,l->bndlt', kr, ar))
    sym = (qm - km).sum(axis=2)
    out = jnp.einsum('bntl,blnh->btnh', sym, vr)
    return (std * out).reshape(B, L, Dm) + v


def _ref_dft(v, nheads, max_seq_len):
    B, L, Dm = v.shape
    H = Dm // nheads
    idx = jnp.arange(max_seq_len, dtype=v.dtype)
    dft = jnp.cos(2 * jnp.pi * idx[:, None] * idx[None, :] / max_seq_len)
    std = 1.0 / np.sqrt(max_seq_len)
    vr = v.reshape(B, L, nheads, H)
    out = jnp.einsum('blnh,tl->btnh', vr, dft)
    return (std * out).reshape(B, L, Dm) + v


def _ref_bias(v, q_bias, k_bias, nheads, qk_dim, max_seq_len):
    B, L, Dm = v.shape
    H = Dm // nheads
    std = 1.0 / np.sqrt(2 * max_seq_len * qk_dim)
    vr = v.reshape(B, L, nheads, H)
    ar = jnp.arange(max_seq_len, dtype=v.dtype)
    qm = jnp.cos(2 * jnp.pi * jnp.einsum('ndt,l->ndtl', q_bias, ar))
    km = jnp.cos(2 * jnp.pi * jnp.einsum('ndt,l->ndlt', k_bias, ar))
    sym = (qm + km).sum(axis=1)
    out = jnp.einsum('ntl,btnh->btnh', sym, vr)
    return (std * out).reshape(B, L, Dm) + v


# ---------------------------------------------------------------------------
if __name__ == "__main__":
    key = jax.random.PRNGKey(0)
    B, L = 2, 16
    d_model, expand, headdim, qk_dim = 128, 2, 128, 4   # headdim = module default
    d_inner = expand * d_model            # 256
    nheads = d_inner // headdim           # 2

    k1, k2, k3, k4, k5, k6, k7, k8 = jax.random.split(key, 8)
    v = jax.random.normal(k1, (B, L, d_inner), dtype=jnp.float32)
    q = jax.random.normal(k2, (B, L, nheads * qk_dim), dtype=jnp.float32)
    kk = jax.random.normal(k3, (B, L, nheads * qk_dim), dtype=jnp.float32)

    # bf16 cosines (v6e/v7x) + bf16 MXU operands limit matching to ~2 digits;
    # structural bugs would show up as O(1) errors, well above this tolerance.
    dd_tol = dict(rtol=3e-2, atol=5e-2)

    # 1) data-dependent branch (small shape)
    m_dd = VandermondePallas(True, d_model, qk_dim, max_seq_len=L,
                             expand=expand, headdim=headdim)
    out_dd = jax.block_until_ready(m_dd(v, q, kk))
    np.testing.assert_allclose(out_dd, _ref_dd(v, q, kk, nheads, qk_dim, L),
                               **dd_tol)

    # 1b) data-dependent branch at L=256: exercises the 128-lane angle-addition
    #     factorization and the fused score matmul.
    L2, B2 = 256, 1
    v2 = jax.random.normal(k6, (B2, L2, d_inner), dtype=jnp.float32)
    q2 = jax.random.normal(k7, (B2, L2, nheads * qk_dim), dtype=jnp.float32)
    kk2 = jax.random.normal(k8, (B2, L2, nheads * qk_dim), dtype=jnp.float32)
    m_dd2 = VandermondePallas(True, d_model, qk_dim, max_seq_len=L2,
                              expand=expand, headdim=headdim)
    out_dd2 = jax.block_until_ready(m_dd2(v2, q2, kk2))
    np.testing.assert_allclose(out_dd2,
                               _ref_dd(v2, q2, kk2, nheads, qk_dim, L2),
                               **dd_tol)

    # 2) DFT branch (batch-blocked, bf16 contraction stream)
    m_dft = VandermondePallas(False, d_model, qk_dim, is_dft=True, max_seq_len=L,
                              expand=expand, headdim=headdim)
    out_dft = jax.block_until_ready(m_dft(v))
    np.testing.assert_allclose(out_dft, _ref_dft(v, nheads, L),
                               rtol=2e-2, atol=2e-2)

    # 3) static-bias branch: zero init (as in the module) ...
    m_b = VandermondePallas(False, d_model, qk_dim, is_dft=False, max_seq_len=L,
                            expand=expand, headdim=headdim)
    out_b0 = jax.block_until_ready(m_b(v))
    np.testing.assert_allclose(out_b0, _ref_bias(v, m_b.q_bias, m_b.k_bias,
                                                 nheads, qk_dim, L),
                               rtol=2e-2, atol=2e-2)
    # ... and non-trivial biases (cache invalidation + host-f64 Dirichlet path).
    m_b.q_bias = 0.05 * jax.random.normal(k4, (nheads, qk_dim, L), jnp.float32)
    m_b.k_bias = 0.05 * jax.random.normal(k5, (nheads, qk_dim, L), jnp.float32)
    out_b1 = jax.block_until_ready(m_b(v))
    np.testing.assert_allclose(out_b1, _ref_bias(v, m_b.q_bias, m_b.k_bias,
                                                 nheads, qk_dim, L),
                               rtol=2e-2, atol=2e-2)

    print("KERNEL_OK")
</pallas_src>

<mosaic_0001>
module attributes {stable_mosaic.version = 11 : i64} {
  func.func @_dd_kernel(%arg0: i32, %arg1: i32, %arg2: i32, %arg3: i32, %arg4: memref<1x1x16x4xf32, #tpu.memory_space<vmem>>, %arg5: memref<1x1x4x16xf32, #tpu.memory_space<vmem>>, %arg6: memref<1x16x128xbf16, #tpu.memory_space<vmem>>, %arg7: memref<1x16x128xf32, #tpu.memory_space<vmem>>, %arg8: memref<1x16x128xf32, #tpu.memory_space<vmem>>, %arg9: memref<16x128xf32, #tpu.memory_space<vmem>>) attributes {dimension_semantics = [#tpu.dimension_semantics<parallel>, #tpu.dimension_semantics<parallel>, #tpu.dimension_semantics<parallel>, #tpu.dimension_semantics<arbitrary>], iteration_bounds = array<i64: 1, 2, 2, 1>, scalar_prefetch = 0 : i64, scratch_operands = 1 : i64, tpu.core_type = #tpu.core_type<tc>, window_params = [{transform_indices = @transform_0, window_bounds = array<i64: 1, 1, 16, 4>}, {transform_indices = @transform_1, window_bounds = array<i64: 1, 1, 4, 16>}, {transform_indices = @transform_2, window_bounds = array<i64: 1, 16, 128>}, {transform_indices = @transform_3, window_bounds = array<i64: 1, 16, 128>}, {transform_indices = @transform_4, window_bounds = array<i64: 1, 16, 128>}]} {
    %c0_i32 = arith.constant 0 : i32
    %0 = arith.cmpi eq, %arg3, %c0_i32 : i32
    %1 = arith.extui %0 : i1 to i32
    %c0_i32_0 = arith.constant 0 : i32
    %2 = arith.cmpi ne, %1, %c0_i32_0 : i32
    scf.if %2 {
      %cst_52 = arith.constant 0.000000e+00 : f32
      %164 = vector.broadcast %cst_52 : f32 to vector<16x128xf32>
      %c0_53 = arith.constant 0 : index
      %c0_54 = arith.constant 0 : index
      %165 = vector.load %arg9[%c0_53, %c0_54] : memref<16x128xf32, #tpu.memory_space<vmem>>, vector<16x128xf32>
      tpu.vector_store %arg9[%c0_53, %c0_54], %164 {strides = array<i32>} : memref<16x128xf32, #tpu.memory_space<vmem>>, vector<16x128xf32>,
    } else {
    }
    %c16_i32 = arith.constant 16 : i32
    %3 = arith.muli %arg0, %c16_i32 : i32
    %4 = arith.sitofp %3 : i32 to f32
    %c16_i32_1 = arith.constant 16 : i32
    %5 = arith.muli %arg3, %c16_i32_1 : i32
    %6 = arith.sitofp %5 : i32 to f32
    %c0 = arith.constant 0 : index
    %c0_2 = arith.constant 0 : index
    %c0_3 = arith.constant 0 : index
    %c0_4 = arith.constant 0 : index
    %7 = vector.load %arg4[%c0, %c0_2, %c0_3, %c0_4] : memref<1x1x16x4xf32, #tpu.memory_space<vmem>>, vector<1x1x16x4xf32>
    %8 = vector.shape_cast %7 : vector<1x1x16x4xf32> to vector<16x4xf32>
    %cst = arith.constant 1.000000e-03 : f32
    %9 = vector.broadcast %cst : f32 to vector<16x4xf32>
    %10 = arith.mulf %9, %8 : vector<16x4xf32>
    %11 = math.floor %10 : vector<16x4xf32>
    %12 = arith.subf %10, %11 : vector<16x4xf32>
    %c0_5 = arith.constant 0 : index
    %c0_6 = arith.constant 0 : index
    %c0_7 = arith.constant 0 : index
    %c0_8 = arith.constant 0 : index
    %13 = vector.load %arg5[%c0_5, %c0_6, %c0_7, %c0_8] : memref<1x1x4x16xf32, #tpu.memory_space<vmem>>, vector<1x1x4x16xf32>
    %14 = vector.shape_cast %13 : vector<1x1x4x16xf32> to vector<4x16xf32>
    %cst_9 = arith.constant 1.000000e-03 : f32
    %15 = vector.broadcast %cst_9 : f32 to vector<4x16xf32>
    %16 = arith.mulf %15, %14 : vector<4x16xf32>
    %17 = math.floor %16 : vector<4x16xf32>
    %18 = arith.subf %16, %17 : vector<4x16xf32>
    %19 = tpu.iota {dimensions = array<i32: 1>} : vector<1x16xi32>
    %20 = arith.sitofp %19 : vector<1x16xi32> to vector<1x16xf32>
    %21 = vector.broadcast %6 : f32 to vector<1x16xf32>
    %22 = arith.addf %21, %20 : vector<1x16xf32>
    %23 = vector.extract_strided_slice %12 {offsets = [0, 0], sizes = [16, 1], strides = [1, 1]} : vector<16x4xf32> to vector<16x1xf32>
    %cst_10 = arith.constant 6.28318548 : f32
    %24 = vector.broadcast %cst_10 : f32 to vector<16x1xf32>
    %25 = arith.mulf %24, %23 : vector<16x1xf32>
    %26 = vector.broadcast %25 : vector<16x1xf32> to vector<16x16xf32>
    %27 = vector.broadcast %22 : vector<1x16xf32> to vector<16x16xf32>
    %28 = arith.mulf %26, %27 : vector<16x16xf32>
    %cst_11 = arith.constant 0.159154937 : f32
    %29 = vector.broadcast %cst_11 : f32 to vector<16x16xf32>
    %30 = arith.mulf %28, %29 : vector<16x16xf32>
    %cst_12 = arith.constant 5.000000e-01 : f32
    %31 = vector.broadcast %cst_12 : f32 to vector<16x16xf32>
    %32 = arith.addf %30, %31 : vector<16x16xf32>
    %33 = math.floor %32 : vector<16x16xf32>
    %cst_13 = arith.constant 6.28318548 : f32
    %34 = vector.broadcast %cst_13 : f32 to vector<16x16xf32>
    %35 = arith.mulf %34, %33 : vector<16x16xf32>
    %36 = arith.subf %28, %35 : vector<16x16xf32>
    %37 = math.cos %36 : vector<16x16xf32>
    %38 = vector.extract_strided_slice %12 {offsets = [0, 1], sizes = [16, 1], strides = [1, 1]} : vector<16x4xf32> to vector<16x1xf32>
    %cst_14 = arith.constant 6.28318548 : f32
    %39 = vector.broadcast %cst_14 : f32 to vector<16x1xf32>
    %40 = arith.mulf %39, %38 : vector<16x1xf32>
    %41 = vector.broadcast %40 : vector<16x1xf32> to vector<16x16xf32>
    %42 = vector.broadcast %22 : vector<1x16xf32> to vector<16x16xf32>
    %43 = arith.mulf %41, %42 : vector<16x16xf32>
    %cst_15 = arith.constant 0.159154937 : f32
    %44 = vector.broadcast %cst_15 : f32 to vector<16x16xf32>
    %45 = arith.mulf %43, %44 : vector<16x16xf32>
    %cst_16 = arith.constant 5.000000e-01 : f32
    %46 = vector.broadcast %cst_16 : f32 to vector<16x16xf32>
    %47 = arith.addf %45, %46 : vector<16x16xf32>
    %48 = math.floor %47 : vector<16x16xf32>
    %cst_17 = arith.constant 6.28318548 : f32
    %49 = vector.broadcast %cst_17 : f32 to vector<16x16xf32>
    %50 = arith.mulf %49, %48 : vector<16x16xf32>
    %51 = arith.subf %43, %50 : vector<16x16xf32>
    %52 = math.cos %51 : vector<16x16xf32>
    %53 = arith.addf %37, %52 : vector<16x16xf32>
    %54 = vector.extract_strided_slice %12 {offsets = [0, 2], sizes = [16, 1], strides = [1, 1]} : vector<16x4xf32> to vector<16x1xf32>
    %cst_18 = arith.constant 6.28318548 : f32
    %55 = vector.broadcast %cst_18 : f32 to vector<16x1xf32>
    %56 = arith.mulf %55, %54 : vector<16x1xf32>
    %57 = vector.broadcast %56 : vector<16x1xf32> to vector<16x16xf32>
    %58 = vector.broadcast %22 : vector<1x16xf32> to vector<16x16xf32>
    %59 = arith.mulf %57, %58 : vector<16x16xf32>
    %cst_19 = arith.constant 0.159154937 : f32
    %60 = vector.broadcast %cst_19 : f32 to vector<16x16xf32>
    %61 = arith.mulf %59, %60 : vector<16x16xf32>
    %cst_20 = arith.constant 5.000000e-01 : f32
    %62 = vector.broadcast %cst_20 : f32 to vector<16x16xf32>
    %63 = arith.addf %61, %62 : vector<16x16xf32>
    %64 = math.floor %63 : vector<16x16xf32>
    %cst_21 = arith.constant 6.28318548 : f32
    %65 = vector.broadcast %cst_21 : f32 to vector<16x16xf32>
    %66 = arith.mulf %65, %64 : vector<16x16xf32>
    %67 = arith.subf %59, %66 : vector<16x16xf32>
    %68 = math.cos %67 : vector<16x16xf32>
    %69 = arith.addf %53, %68 : vector<16x16xf32>
    %70 = vector.extract_strided_slice %12 {offsets = [0, 3], sizes = [16, 1], strides = [1, 1]} : vector<16x4xf32> to vector<16x1xf32>
    %cst_22 = arith.constant 6.28318548 : f32
    %71 = vector.broadcast %cst_22 : f32 to vector<16x1xf32>
    %72 = arith.mulf %71, %70 : vector<16x1xf32>
    %73 = vector.broadcast %72 : vector<16x1xf32> to vector<16x16xf32>
    %74 = vector.broadcast %22 : vector<1x16xf32> to vector<16x16xf32>
    %75 = arith.mulf %73, %74 : vector<16x16xf32>
    %cst_23 = arith.constant 0.159154937 : f32
    %76 = vector.broadcast %cst_23 : f32 to vector<16x16xf32>
    %77 = arith.mulf %75, %76 : vector<16x16xf32>
    %cst_24 = arith.constant 5.000000e-01 : f32
    %78 = vector.broadcast %cst_24 : f32 to vector<16x16xf32>
    %79 = arith.addf %77, %78 : vector<16x16xf32>
    %80 = math.floor %79 : vector<16x16xf32>
    %cst_25 = arith.constant 6.28318548 : f32
    %81 = vector.broadcast %cst_25 : f32 to vector<16x16xf32>
    %82 = arith.mulf %81, %80 : vector<16x16xf32>
    %83 = arith.subf %75, %82 : vector<16x16xf32>
    %84 = math.cos %83 : vector<16x16xf32>
    %85 = arith.addf %69, %84 : vector<16x16xf32>
    %86 = tpu.iota {dimensions = array<i32: 0>} : vector<16x1xi32>
    %87 = arith.sitofp %86 : vector<16x1xi32> to vector<16x1xf32>
    %88 = vector.broadcast %4 : f32 to vector<16x1xf32>
    %89 = arith.addf %88, %87 : vector<16x1xf32>
    %90 = vector.extract_strided_slice %18 {offsets = [0, 0], sizes = [1, 16], strides = [1, 1]} : vector<4x16xf32> to vector<1x16xf32>
    %cst_26 = arith.constant 6.28318548 : f32
    %91 = vector.broadcast %cst_26 : f32 to vector<1x16xf32>
    %92 = arith.mulf %91, %90 : vector<1x16xf32>
    %93 = vector.broadcast %92 : vector<1x16xf32> to vector<16x16xf32>
    %94 = vector.broadcast %89 : vector<16x1xf32> to vector<16x16xf32>
    %95 = arith.mulf %93, %94 : vector<16x16xf32>
    %cst_27 = arith.constant 0.159154937 : f32
    %96 = vector.broadcast %cst_27 : f32 to vector<16x16xf32>
    %97 = arith.mulf %95, %96 : vector<16x16xf32>
    %cst_28 = arith.constant 5.000000e-01 : f32
    %98 = vector.broadcast %cst_28 : f32 to vector<16x16xf32>
    %99 = arith.addf %97, %98 : vector<16x16xf32>
    %100 = math.floor %99 : vector<16x16xf32>
    %cst_29 = arith.constant 6.28318548 : f32
    %101 = vector.broadcast %cst_29 : f32 to vector<16x16xf32>
    %102 = arith.mulf %101, %100 : vector<16x16xf32>
    %103 = arith.subf %95, %102 : vector<16x16xf32>
    %104 = math.cos %103 : vector<16x16xf32>
    %105 = vector.extract_strided_slice %18 {offsets = [1, 0], sizes = [1, 16], strides = [1, 1]} : vector<4x16xf32> to vector<1x16xf32>
    %cst_30 = arith.constant 6.28318548 : f32
    %106 = vector.broadcast %cst_30 : f32 to vector<1x16xf32>
    %107 = arith.mulf %106, %105 : vector<1x16xf32>
    %108 = vector.broadcast %107 : vector<1x16xf32> to vector<16x16xf32>
    %109 = vector.broadcast %89 : vector<16x1xf32> to vector<16x16xf32>
    %110 = arith.mulf %108, %109 : vector<16x16xf32>
    %cst_31 = arith.constant 0.159154937 : f32
    %111 = vector.broadcast %cst_31 : f32 to vector<16x16xf32>
    %112 = arith.mulf %110, %111 : vector<16x16xf32>
    %cst_32 = arith.constant 5.000000e-01 : f32
    %113 = vector.broadcast %cst_32 : f32 to vector<16x16xf32>
    %114 = arith.addf %112, %113 : vector<16x16xf32>
    %115 = math.floor %114 : vector<16x16xf32>
    %cst_33 = arith.constant 6.28318548 : f32
    %116 = vector.broadcast %cst_33 : f32 to vector<16x16xf32>
    %117 = arith.mulf %116, %115 : vector<16x16xf32>
    %118 = arith.subf %110, %117 : vector<16x16xf32>
    %119 = math.cos %118 : vector<16x16xf32>
    %120 = arith.addf %104, %119 : vector<16x16xf32>
    %121 = vector.extract_strided_slice %18 {offsets = [2, 0], sizes = [1, 16], strides = [1, 1]} : vector<4x16xf32> to vector<1x16xf32>
    %cst_34 = arith.constant 6.28318548 : f32
    %122 = vector.broadcast %cst_34 : f32 to vector<1x16xf32>
    %123 = arith.mulf %122, %121 : vector<1x16xf32>
    %124 = vector.broadcast %123 : vector<1x16xf32> to vector<16x16xf32>
    %125 = vector.broadcast %89 : vector<16x1xf32> to vector<16x16xf32>
    %126 = arith.mulf %124, %125 : vector<16x16xf32>
    %cst_35 = arith.constant 0.159154937 : f32
    %127 = vector.broadcast %cst_35 : f32 to vector<16x16xf32>
    %128 = arith.mulf %126, %127 : vector<16x16xf32>
    %cst_36 = arith.constant 5.000000e-01 : f32
    %129 = vector.broadcast %cst_36 : f32 to vector<16x16xf32>
    %130 = arith.addf %128, %129 : vector<16x16xf32>
    %131 = math.floor %130 : vector<16x16xf32>
    %cst_37 = arith.constant 6.28318548 : f32
    %132 = vector.broadcast %cst_37 : f32 to vector<16x16xf32>
    %133 = arith.mulf %132, %131 : vector<16x16xf32>
    %134 = arith.subf %126, %133 : vector<16x16xf32>
    %135 = math.cos %134 : vector<16x16xf32>
    %136 = arith.addf %120, %135 : vector<16x16xf32>
    %137 = vector.extract_strided_slice %18 {offsets = [3, 0], sizes = [1, 16], strides = [1, 1]} : vector<4x16xf32> to vector<1x16xf32>
    %cst_38 = arith.constant 6.28318548 : f32
    %138 = vector.broadcast %cst_38 : f32 to vector<1x16xf32>
    %139 = arith.mulf %138, %137 : vector<1x16xf32>
    %140 = vector.broadcast %139 : vector<1x16xf32> to vector<16x16xf32>
    %141 = vector.broadcast %89 : vector<16x1xf32> to vector<16x16xf32>
    %142 = arith.mulf %140, %141 : vector<16x16xf32>
    %cst_39 = arith.constant 0.159154937 : f32
    %143 = vector.broadcast %cst_39 : f32 to vector<16x16xf32>
    %144 = arith.mulf %142, %143 : vector<16x16xf32>
    %cst_40 = arith.constant 5.000000e-01 : f32
    %145 = vector.broadcast %cst_40 : f32 to vector<16x16xf32>
    %146 = arith.addf %144, %145 : vector<16x16xf32>
    %147 = math.floor %146 : vector<16x16xf32>
    %cst_41 = arith.constant 6.28318548 : f32
    %148 = vector.broadcast %cst_41 : f32 to vector<16x16xf32>
    %149 = arith.mulf %148, %147 : vector<16x16xf32>
    %150 = arith.subf %142, %149 : vector<16x16xf32>
    %151 = math.cos %150 : vector<16x16xf32>
    %152 = arith.addf %136, %151 : vector<16x16xf32>
    %153 = arith.subf %85, %152 : vector<16x16xf32>
    %154 = arith.truncf %153 : vector<16x16xf32> to vector<16x16xbf16>
    %c0_42 = arith.constant 0 : index
    %c0_43 = arith.constant 0 : index
    %155 = vector.load %arg9[%c0_42, %c0_43] : memref<16x128xf32, #tpu.memory_space<vmem>>, vector<16x128xf32>
    %c0_44 = arith.constant 0 : index
    %c0_45 = arith.constant 0 : index
    %c0_46 = arith.constant 0 : index
    %156 = vector.load %arg6[%c0_44, %c0_45, %c0_46] : memref<1x16x128xbf16, #tpu.memory_space<vmem>>, vector<1x16x128xbf16>
    %157 = vector.shape_cast %156 : vector<1x16x128xbf16> to vector<16x128xbf16>
    %cst_47 = arith.constant dense<0.000000e+00> : vector<16x128xf32>
    %158 = tpu.matmul %154, %157, %cst_47 {dimension_numbers = #tpu.dot_dimension_numbers<[1], [0], [0], [1], [0, 0, 1, 1], [], []>} : vector<16x16xbf16>, vector<16x128xbf16>, vector<16x128xf32> -> vector<16x128xf32>
    %159 = arith.addf %155, %158 : vector<16x128xf32>
    %c0_48 = arith.constant 0 : index
    %c0_49 = arith.constant 0 : index
    %160 = vector.load %arg9[%c0_48, %c0_49] : memref<16x128xf32, #tpu.memory_space<vmem>>, vector<16x128xf32>
    tpu.vector_store %arg9[%c0_48, %c0_49], %159 {strides = array<i32>} : memref<16x128xf32, #tpu.memory_space<vmem>>, vector<16x128xf32>,
    %c0_i32_50 = arith.constant 0 : i32
    %161 = arith.cmpi eq, %arg3, %c0_i32_50 : i32
    %162 = arith.extui %161 : i1 to i32
    %c0_i32_51 = arith.constant 0 : i32
    %163 = arith.cmpi ne, %162, %c0_i32_51 : i32
    scf.if %163 {
      %c0_52 = arith.constant 0 : index
      %c0_53 = arith.constant 0 : index
      %164 = vector.load %arg9[%c0_52, %c0_53] : memref<16x128xf32, #tpu.memory_space<vmem>>, vector<16x128xf32>
      %cst_54 = arith.constant 0.0883883461 : f32
      %165 = vector.broadcast %cst_54 : f32 to vector<16x128xf32>
      %166 = arith.mulf %165, %164 : vector<16x128xf32>
      %c0_55 = arith.constant 0 : index
      %c0_56 = arith.constant 0 : index
      %c0_57 = arith.constant 0 : index
      %167 = vector.load %arg7[%c0_55, %c0_56, %c0_57] : memref<1x16x128xf32, #tpu.memory_space<vmem>>, vector<1x16x128xf32>
      %168 = vector.shape_cast %167 : vector<1x16x128xf32> to vector<16x128xf32>
      %169 = arith.addf %166, %168 : vector<16x128xf32>
      %c0_58 = arith.constant 0 : index
      %c0_59 = arith.constant 0 : index
      %c0_60 = arith.constant 0 : index
      %170 = vector.load %arg8[%c0_58, %c0_59, %c0_60] : memref<1x16x128xf32, #tpu.memory_space<vmem>>, vector<1x16x128xf32>
      %171 = vector.shape_cast %170 : vector<1x16x128xf32> to vector<16x128xf32>
      %172 = vector.shape_cast %169 : vector<16x128xf32> to vector<1x16x128xf32>
      tpu.vector_store %arg8[%c0_58, %c0_59, %c0_60], %172 {strides = array<i32>} : memref<1x16x128xf32, #tpu.memory_space<vmem>>, vector<1x16x128xf32>,
    } else {
    }
    return
  }
  func.func @transform_0(%arg0: i32, %arg1: i32, %arg2: i32, %arg3: i32) -> (i32, i32, i32, i32) {
    %c0_i32 = arith.constant 0 : i32
    %c0_i32_0 = arith.constant 0 : i32
    return %arg1, %arg2, %arg0, %c0_i32 : i32, i32, i32, i32
  }
  func.func @transform_1(%arg0: i32, %arg1: i32, %arg2: i32, %arg3: i32) -> (i32, i32, i32, i32) {
    %c0_i32 = arith.constant 0 : i32
    %c0_i32_0 = arith.constant 0 : i32
    return %arg1, %arg2, %c0_i32, %arg3 : i32, i32, i32, i32
  }
  func.func @transform_2(%arg0: i32, %arg1: i32, %arg2: i32, %arg3: i32) -> (i32, i32, i32) {
    %c0_i32 = arith.constant 0 : i32
    return %arg1, %arg3, %arg2 : i32, i32, i32
  }
  func.func @transform_3(%arg0: i32, %arg1: i32, %arg2: i32, %arg3: i32) -> (i32, i32, i32) {
    %c0_i32 = arith.constant 0 : i32
    return %arg1, %arg0, %arg2 : i32, i32, i32
  }
  func.func @transform_4(%arg0: i32, %arg1: i32, %arg2: i32, %arg3: i32) -> (i32, i32, i32) {
    %c0_i32 = arith.constant 0 : i32
    return %arg1, %arg0, %arg2 : i32, i32, i32
  }
}

</mosaic_0001>

<bundles_post_ra>
// kernel: tpu_custom_call.1
= control target key start
LH: loop header
LB: loop body
LE: loop exit
PB: predicated region body
PF: predicated region fallthrough
CT: control target
= control target key end

     0   :  { %s5308_s0 = inlined_call_operand.vmem [shape: f32[2,2,16,4], index: 0, kind: input, shape index: {}]   ;;  %s5309_s1 = inlined_call_operand.vmem [shape: f32[2,2,4,16], index: 1, kind: input, shape index: {}]   ;;  %s5310_s2 = inlined_call_operand.hbm [shape: bf16[2,16,256], index: 2, kind: input, shape index: {}]   ;;  %s5311_s3 = inlined_call_operand.vmem [shape: f32[2,16,256], index: 3, kind: input, shape index: {}]   ;;  %s5312_s4 = inlined_call_operand.hbm [shape: f32[2,16,256], index: 4, kind: output, shape index: {}]  }
   0x1   :  { %5367 = sst [smem:[#allocation30_spill]] %s5310_s2 }
   0x2   :  { %9 = vsyncpa [#allocation4], 0 }
   0x3   :  { %11 = vsyncpa [#allocation4 + $0x1], 0 }
   0x4   :  { %12 = vsyncpa [#allocation5], 0 }
   0x5   :  { %14 = vsyncpa [#allocation5 + $0x1], 0  ;;  %s3016_s15 = smov 0   ;;  %s3018_s16 = smov 0  }
   0x6   :  { %s3020_s17 = smov 0   ;;  %s3022_s18 = smov 0  }
   0x7   :  { %s3024_s19 = smov 0   ;;  %s3026_s20 = smov 0  }
   0x8   :  { %s3028_s21 = smov 0   ;;  %s3030_s22 = smov 0  }
   0x9 LB: > { %s2519_s23 = sadd.s32 4294967295, %s2969_s22   ;;  %s2520_s24 = sadd.s32 4294967294, %s2969_s22   ;;  %s2969_s22 = sphi %s3030_s22, %s20_s22   ;;  %s2965_s21 = sphi %s3028_s21, %s5491_s21   ;;  %s2961_s20 = sphi %s3026_s20, %s5490_s20   ;;  %s2957_s19 = sphi %s3024_s19, %s5489_s19   ;;  %s2953_s18 = sphi %s3022_s18, %s5488_s18   ;;  %s2949_s17 = sphi %s3020_s17, %s5487_s17   ;;  %s2945_s16 = sphi %s3018_s16, %s5486_s16   ;;  %s2941_s15 = sphi %s3016_s15, %s5485_s15  }
   0xa   : > { %s38_s25 = sadd.s32 1, %s2961_s20  ;;  %s42_s26 = sadd.s32 1, %s2965_s21 }
   0xb   : > { %p40_p0 = scmp.ge.s32.totalorder %s38_s25, 2  ;;  %p124_p1 = scmp.ne.s32.totalorder %s2949_s17, %s2945_s16 }
   0xc   : > { %p125_p2 = scmp.eq.s32.totalorder %s2969_s22, 0  ;;  %p130_p5 = scmp.ne.s32.totalorder %s2945_s16, %s2941_s15 }
   0xd   : > { %s5493_s25 = smov (%p40_p0, %s38_s25), 0  ;;  %s5495_s26 = smov (!%p40_p0, %s42_s26), %s2965_s21 }
   0xe   : > { %5368 = sst [smem:[#allocation10_spill]] %s5493_s25  ;;  %s113_s27 = ssub.s32 %s2961_s20, %s5493_s25 }
   0xf   : > { %p3068_p3 = por %p125_p2, %p124_p1  ;;  %p44_p4 = scmp.ge.s32.totalorder %s5495_s26, 2 }
  0x10   : > { %p131_p6 = scmp.eq.s32.totalorder %s2519_s23, 0  ;;  %p188_p7 = scmp.eq.s32.totalorder %s2519_s23, 3 }
  0x11   : > { %s5497_s26 = smov (%p44_p4, %s5495_s26), 0  ;;  %p194_p10 = scmp.eq.s32.totalorder %s2520_s24, 3 }
  0x12   : > { %5370 = sst [smem:[#allocation11_spill]] %s5497_s26  ;;  %p3076_p8 = por %p131_p6, %p130_p5 }
  0x13   : > { %p3080_p9 = por %p188_p7, %p124_p1  ;;  %s110_s5 = ssub.s32 %s2965_s21, %s5497_s26 }
  0x14   : > { %s114_s6 = sor.u32 %s113_s27, %s110_s5  ;;  %s117_s7 = sadd.s32 1, %s2949_s17 }
  0x15   : > { %s5372_s30 = scalar_select %p3080_p9, 1, 0 }
  0x16   : > { %p115_p11 = scmp.eq.s32.totalorder %s114_s6, 0  ;;  %p3087_p12 = por %p194_p10, %p130_p5 }
  0x17   : > { %p2522_p13 = scmp.ge.s32.totalorder %s2969_s22, 4 }
  0x18   : > { %s5373_s8 = scalar_select %p3087_p12, 1, 0 }
  0x19   : > { %s3092_s9 = scalar_select %p115_p11, %s2949_s17, %s117_s7  }
  0x1a   : > { %210 = sbr.rel (%p2522_p13) target bundleno = 65 (0x41), region = 16  ;;  %s3096_s10 = sand.u32 (!%p2522_p13), 1, %s2949_s17  }
  0x1b   : > { %s2524_s11 = sshll.u32 (!%p2522_p13), %s2965_s21, 2  ;;  %s2523_s12 = sshll.u32 (!%p2522_p13), %s3096_s10, 3 }
  0x1c   : > { %s3101_s13 = sadd.s32 (!%p2522_p13), %s2961_s20, %s2524_s11  ;;  %s249_s23 = scalar_lea.vmem (!%p2522_p13), [#allocation3], %s2523_s12 }
  0x1d   : > { %s2525_s14 = sshll.u32 (!%p2522_p13), %s3101_s13, 6  ;;  %s260_s24 = sshll.u32 (!%p2522_p13), %s249_s23, 4  ;;  %s3109_s24 = int_to_ptr.vmem [resolvable:$true] %s260_s24 }
  0x1e   : > { %s5374_s2 = sld [smem:[#allocation30_spill]] (!%p2522_p13)  ;;  %s246_s7 = scalar_lea.sflag (!%p2522_p13), [#allocation4], %s3096_s10 }
  0x24   : > { %s3107_s6 = scalar_lea.hbm %s5374_s2, %s2525_s14  ;;  %s2847_s23 = scalar_lea.hbm %s5374_s2, 512 }
  0x25   : > { %s2843_s26 = scalar_lea.hbm %s3107_s6, 128  ;;  %p2848_p4 = scmp.lt.u32.totalorder %s3107_s6, %s5374_s2 }
  0x26   : > { %p2844_p0 = scmp.ne.s32.totalorder %s3107_s6, %s2843_s26  ;;  %p2849_p5 = scmp.lt.u32.totalorder %s2847_s23, %s2843_s26 }
  0x27   : > { %p2851_p7 = scmp.lt.u32.totalorder %s2843_s26, %s3107_s6 }
  0x28   : > { %p2845_p1 = pnand %p2844_p0, %p3068_p3  ;;  %p2850_p6 = por %p2849_p5, %p2848_p4 }
  0x2a   : > { %p2846_p2 = pneg %p2845_p1  ;;  %p2852_p10 = por %p2851_p7, %p2850_p6 }
  0x2c   : > { %p2853_p11 = pnand %p2852_p10, %p2846_p2 }
  0x2e   : > { %2856 = shalt.err (!%p2853_p11)
}
  0x2f   : > { %s2857_s14 = scalar_lea.vmem %s3109_s24, 128  ;;  %s2971_s5 = smov [#allocation3]  }
  0x30   : > { %p2858_p13 = scmp.ne.s32.totalorder %s3109_s24, %s2857_s14  ;;  %s2861_s11 = sshll.u32 %s2971_s5, 4  ;;  %s2862_s11 = int_to_ptr.vmem [resolvable:$false] %s2861_s11 }
  0x31   : > { %s2863_s25 = scalar_lea.vmem %s2862_s11, 256  ;;  %p2864_p12 = scmp.lt.s32.totalorder %s3109_s24, %s2862_s11 }
  0x32   : > { %p2859_p0 = pnand %p2858_p13, %p3068_p3  ;;  %p2865_p9 = scmp.lt.s32.totalorder %s2863_s25, %s2857_s14 }
  0x34   : > { %p2860_p1 = pneg %p2859_p0  ;;  %p2866_p4 = por %p2865_p9, %p2864_p12 }
  0x36   : > { %p2867_p5 = pnand %p2866_p4, %p2860_p1 }
  0x38   : > { %2870 = shalt.err (!%p2867_p5)
}
  0x39   : > { %s2972_s26 = smov 128   ;;  %s2973_s12 = smov 64  }
  0x3a   : > { %s2974_s23 = smov 4   ;;  %269 = sbr.rel (!%p3068_p3) target bundleno = 65 (0x41), region = 32 }
  0x3b   : > { %2681 = dma.hbm_to_vmem [thread:$0]  (%p3068_p3), %s3107_s6, 128, %s3109_s24, %s246_s7, %s2972_s26, %s2973_s12, %s2974_s23  }
  0x3c   : > { %s2526_s27 = sshll.u32 (%p3068_p3), %s3096_s10, 4  ;;  %s2528_s14 = sshll.u32 (%p3068_p3), %s3101_s13, 3 }
  0x3d   : > { %s280_s25 = scalar_lea.vmem (%p3068_p3), %s5311_s3, %s2528_s14  ;;  %s273_s2 = scalar_lea.vmem (%p3068_p3), [#allocation6], %s2526_s27 }
  0x3e   : > { %v310_v0 = vld [vmem:[%s280_s25] sm:$0xff] (%p3068_p3)  ;;  %v312_v1 = vld [vmem:[%s280_s25 + $0x10] sm:$0xff] (%p3068_p3) }
  0x3f   : > { %311 = vst [vmem:[%s273_s2] sm:$0xff] (%p3068_p3), %v310_v0  ;;  %313 = vst [vmem:[%s273_s2 + $0x8] sm:$0xff] (%p3068_p3), %v312_v1 }
  0x41 PF: > { %p2529_p9 = scmp.ge.s32.totalorder %s2969_s22, 1  ;;  %p318_p12 = scmp.lt.s32.totalorder %s2969_s22, 5 }
  0x43   : > { %p319_p3 = pnand %p2529_p9, %p318_p12 }
  0x45   : > { %322 = sbr.rel (%p319_p3) target bundleno = 905 (0x389), region = 70 }
  0x4c   : > { %s3145_s28 = sand.u32 1, %s2945_s16  }
  0x4d   : > { %s2530_s10 = sshll.u32 %s3145_s28, 3  ;;  %s325_s13 = scalar_lea.sflag [#allocation4], %s3145_s28 }
  0x4e   : > { %s3149_s24 = scalar_lea.vmem [#allocation3], %s2530_s10 }
  0x4f   : > { %2932 = dma.done.wait (%p3076_p8), %s325_s13, 128  }
  0x50   : > { %2934 = vsyncadd (%p3076_p8), %s325_s13, 4294967168  ;;  %p389_p2 = scmp.lt.s32.totalorder %s2957_s19, 1  ;;  %p391_p6 = scmp.lt.s32.totalorder %s2953_s18, 1  ;;  %v2975_v2 = vmov 1   ;;  %v2976_v3 = vmov 0   ;;  %v2977_v14 = vmov 2   ;;  %v439_v16 = vlaneseq }
  0x51   : > { %2773 = vset.pattern.permute.xlu1 %v2975_v2  ;;  %2772 = vset.pattern.permute.xlu0 %v2976_v3  ;;  %v2978_v15 = vmov 3   ;;  %v5321_v53 = vmov 1326507024   ;;  %v5325_v56 = vmov 920167782   ;;  %s2337_s14 = scalar_lea.sflag [#allocation5], %s3145_s28 }
  0x52   : > { %s390_s2 = scalar_select %p389_p2, %s2957_s19, 1  ;;  %v440_v17 = vand.u32 127, %v439_v16  ;;  %v5333_v62 = vmov 2131351028   ;;  %v5323_v0 = vmov 2102212464  }
  0x53   : > { %s392_s6 = scalar_select %p391_p6, %s2953_s18, 1 }
  0x54   : > { %s2534_s7 = sshll.u32 %s390_s2, 2  ;;  %s2536_s26 = sshll.u32 %s390_s2, 1  ;;  %v3165_v18 = vcvt.s32.f32 %v440_v17 }
  0x55   : > { %s2533_s12 = sshll.u32 %s392_s6, 1  ;;  %s3159_s23 = sadd.s32 %s2536_s26, %s392_s6 }
  0x56   : > { %s398_s27 = sadd.s32 %s2534_s7, %s2533_s12  ;;  %s2537_s25 = sshll.u32 %s3159_s23, 2 }
  0x57   : > { %s2535_s29 = sshll.u32 %s398_s27, 3  ;;  %s412_s2 = scalar_lea.vmem %s5309_s1, %s2537_s25 }
  0x58   : > { %s400_s11 = scalar_lea.vmem %s5308_s0, %s2535_s29  ;;  %s2605_s6 = sshll.u32 %s2957_s19, 2 }
  0x59   : > { %v427_v4 = vld [vmem:[%s400_s11] sm:$0xff]  ;;  %v428_v5 = vld [vmem:[%s400_s11 + $0x8] sm:$0xff]  ;;  %s2351_s7 = sadd.s32 %s2953_s18, %s2605_s6  ;;  %p5481_p7 = scmp.ne.s32.totalorder %s5372_s30, 0 }
  0x5a   : > { %v429_v6 = vmul.f32 0.001, %v427_v4  ;;  %v430_v7 = vmul.f32 0.001, %v428_v5  ;;  %v5331_v4 = vmov 2475754826  }
  0x5b   : > { %s2606_s27 = sshll.u32 %s2351_s7, 7  ;;  %s2987_s11 = smov [#allocation7]  }
  0x5c   : > { %v431_v8 = vfloor.f32 %v429_v6  ;;  %v432_v9 = vfloor.f32 %v430_v7  ;;  %s5254_s29 = scalar_lea.hbm %s5312_s4, %s2606_s27  ;;  %s2875_s25 = sshll.u32 %s2987_s11, 4  ;;  %s2876_s25 = int_to_ptr.vmem [resolvable:$false] %s2875_s25 }
  0x5d   : > { %s2877_s10 = scalar_lea.vmem %s2876_s25, 512 }
  0x5e   : > { %v433_v10 = vsub.f32 %v429_v6, %v431_v8  ;;  %v434_v11 = vsub.f32 %v430_v7, %v432_v9 }
  0x60   : > { %v444_v12 = vmul.f32 6.2831855, %v433_v10  ;;  %v445_v13 = vmul.f32 6.2831855, %v434_v11 }
  0x62   : > { %675 = vperm.xlu1 %2773, %v444_v12   ;;  %448 = vperm.xlu0 %2772, %v444_v12  }
  0x66   : > { %679 = vperm.xlu1 %2773, %v445_v13   ;;  %453 = vperm.xlu0 %2772, %v445_v13  }
  0x6a   : > { %2775 = vset.pattern.permute.xlu1 %v2977_v14  ;;  %2774 = vset.pattern.permute.xlu0 %v2977_v14 }
  0x6b   : > { %907 = vperm.xlu1 %2775, %v445_v13   ;;  %903 = vperm.xlu0 %2774, %v444_v12  }
  0x6f   : > { %2776 = vset.pattern.permute.xlu1 %v2978_v15  ;;  %2777 = vset.pattern.permute.xlu0 %v2978_v15 }
  0x70   : > { %1131 = vperm.xlu1 %2776, %v444_v12   ;;  %1135 = vperm.xlu0 %2777, %v445_v13   ;;  %v5335_v12 = vmov 683565275  }
  0xe1   : > { %v676_v19 = vpop.permute.xlu1 %675  ;;  %v449_v20 = vpop.permute.xlu0 %448 }
  0xe2   : > { %v682_v21 = vmul.f32 %v676_v19, %v3165_v18  ;;  %v456_v22 = vmul.f32 %v449_v20, %v3165_v18 }
  0xe4   : > { %v684_v23 = vmul.f32 0.15915494, %v682_v21  ;;  %v458_v25 = vmul.f32 0.15915494, %v456_v22 }
  0xe5   : > { %v680_v34 = vpop.permute.xlu1 %679  ;;  %v454_v44 = vpop.permute.xlu0 %453 }
  0xe6   : > { %v686_v24 = vadd.f32 0.5, %v684_v23  ;;  %v460_v28 = vadd.f32 0.5, %v458_v25  ;;  %v683_v37 = vmul.f32 %v680_v34, %v3165_v18  ;;  %v457_v48 = vmul.f32 %v454_v44, %v3165_v18 }
  0xe8   : > { %v688_v26 = vfloor.f32 %v686_v24  ;;  %v462_v31 = vfloor.f32 %v460_v28  ;;  %v685_v40 = vmul.f32 0.15915494, %v683_v37  ;;  %v459_v52 = vmul.f32 0.15915494, %v457_v48 }
  0xea   : > { %v690_v27 = vmul.f32 6.2831855, %v688_v26  ;;  %v464_v33 = vmul.f32 6.2831855, %v462_v31  ;;  %v687_v42 = vadd.f32 0.5, %v685_v40  ;;  %v461_v61 = vadd.f32 0.5, %v459_v52 }
  0xec   : > { %v3169_v29 = vsub.f32 %v682_v21, %v690_v27  ;;  %v3172_v36 = vsub.f32 %v456_v22, %v464_v33  ;;  %v689_v47 = vfloor.f32 %v687_v42  ;;  %v463_v19 = vfloor.f32 %v461_v61 }
  0xee   : > { %v697_v30 = vand.u32 2139095040, %v3169_v29  ;;  %v471_v39 = vand.u32 2139095040, %v3172_v36  ;;  %v691_v51 = vmul.f32 6.2831855, %v689_v47  ;;  %v5320_v58 = vand.u32 2147483647, %v3169_v29 }
  0xef   : > { %v465_v28 = vmul.f32 6.2831855, %v463_v19 }
  0xf0   : > { %v698_v32 = vshrl.u32 %v697_v30, 23  ;;  %v472_v41 = vshrl.u32 %v471_v39, 23  ;;  %v3181_v55 = vsub.f32 %v683_v37, %v691_v51  ;;  %v701_v11 = vand.u32 8388607, %v5320_v58 }
  0xf2   : > { %v2546_v35 = vadd.s32 4294967169, %v698_v32  ;;  %v2538_v46 = vadd.s32 4294967169, %v472_v41  ;;  %v800_v7 = vand.u32 2139095040, %v3181_v55  ;;  %v702_v24 = vor.u32 8388608, %v701_v11 }
  0xf3   : > { %v3237_v41 = vsub.f32 %v457_v48, %v465_v28  ;;  %v908_v48 = vpop.permute.xlu1 %907 }
  0xf4   : > { %v704_v38 = vadd.s32 1, %v2546_v35  ;;  %v478_v50 = vadd.s32 1, %v2538_v46  ;;  %v801_v22 = vshrl.u32 %v800_v7, 23  ;;  %v3226_v34 = vshll.u32 %v702_v24, 8 }
  0xf5   : > { %v5319_v35 = vand.u32 2147483647, %v3172_v36 }
  0xf6   : > { %vm705_vm0 = vcmp.gt.s32.totalorder %v704_v38, 0  ;;  %vm479_vm1 = vcmp.gt.s32.totalorder %v478_v50, 0  ;;  %v2550_v32 = vadd.s32 4294967169, %v801_v22 }
  0xf7   : > { %v706_v43 = vsel %vm705_vm0, %v704_v38, 0  ;;  %v480_v3 = vsel %vm479_vm1, %v478_v50, 0 }
  0xf8   : > { %v708_v45 = vand.u32 31, %v706_v43  ;;  %v3186_v59 = vshrl.u32 %v706_v43, 5  ;;  %v482_v14 = vand.u32 31, %v480_v3  ;;  %v3233_v39 = vshrl.u32 %v480_v3, 5 }
  0xf9   : > { %v475_v3 = vand.u32 8388607, %v5319_v35 }
  0xfa   : > { %v3177_v49 = vsub.s32 32, %v708_v45  ;;  %v723_v60 = vshll.u32 %v5325_v56, %v708_v45  ;;  %v720_v2 = vshll.u32 %v5323_v0, %v708_v45  ;;  %v714_v8 = vshll.u32 %v5331_v4, %v708_v45 }
  0xfb   : > { %v717_v9 = vshll.u32 %v5333_v62, %v708_v45  ;;  %v711_v13 = vshll.u32 %v5335_v12, %v708_v45  ;;  %vm729_vm2 = vcmp.lt.s32.totalorder %v3186_v59, 4  ;;  %vm726_vm3 = vcmp.lt.s32.totalorder %v3186_v59, 1 }
  0xfc   : > { %v724_v54 = vshrl.u32 %v5321_v53, %v3177_v49  ;;  %v721_v57 = vshrl.u32 %v5325_v56, %v3177_v49  ;;  %v715_v63 = vshrl.u32 %v5333_v62, %v3177_v49  ;;  %v718_v1 = vshrl.u32 %v5323_v0, %v3177_v49 }
  0xfd   : > { %v712_v5 = vshrl.u32 %v5331_v4, %v3177_v49  ;;  %vm728_vm4 = vcmp.lt.s32.totalorder %v3186_v59, 3  ;;  %v3211_v25 = vsub.s32 32, %v482_v14  ;;  %vm727_vm5 = vcmp.lt.s32.totalorder %v3186_v59, 2 }
  0xfe   : > { %v725_v6 = vor.u32 %v724_v54, %v723_v60  ;;  %v722_v10 = vor.u32 %v721_v57, %v720_v2  ;;  %v3202_v15 = vor.u32 %v715_v63, %v714_v8  ;;  %v719_v17 = vor.u32 %v718_v1, %v717_v9 }
  0xff   : > { %v713_v20 = vor.u32 %v712_v5, %v711_v13  ;;  %v495_v37 = vshrl.u32 %v5325_v56, %v3211_v25  ;;  %v498_v40 = vshrl.u32 %v5321_v53, %v3211_v25  ;;  %v486_v42 = vshrl.u32 %v5331_v4, %v3211_v25 }
 0x100   : > { %v739_v21 = vsel %vm729_vm2, %v725_v6, 1326507024  ;;  %v735_v23 = vsel %vm729_vm2, %v722_v10, 920167782  ;;  %v738_v26 = vsel %vm726_vm3, %v3202_v15, %v719_v17  ;;  %v489_v43 = vshrl.u32 %v5333_v62, %v3211_v25 }
 0x101   : > { %v740_v27 = vsel %vm728_vm4, %v722_v10, %v739_v21  ;;  %v734_v30 = vsel %vm726_vm3, %v713_v20, %v3202_v15  ;;  %v736_v31 = vsel %vm728_vm4, %v719_v17, %v735_v23  ;;  %v494_v44 = vshll.u32 %v5323_v0, %v482_v14 }
 0x102   : > { %v741_v33 = vsel %vm727_vm5, %v738_v26, %v740_v27  ;;  %v737_v38 = vsel %vm727_vm5, %v734_v30, %v736_v31  ;;  %v807_v45 = vadd.s32 1, %v2550_v32  ;;  %v492_v50 = vshrl.u32 %v5323_v0, %v3211_v25 }
 0x103   : > { %v3245_v46 = vmul.u32.u64.low %v3226_v34, %v741_v33  ;;  %v3246_v47 = vmul.u32.u64.high %v3226_v34, %v741_v33, %v3245_v46  ;;  %v497_v51 = vshll.u32 %v5325_v56, %v482_v14  ;;  %v485_v57 = vshll.u32 %v5335_v12, %v482_v14 }
 0x104   : > { %v3252_v52 = vmul.u32.u64.low %v3226_v34, %v737_v38  ;;  %v3253_v54 = vmul.u32.u64.high %v3226_v34, %v737_v38, %v3252_v52  ;;  %v496_v60 = vor.u32 %v495_v37, %v494_v44  ;;  %v488_v61 = vshll.u32 %v5331_v4, %v482_v14 }
 0x105   : > { %v491_v63 = vshll.u32 %v5333_v62, %v482_v14  ;;  %v499_v1 = vor.u32 %v498_v40, %v497_v51  ;;  %v574_v2 = vand.u32 2139095040, %v3237_v41  ;;  %vm808_vm6 = vcmp.gt.s32.totalorder %v807_v45, 0 }
 0x106   : > { %v3263_v5 = vmul.f32 %v908_v48, %v3165_v18  ;;  %v487_v6 = vor.u32 %v486_v42, %v485_v57  ;;  %v490_v7 = vor.u32 %v489_v43, %v488_v61  ;;  %vm503_vm7 = vcmp.lt.s32.totalorder %v3233_v39, 4 }
 0x107   : > { %v493_v8 = vor.u32 %v492_v50, %v491_v63  ;;  %v731_v9 = vsel %vm729_vm2, %v719_v17, 2102212464  ;;  %v509_v10 = vsel %vm503_vm7, %v496_v60, 920167782  ;;  %v710_v11 = vshrl.u32 %v5335_v12, %v3177_v49 }
 0x108   : > { %v513_v13 = vsel %vm503_vm7, %v499_v1, 1326507024  ;;  %v809_v14 = vsel %vm808_vm6, %v807_v45, 0  ;;  %v575_v19 = vshrl.u32 %v574_v2, 23  ;;  %v476_v21 = vor.u32 8388608, %v475_v3 }
 0x109   : > { %vm500_vm8 = vcmp.lt.s32.totalorder %v3233_v39, 1  ;;  %vm502_vm9 = vcmp.lt.s32.totalorder %v3233_v39, 3  ;;  %v913_v22 = vmul.f32 0.15915494, %v3263_v5  ;;  %v730_v17 = vsel %vm726_vm3, %v710_v11, %v713_v20 }
 0x10a   : > { %v732_v23 = vsel %vm728_vm4, %v3202_v15, %v731_v9  ;;  %v508_v49 = vsel %vm500_vm8, %v487_v6, %v490_v7  ;;  %v510_v24 = vsel %vm502_vm9, %v493_v8, %v509_v10  ;;  %v752_v26 = vadd.s32 1, %v3253_v54 }
 0x10b   : > { %v512_v27 = vsel %vm500_vm8, %v490_v7, %v493_v8  ;;  %v514_v28 = vsel %vm502_vm9, %v496_v60, %v513_v13  ;;  %v811_v30 = vand.u32 31, %v809_v14  ;;  %vm751_vm10 = vc.u32 %v3246_v47, %v3252_v52 }
 0x10c   : > { %vm501_vm11 = vcmp.lt.s32.totalorder %v3233_v39, 2  ;;  %v2542_v15 = vadd.s32 4294967169, %v575_v19  ;;  %v733_v20 = vsel %vm727_vm5, %v730_v17, %v732_v23  ;;  %v516_v33 = vshll.u32 %v476_v21, 8 }
 0x10d   : > { %v511_v31 = vsel %vm501_vm11, %v508_v49, %v510_v24  ;;  %v515_v32 = vsel %vm501_vm11, %v512_v27, %v514_v28  ;;  %v753_v37 = vsel %vm751_vm10, %v752_v26, %v3253_v54  ;;  %v3301_v38 = vsub.s32 32, %v811_v30  ;;  %v904_v49 = vpop.permute.xlu0 %903 }
 0x10e   : > { %v915_v40 = vadd.f32 0.5, %v913_v22  ;;  %v749_v42 = vmul.u32 %v3226_v34, %v733_v20  ;;  %v3304_v43 = vmul.u32.u64.low %v516_v33, %v511_v31  ;;  %v3305_v44 = vmul.u32.u64.high %v516_v33, %v511_v31, %v3304_v43 }
 0x10f   : > { %v581_v59 = vadd.s32 1, %v2542_v15  ;;  %v3308_v45 = vmul.u32.u64.low %v516_v33, %v515_v32  ;;  %v3309_v46 = vmul.u32.u64.high %v516_v33, %v515_v32, %v3308_v45  ;;  %v484_v51 = vshrl.u32 %v5335_v12, %v3211_v25 }
 0x110   : > { %v754_v50 = vadd.s32 %v753_v37, %v749_v42  ;;  %v505_v48 = vsel %vm503_vm7, %v493_v8, 2102212464  ;;  %v824_v54 = vshrl.u32 %v5325_v56, %v3301_v38  ;;  %v5318_v57 = vand.u32 2147483647, %v3181_v55 }
 0x111   : > { %v504_v34 = vsel %vm500_vm8, %v484_v51, %v487_v6  ;;  %vm582_vm12 = vcmp.gt.s32.totalorder %v581_v59, 0  ;;  %v917_v60 = vfloor.f32 %v915_v40  ;;  %v506_v61 = vsel %vm502_vm9, %v490_v7, %v505_v48 }
 0x112   : > { %v815_v63 = vshrl.u32 %v5331_v4, %v3301_v38  ;;  %v823_v25 = vshll.u32 %v5323_v0, %v811_v30  ;;  %v827_v1 = vshrl.u32 %v5321_v53, %v3301_v38  ;;  %v755_v2 = vadd.s32 536870912, %v754_v50 }
 0x113   : > { %v3327_v3 = vshrl.u32 %v809_v14, 5  ;;  %v818_v6 = vshrl.u32 %v5333_v62, %v3301_v38  ;;  %v821_v8 = vshrl.u32 %v5323_v0, %v3301_v38  ;;  %v814_v9 = vshll.u32 %v5335_v12, %v811_v30 }
 0x114   : > { %v825_v7 = vor.u32 %v824_v54, %v823_v25  ;;  %v826_v10 = vshll.u32 %v5325_v56, %v811_v30  ;;  %v583_v11 = vsel %vm582_vm12, %v581_v59, 0  ;;  %v526_v13 = vadd.s32 1, %v3305_v44 }
 0x115   : > { %v804_v19 = vand.u32 8388607, %v5318_v57  ;;  %v817_v14 = vshll.u32 %v5331_v4, %v811_v30  ;;  %v820_v21 = vshll.u32 %v5333_v62, %v811_v30  ;;  %v507_v22 = vsel %vm501_vm11, %v504_v34, %v506_v61 }
 0x116   : > { %vm525_vm13 = vc.u32 %v3309_v46, %v3304_v43  ;;  %v3344_v17 = vor.u32 %v815_v63, %v814_v9  ;;  %v828_v23 = vor.u32 %v827_v1, %v826_v10  ;;  %vm832_vm14 = vcmp.lt.s32.totalorder %v3327_v3, 4 }
 0x117   : > { %v3346_v24 = vor.u32 %v818_v6, %v817_v14  ;;  %v822_v26 = vor.u32 %v821_v8, %v820_v21  ;;  %v585_v27 = vand.u32 31, %v583_v11  ;;  %v3349_v28 = vshrl.u32 %v755_v2, 30 }
 0x118   : > { %v838_v30 = vsel %vm832_vm14, %v825_v7, 920167782  ;;  %v527_v39 = vsel %vm525_vm13, %v526_v13, %v3305_v44  ;;  %v919_v15 = vmul.f32 6.2831855, %v917_v60  ;;  %v3355_v20 = vmul.f32 %v904_v49, %v3165_v18 }
 0x119   : > { %v523_v31 = vmul.u32 %v516_v33, %v507_v22  ;;  %vm829_vm15 = vcmp.lt.s32.totalorder %v3327_v3, 1  ;;  %vm831_vm0 = vcmp.lt.s32.totalorder %v3327_v3, 3  ;;  %v842_v32 = vsel %vm832_vm14, %v828_v23, 1326507024 }
 0x11a   : > { %v805_v37 = vor.u32 8388608, %v804_v19  ;;  %v837_v40 = vsel %vm829_vm15, %v3344_v17, %v3346_v24  ;;  %v839_v42 = vsel %vm831_vm0, %v822_v26, %v838_v30  ;;  %v3367_v44 = vsub.s32 32, %v585_v27 }
 0x11b   : > { %v757_v33 = vshll.u32 %v3349_v28, 30  ;;  %v3370_v59 = vadd.s32 %v527_v39, %v523_v31  ;;  %vm830_vm1 = vcmp.lt.s32.totalorder %v3327_v3, 2  ;;  %v841_v45 = vsel %vm829_vm15, %v3346_v24, %v822_v26 }
 0x11c   : > { %v843_v51 = vsel %vm831_vm0, %v825_v7, %v842_v32  ;;  %v840_v48 = vsel %vm830_vm1, %v837_v40, %v839_v42  ;;  %v912_v54 = vmul.f32 0.15915494, %v3355_v20  ;;  %v3381_v34 = vshll.u32 %v805_v37, 8 }
 0x11d   : > { %v5317_v60 = vand.u32 2147483647, %v3237_v41  ;;  %v598_v61 = vshrl.u32 %v5325_v56, %v3367_v44  ;;  %v3387_v63 = vsub.f32 %v3263_v5, %v919_v15  ;;  %v3389_v25 = vsub.s32 %v754_v50, %v757_v33 }
 0x11e   : > { %v529_v1 = vadd.s32 536870912, %v3370_v59  ;;  %v844_v2 = vsel %vm830_vm1, %v841_v45, %v843_v51  ;;  %v601_v6 = vshrl.u32 %v5321_v53, %v3367_v44  ;;  %v3401_v7 = vshrl.u32 %v583_v11, 5 }
 0x11f   : > { %5375 = vst [vmem:[#allocation12_spill] sm:$0xff] %v3387_v63  ;;  %v3397_v8 = vmul.u32.u64.low %v3381_v34, %v840_v48  ;;  %v3398_v9 = vmul.u32.u64.high %v3381_v34, %v840_v48, %v3397_v8  ;;  %v597_v5 = vshll.u32 %v5323_v0, %v585_v27  ;;  %v589_v50 = vshrl.u32 %v5331_v4, %v3367_v44 }
 0x120   : > { %v592_v10 = vshrl.u32 %v5333_v62, %v3367_v44  ;;  %v595_v13 = vshrl.u32 %v5323_v0, %v3367_v44  ;;  %v600_v19 = vshll.u32 %v5325_v56, %v585_v27  ;;  %v1028_v11 = vand.u32 2139095040, %v3387_v63 }
 0x121   : > { %v3412_v14 = vmul.u32.u64.low %v3381_v34, %v844_v2  ;;  %v3413_v21 = vmul.u32.u64.high %v3381_v34, %v844_v2, %v3412_v14  ;;  %v599_v22 = vor.u32 %v598_v61, %v597_v5  ;;  %v588_v23 = vshll.u32 %v5335_v12, %v585_v27 }
 0x122   : > { %v591_v49 = vshll.u32 %v5331_v4, %v585_v27  ;;  %v594_v30 = vshll.u32 %v5333_v62, %v585_v27  ;;  %v602_v39 = vor.u32 %v601_v6, %v600_v19  ;;  %v834_v15 = vsel %vm832_vm14, %v822_v26, 2102212464 }
 0x123   : > { %v578_v31 = vand.u32 8388607, %v5317_v60  ;;  %v1029_v32 = vshrl.u32 %v1028_v11, 23  ;;  %v590_v37 = vor.u32 %v589_v50, %v588_v23  ;;  %vm606_vm2 = vcmp.lt.s32.totalorder %v3401_v7, 4 }
 0x124   : > { %v593_v40 = vor.u32 %v592_v10, %v591_v49  ;;  %v596_v42 = vor.u32 %v595_v13, %v594_v30  ;;  %v813_v33 = vshrl.u32 %v5335_v12, %v3301_v38  ;;  %v612_v45 = vsel %vm606_vm2, %v599_v22, 920167782 }
 0x125   : > { %v2558_v27 = vadd.s32 4294967169, %v1029_v32  ;;  %v760_v51 = vsub.s32 0, %v3389_v25  ;;  %v3429_v48 = vshrl.u32 %v529_v1, 30  ;;  %v616_v26 = vsel %vm606_vm2, %v602_v39, 1326507024 }
 0x126   : > { %v914_v61 = vadd.f32 0.5, %v912_v54  ;;  %v833_v2 = vsel %vm829_vm15, %v813_v33, %v3344_v17  ;;  %v835_v38 = vsel %vm831_vm0, %v3346_v24, %v834_v15  ;;  %vm603_vm3 = vcmp.lt.s32.totalorder %v3401_v7, 1 }
 0x127   : > { %vm605_vm4 = vcmp.lt.s32.totalorder %v3401_v7, 3  ;;  %v855_v6 = vadd.s32 1, %v3398_v9  ;;  %v579_v1 = vor.u32 8388608, %v578_v31  ;;  %v611_v5 = vsel %vm603_vm3, %v590_v37, %v593_v40 }
 0x128   : > { %v613_v54 = vsel %vm605_vm4, %v596_v42, %v612_v45  ;;  %vm854_vm5 = vc.u32 %v3413_v21, %v3397_v8  ;;  %v615_v17 = vsel %vm603_vm3, %v593_v40, %v596_v42  ;;  %v617_v24 = vsel %vm605_vm4, %v599_v22, %v616_v26 }
 0x129   : > { %v1035_v50 = vadd.s32 1, %v2558_v27  ;;  %v2547_v10 = vmin.u32 %v760_v51, %v3389_v25  ;;  %v836_v13 = vsel %vm830_vm1, %v833_v2, %v835_v38  ;;  %vm604_vm6 = vcmp.lt.s32.totalorder %v3401_v7, 2 }
 0x12a   : > { %v614_v19 = vsel %vm604_vm6, %v611_v5, %v613_v54  ;;  %v916_v14 = vfloor.f32 %v914_v61  ;;  %v531_v11 = vshll.u32 %v3429_v48, 30  ;;  %v856_v23 = vsel %vm854_vm5, %v855_v6, %v3398_v9 }
 0x12b   : > { %v618_v22 = vsel %vm604_vm6, %v615_v17, %v617_v24  ;;  %v619_v49 = vshll.u32 %v579_v1, 8  ;;  %v852_v30 = vmul.u32 %v3381_v34, %v836_v13  ;;  %vm1036_vm7 = vcmp.gt.s32.totalorder %v1035_v50, 0 }
 0x12c   : > { %v762_v3 = vclz %v2547_v10  ;;  %v3471_v45 = vsub.s32 %v3370_v59, %v531_v11  ;;  %v1037_v9 = vsel %vm1036_vm7, %v1035_v50, 0  ;;  %v918_v27 = vmul.f32 6.2831855, %v916_v14 }
 0x12d   : > { %v3463_v39 = vmul.u32.u64.low %v619_v49, %v614_v19  ;;  %v3464_v15 = vmul.u32.u64.high %v619_v49, %v614_v19, %v3463_v39  ;;  %v857_v31 = vadd.s32 %v856_v23, %v852_v30  ;;  %v608_v34 = vsel %vm606_vm2, %v596_v42, 2102212464 }
 0x12e   : > { %v3467_v32 = vmul.u32.u64.low %v619_v49, %v618_v22  ;;  %v3468_v33 = vmul.u32.u64.high %v619_v49, %v618_v22, %v3467_v32  ;;  %v2548_v51 = vadd.s32 4294967294, %v762_v3  ;;  %v587_v61 = vshrl.u32 %v5335_v12, %v3367_v44  ;;  %v435_v44 = vld [vmem:[%s412_s2] sm:$0xf] }
 0x12f   : > { %v858_v26 = vadd.s32 536870912, %v857_v31  ;;  %v1039_v2 = vand.u32 31, %v1037_v9  ;;  %v534_v38 = vsub.s32 0, %v3471_v45  ;;  %v3483_v59 = vsub.f32 %v3355_v20, %v918_v27 }
 0x130   : > { %v607_v6 = vsel %vm603_vm3, %v587_v61, %v590_v37  ;;  %v609_v42 = vsel %vm605_vm4, %v593_v40, %v608_v34  ;;  %vm2549_vm8 = vcmp.lt.s32.totalorder %v2548_v51, 0  ;;  %v629_v1 = vadd.s32 1, %v3464_v15 }
 0x131   : > { %v3490_v5 = vshrl.u32 %v858_v26, 30  ;;  %vm628_vm9 = vc.u32 %v3468_v33, %v3463_v39  ;;  %v3494_v54 = vsub.s32 32, %v1039_v2  ;;  %v2539_v20 = vmin.u32 %v534_v38, %v3471_v45 }
 0x132   : > { %v610_v17 = vsel %vm604_vm6, %v607_v6, %v609_v42  ;;  %v925_v37 = vand.u32 2139095040, %v3483_v59  ;;  %v3500_v24 = vsel %vm2549_vm8, 0, %v2548_v51  ;;  %v436_v40 = vmul.f32 0.001, %v435_v44 }
 0x133   : > { %v3503_v50 = vshrl.u32 %v439_v16, 7  ;;  %v630_v10 = vsel %vm628_vm9, %v629_v1, %v3464_v15  ;;  %v750_v13 = vadd.s32 %v3252_v52, %v3246_v47  ;;  %v860_v19 = vshll.u32 %v3490_v5, 30 }
 0x134   : > { %v626_v14 = vmul.u32 %v619_v49, %v610_v17  ;;  %v1052_v7 = vshrl.u32 %v5325_v56, %v3494_v54  ;;  %v770_v11 = vsub.s32 4294967266, %v3500_v24  ;;  %v536_v23 = vclz %v2539_v20 }
 0x135   : > { %v1055_v22 = vshrl.u32 %v5321_v53, %v3494_v54  ;;  %v926_v30 = vshrl.u32 %v925_v37, 23  ;;  %v5316_v3 = vand.u32 2147483647, %v3387_v63  ;;  %v3517_v15 = vshrl.u32 %v1037_v9, 5 }
 0x136   : > { %v3514_v16 = vadd.s32 %v630_v10, %v626_v14  ;;  %v1051_v47 = vshll.u32 %v5323_v0, %v1039_v2  ;;  %v1043_v52 = vshrl.u32 %v5331_v4, %v3494_v54  ;;  %v1046_v49 = vshrl.u32 %v5333_v62, %v3494_v54 }
 0x137   : > { %v1049_v32 = vshrl.u32 %v5323_v0, %v3494_v54  ;;  %v1054_v27 = vshll.u32 %v5325_v56, %v1039_v2  ;;  %v766_v51 = vsub.s32 32, %v3500_v24  ;;  %v3528_v34 = vsub.s32 %v857_v31, %v860_v19 }
 0x138   : > { %v1042_v9 = vshll.u32 %v5335_v12, %v1039_v2  ;;  %v1053_v26 = vor.u32 %v1052_v7, %v1051_v47  ;;  %v1045_v61 = vshll.u32 %v5331_v4, %v1039_v2  ;;  %v1048_v38 = vshll.u32 %v5333_v62, %v1039_v2 }
 0x139   : > { %v1056_v6 = vor.u32 %v1055_v22, %v1054_v27  ;;  %v2554_v42 = vadd.s32 4294967169, %v926_v30  ;;  %v771_v1 = vadd.s32 127, %v770_v11  ;;  %v2540_v44 = vadd.s32 4294967294, %v536_v23  ;;  %v1132_v30 = vpop.permute.xlu1 %1131 }
 0x13a   : > { %v632_v20 = vadd.s32 536870912, %v3514_v16  ;;  %v1032_v17 = vand.u32 8388607, %v5316_v3  ;;  %v3536_v37 = vor.u32 %v1043_v52, %v1042_v9  ;;  %v3538_v31 = vor.u32 %v1046_v49, %v1045_v61 }
 0x13b   : > { %v1050_v10 = vor.u32 %v1049_v32, %v1048_v38  ;;  %vm1060_vm10 = vcmp.lt.s32.totalorder %v3517_v15, 4  ;;  %v1360_v19 = vadd.s32 8, %v3503_v50  ;;  %v863_v2 = vsub.s32 0, %v3528_v34 }
 0x13c   : > { %v1066_v14 = vsel %vm1060_vm10, %v1053_v26, 920167782  ;;  %v437_v7 = vfloor.f32 %v436_v40  ;;  %v768_v11 = vshrl.u32 %v750_v13, %v766_v51  ;;  %v1070_v23 = vsel %vm1060_vm10, %v1056_v6, 1326507024 }
 0x13d   : > { %v932_v22 = vadd.s32 1, %v2554_v42  ;;  %v772_v47 = vshll.u32 %v771_v1, 23  ;;  %vm2541_vm11 = vcmp.lt.s32.totalorder %v2540_v44, 0  ;;  %vm1057_vm12 = vcmp.lt.s32.totalorder %v3517_v15, 1 }
 0x13e   : > { %vm1059_vm13 = vcmp.lt.s32.totalorder %v3517_v15, 3  ;;  %v3549_v52 = vshrl.u32 %v632_v20, 30  ;;  %v1033_v49 = vor.u32 8388608, %v1032_v17  ;;  %v1065_v32 = vsel %vm1057_vm12, %v3536_v37, %v3538_v31 }
 0x13f   : > { %v1067_v13 = vsel %vm1059_vm13, %v1050_v10, %v1066_v14  ;;  %v2551_v27 = vmin.u32 %v863_v2, %v3528_v34  ;;  %v1069_v51 = vsel %vm1057_vm12, %v3538_v31, %v1050_v10  ;;  %v1071_v9 = vsel %vm1059_vm13, %v1053_v26, %v1070_v23 }
 0x140   : > { %v3564_v61 = vmul.f32 %v1132_v30, %v3165_v18  ;;  %v438_v38 = vsub.f32 %v436_v40, %v437_v7  ;;  %v3567_v6 = vcvt.s32.f32 %v3503_v50  ;;  %vm1058_vm14 = vcmp.lt.s32.totalorder %v3517_v15, 2 }
 0x141   : > { %vm933_vm15 = vcmp.gt.s32.totalorder %v932_v22, 0  ;;  %v1369_v42 = vsub.s32 0, %v3503_v50  ;;  %v767_v1 = vshll.u32 %v3389_v25, %v3500_v24  ;;  %v773_v20 = vor.u32 4788187, %v772_v47 }
 0x142   : > { %5376 = vst [vmem:[#allocation13_spill] sm:$0xff] %v3567_v6  ;;  %v1068_v17 = vsel %vm1058_vm14, %v1065_v32, %v1067_v13  ;;  %v3576_v26 = vsel %vm2541_vm11, 0, %v2540_v44  ;;  %v634_v40 = vshll.u32 %v3549_v52, 30  ;;  %v1072_v2 = vsel %vm1058_vm14, %v1069_v51, %v1071_v9 }
 0x143   : > { %v3581_v14 = vshll.u32 %v1033_v49, 8  ;;  %v769_v7 = vor.u32 %v768_v11, %v767_v1  ;;  %v865_v23 = vclz %v2551_v27  ;;  %v934_v30 = vsel %vm933_vm15, %v932_v22, 0 }
 0x144   : > { %v1140_v25 = vmul.f32 0.15915494, %v3564_v61  ;;  %v1366_v24 = vmul.f32 6.2831855, %v438_v38  ;;  %v1591_v47 = vsub.s32 1, %v3503_v50  ;;  %v544_v3 = vsub.s32 4294967266, %v3576_v26 }
 0x145   : > { %v3586_v32 = vmul.u32.u64.low %v3581_v14, %v1068_v17  ;;  %v3587_v44 = vmul.u32.u64.high %v3581_v14, %v1068_v17, %v3586_v32  ;;  %v774_v13 = vand.u32 2147483647, %v773_v20  ;;  %v1815_v11 = vsub.s32 2, %v3503_v50  ;;  %v2778_v38 = vld [vmem:[%s3149_s24] sm:$0xff]   ;;  %s2531_s24 = sshll.u32 %s3145_s28, 4 }
 0x146   : > { %v3592_v51 = vmul.u32.u64.low %v3581_v14, %v1072_v2  ;;  %v3593_v49 = vmul.u32.u64.high %v3581_v14, %v1072_v2, %v3592_v51  ;;  %v2039_v22 = vsub.s32 3, %v3503_v50  ;;  %v3598_v27 = vsub.s32 %v3514_v16, %v634_v40  ;;  %s336_s26 = scalar_lea.vmem [#allocation6], %s2531_s24  ;;  %s387_s12 = scalar_lea.vmem [#allocation7], %s2531_s24 }
 0x147   : > { %v936_v9 = vand.u32 31, %v934_v30  ;;  %v3601_v1 = vcvt.s32.f32 %v1360_v19  ;;  %v776_v17 = vcvt.s32.f32 %v769_v7  ;;  %v2552_v60 = vadd.s32 4294967294, %v865_v23  ;;  %s2354_s23 = sshll.u32 %s387_s12, 4  ;;  %s5249_s23 = int_to_ptr.vmem [resolvable:$true] %s2354_s23 }
 0x148   : > { %v1142_v20 = vadd.f32 0.5, %v1140_v25  ;;  %v3603_v57 = vrot.slane %v1366_v24, %v1369_v42  ;;  %v3605_v35 = vrot.slane %v1366_v24, %v1591_v47  ;;  %v540_v2 = vsub.s32 32, %v3576_v26  ;;  %s2871_s5 = scalar_lea.vmem %s5249_s23, 256  ;;  %p2878_p13 = scmp.lt.s32.totalorder %s5249_s23, %s2876_s25 }
 0x149   : > { %5377 = vst [vmem:[#allocation14_spill] sm:$0xff] %v3601_v1  ;;  %v3608_v51 = vmul.f32 %v776_v17, %v774_v13  ;;  %v545_v58 = vadd.s32 127, %v544_v3  ;;  %v1062_v50 = vsel %vm1060_vm10, %v1050_v10, 2102212464  ;;  %v2985_v40 = vmov 0.0   ;;  %p2872_p8 = scmp.ne.s32.totalorder %s5249_s23, %s2871_s5  ;;  %p2879_p0 = scmp.lt.s32.totalorder %s2877_s10, %s2871_s5 }
 0x14a   : > { %v1144_v16 = vfloor.f32 %v1142_v20  ;;  %2611 = vmatprep.subr.bf16.mxu0 %v2985_v40  ;;  %v637_v19 = vsub.s32 0, %v3598_v27  ;;  %v1041_v7 = vshrl.u32 %v5335_v12, %v3494_v54  ;;  %v3615_v42 = vsub.s32 32, %v936_v9 }
 0x14b   : > { %2612 = vmatpush3.bf16.msra.mxu0 %v2778_v38  ;;  %v3617_v23 = vrot.slane %v1366_v24, %v1815_v11  ;;  %v3619_v25 = vrot.slane %v1366_v24, %v2039_v22  ;;  %v524_v3 = vadd.s32 %v3304_v43, %v3309_v46  ;;  %vm2553_vm0 = vcmp.lt.s32.totalorder %v2552_v60, 0  ;;  %p2873_p10 = pnand %p2872_p8, %p5481_p7  ;;  %p2880_p1 = por %p2879_p0, %p2878_p13 }
 0x14c   : > { %vm2986_vm1 = vmmov 0   ;;  %v1061_v10 = vsel %vm1057_vm12, %v1041_v7, %v3536_v37  ;;  %v1063_v54 = vsel %vm1059_vm13, %v3538_v31, %v1062_v50  ;;  %v1083_v47 = vadd.s32 1, %v3587_v44 }
 0x14d   : > { %5378 = vst [vmem:[#allocation15_spill] sm:$0xff] %v3617_v23  ;;  %5379 = vst [vmem:[#allocation16_spill] sm:$0xff] %v3619_v25  ;;  %2613 = vmatprep.mubr.msk.bf16.mxu0 %vm2986_vm1, %v2985_v40  ;;  %v1146_v13 = vmul.f32 6.2831855, %v1144_v16  ;;  %v3632_v24 = vmul.f32 %v3603_v57, %v3567_v6  ;;  %v541_v43 = vshll.u32 %v3471_v45, %v3576_v26  ;;  %vm696_vm3 = vcmp.lt.s32.totalorder %v3169_v29, 0  ;;  %p2874_p11 = pneg %p2873_p10 }
 0x14e   : > { %v542_v46 = vshrl.u32 %v524_v3, %v540_v2  ;;  %vm1082_vm2 = vc.u32 %v3593_v49, %v3586_v32  ;;  %v778_v37 = vxor.u32 2147483648, %v3608_v51  ;;  %v546_v11 = vshll.u32 %v545_v58, 23 }
 0x14f   : > { %v2543_v31 = vmin.u32 %v637_v19, %v3598_v27  ;;  %v949_v22 = vshrl.u32 %v5325_v56, %v3615_v42  ;;  %v3644_v38 = vsel %vm2553_vm0, 0, %v2552_v60  ;;  %v1064_v45 = vsel %vm1058_vm14, %v1061_v10, %v1063_v54  ;;  %p2881_p4 = pnand %p2880_p1, %p2874_p11 }
 0x150   : > { %v5327_v26 = vand.u32 2147483647, %v3483_v59  ;;  %v952_v17 = vshrl.u32 %v5321_v53, %v3615_v42  ;;  %v1084_v20 = vsel %vm1082_vm2, %v1083_v47, %v3587_v44  ;;  %v3652_v2 = vshrl.u32 %v934_v30, 5  ;;  %v1136_v47 = vpop.permute.xlu0 %1135 }
 0x151   : > { %v948_v58 = vshll.u32 %v5323_v0, %v936_v9  ;;  %v3656_v50 = vsub.f32 %v3564_v61, %v1146_v13  ;;  %v940_v60 = vshrl.u32 %v5331_v4, %v3615_v42  ;;  %v943_v15 = vshrl.u32 %v5333_v62, %v3615_v42 }
 0x152   : > { %v946_v16 = vshrl.u32 %v5323_v0, %v3615_v42  ;;  %v951_v40 = vshll.u32 %v5325_v56, %v936_v9  ;;  %v873_v44 = vsub.s32 4294967266, %v3644_v38  ;;  %v639_v30 = vclz %v2543_v31 }
 0x153   : > { %5380 = vst [vmem:[#allocation17_spill] sm:$0xff] %v3656_v50  ;;  %v1080_v19 = vmul.u32 %v3581_v14, %v1064_v45  ;;  %v950_v7 = vor.u32 %v949_v22, %v948_v58  ;;  %v939_v61 = vshll.u32 %v5335_v12, %v936_v9  ;;  %v942_v3 = vshll.u32 %v5331_v4, %v936_v9 }
 0x154   : > { %v945_v10 = vshll.u32 %v5333_v62, %v936_v9  ;;  %v953_v54 = vor.u32 %v952_v17, %v951_v40  ;;  %v547_v13 = vor.u32 4788187, %v546_v11  ;;  %v929_v0 = vand.u32 8388607, %v5327_v26 }
 0x155   : > { %v3670_v53 = vadd.s32 %v1084_v20, %v1080_v19  ;;  %v1153_v56 = vand.u32 2139095040, %v3656_v50  ;;  %v3675_v31 = vor.u32 %v940_v60, %v939_v61  ;;  %v3677_v14 = vor.u32 %v943_v15, %v942_v3 }
 0x156   : > { %v947_v22 = vor.u32 %v946_v16, %v945_v10  ;;  %vm957_vm4 = vcmp.lt.s32.totalorder %v3652_v2, 4  ;;  %v5381_v45 = vand.u32 2147483647, %v3169_v29  ;;  %v543_v11 = vor.u32 %v542_v46, %v541_v43 }
 0x157   : > { %v963_v17 = vsel %vm957_vm4, %v950_v7, 920167782  ;;  %v3689_v20 = vmul.f32 %v1136_v47, %v3165_v18  ;;  %v779_v58 = vsel %vm696_vm3, %v778_v37, %v3608_v51  ;;  %v874_v60 = vadd.s32 127, %v873_v44 }
 0x158   : > { %vm3682_vm5 = vcmp.le.f32.partialorder %v5381_v45, 0.7853982  ;;  %v2544_v15 = vadd.s32 4294967294, %v639_v30  ;;  %v967_v16 = vsel %vm957_vm4, %v953_v54, 1326507024  ;;  %v1086_v40 = vadd.s32 536870912, %v3670_v53 }
 0x159   : > { %vm954_vm6 = vcmp.lt.s32.totalorder %v3652_v2, 1  ;;  %vm956_vm7 = vcmp.lt.s32.totalorder %v3652_v2, 3  ;;  %v1154_v43 = vshrl.u32 %v1153_v56, 23  ;;  %v548_v46 = vand.u32 2147483647, %v547_v13 }
 0x15a   : > { %v930_v19 = vor.u32 8388608, %v929_v0  ;;  %v962_v18 = vsel %vm954_vm6, %v3675_v31, %v3677_v14  ;;  %v964_v51 = vsel %vm956_vm7, %v947_v22, %v963_v17  ;;  %v869_v37 = vsub.s32 32, %v3644_v38 }
 0x15b   : > { %v966_v44 = vsel %vm954_vm6, %v3677_v14, %v947_v22  ;;  %v968_v30 = vsel %vm956_vm7, %v950_v7, %v967_v16  ;;  %v1141_v56 = vmul.f32 0.15915494, %v3689_v20  ;;  %v550_v0 = vcvt.s32.f32 %v543_v11 }
 0x15c   : > { %v853_v61 = vadd.s32 %v3397_v8, %v3413_v21  ;;  %v875_v3 = vshll.u32 %v874_v60, 23  ;;  %vm955_vm8 = vcmp.lt.s32.totalorder %v3652_v2, 2  ;;  %vm2545_vm9 = vcmp.lt.s32.totalorder %v2544_v15, 0 }
 0x15d   : > { %v3715_v10 = vshrl.u32 %v1086_v40, 30  ;;  %v965_v54 = vsel %vm955_vm8, %v962_v18, %v964_v51  ;;  %v2562_v47 = vadd.s32 4294967169, %v1154_v43  ;;  %v3721_v13 = vmul.f32 %v3603_v57, %v3601_v1 }
 0x15e   : > { %v782_v7 = vsel %vm3682_vm5, %v3169_v29, %v779_v58  ;;  %v969_v8 = vsel %vm955_vm8, %v966_v44, %v968_v30  ;;  %v3728_v21 = vshll.u32 %v930_v19, 8  ;;  %v551_v45 = vmul.f32 %v550_v0, %v548_v46 }
 0x15f   : > { %v870_v11 = vshll.u32 %v3528_v34, %v3644_v38  ;;  %v871_v17 = vshrl.u32 %v853_v61, %v869_v37  ;;  %v1143_v60 = vadd.f32 0.5, %v1141_v56  ;;  %v876_v16 = vor.u32 4788187, %v875_v3 }
 0x160   : > { %v3732_v40 = vsel %vm2545_vm9, 0, %v2544_v15  ;;  %v3735_v57 = vmul.u32.u64.low %v3728_v21, %v965_v54  ;;  %v3736_v43 = vmul.u32.u64.high %v3728_v21, %v965_v54, %v3735_v57  ;;  %v1088_v58 = vshll.u32 %v3715_v10, 30 }
 0x161   : > { %v3741_v18 = vmul.u32.u64.low %v3728_v21, %v969_v8  ;;  %v3742_v19 = vmul.u32.u64.high %v3728_v21, %v969_v8, %v3741_v18  ;;  %v1160_v46 = vadd.s32 1, %v2562_v47  ;;  %v3745_v51 = vmul.f32 0.15915494, %v3632_v24 }
 0x162   : > { %v3749_v34 = vmul.f32 %v3605_v35, %v3567_v6  ;;  %v3753_v38 = vmul.f32 %v3605_v35, %v3601_v1  ;;  %v780_v15 = vsub.s32 4, %v3349_v28  ;;  %v5384_v37 = vand.u32 2147483647, %v3172_v36 }
 0x163   : > { %vm470_vm11 = vcmp.lt.s32.totalorder %v3172_v36, 0  ;;  %v872_v30 = vor.u32 %v871_v17, %v870_v11  ;;  %v1145_v56 = vfloor.f32 %v1143_v60  ;;  %2779 = vcosq.f32 %v782_v7 }
 0x164   : > { %vm3758_vm10 = vcmp.le.f32.partialorder %v5384_v37, 0.7853982  ;;  %v552_v0 = vxor.u32 2147483648, %v551_v45  ;;  %v647_v61 = vsub.s32 4294967266, %v3732_v40  ;;  %v959_v35 = vsel %vm957_vm4, %v947_v22, 2102212464 }
 0x165   : > { %v877_v3 = vand.u32 2147483647, %v876_v16  ;;  %v3767_v54 = vsub.s32 %v3670_v53, %v1088_v58  ;;  %v938_v47 = vshrl.u32 %v5335_v12, %v3615_v42  ;;  %vm1161_vm12 = vcmp.gt.s32.totalorder %v1160_v46, 0 }
 0x166   : > { %v781_v8 = vsel %vm696_vm3, %v780_v15, %v3349_v28  ;;  %2781 = vsinq.f32 %v782_v7  ;;  %v554_v11 = vsub.s32 4, %v3429_v48  ;;  %v883_v17 = vsub.s32 4, %v3490_v5 }
 0x167   : > { %v879_v60 = vcvt.s32.f32 %v872_v30  ;;  %v958_v22 = vsel %vm954_vm6, %v938_v47, %v3675_v31  ;;  %v960_v53 = vsel %vm956_vm7, %v3677_v14, %v959_v35  ;;  %v1147_v42 = vmul.f32 6.2831855, %v1145_v56 }
 0x168   : > { %v643_v16 = vsub.s32 32, %v3732_v40  ;;  %v648_v58 = vadd.s32 127, %v647_v61  ;;  %v980_v28 = vadd.s32 1, %v3736_v43  ;;  %v1162_v7 = vsel %vm1161_vm12, %v1160_v46, 0 }
 0x169   : > { %v553_v18 = vsel %vm470_vm11, %v552_v0, %v551_v45  ;;  %v880_v15 = vmul.f32 %v879_v60, %v877_v3  ;;  %v1091_v37 = vsub.s32 0, %v3767_v54  ;;  %vm979_vm13 = vc.u32 %v3742_v19, %v3735_v57 }
 0x16a   : > { %v783_v31 = vsel %vm3682_vm5, 0, %v781_v8  ;;  %vm799_vm14 = vcmp.lt.s32.totalorder %v3181_v55, 0  ;;  %v627_v14 = vadd.s32 %v3463_v39, %v3468_v33  ;;  %v961_v46 = vsel %vm955_vm8, %v958_v22, %v960_v53 }
 0x16b   : > { %v555_v45 = vsel %vm470_vm11, %v554_v11, %v3429_v48  ;;  %v884_v30 = vsel %vm799_vm14, %v883_v17, %v3490_v5  ;;  %v1164_v56 = vand.u32 31, %v1162_v7  ;;  %v3803_v9 = vsub.f32 %v3689_v20, %v1147_v42 }
 0x16c   : > { %v556_v0 = vsel %vm3758_vm10, %v3172_v36, %v553_v18  ;;  %v645_v39 = vshrl.u32 %v627_v14, %v643_v16  ;;  %v649_v33 = vshll.u32 %v648_v58, 23  ;;  %v981_v2 = vsel %vm979_vm13, %v980_v28, %v3736_v43 }
 0x16d   : > { %5387 = vst [vmem:[#allocation18_spill] sm:$0xff] %v3803_v9  ;;  %v5388_v61 = vand.u32 2147483647, %v3181_v55  ;;  %v881_v35 = vxor.u32 2147483648, %v880_v15  ;;  %v2559_v5 = vmin.u32 %v1091_v37, %v3767_v54  ;;  %v977_v20 = vmul.u32 %v3728_v21, %v961_v46  ;;  %v3817_v3 = vpop.eup %2779 }
 0x16e   : > { %v3819_v47 = vand.u32 3, %v783_v31  ;;  %v557_v8 = vsel %vm3758_vm10, 0, %v555_v45  ;;  %v644_v11 = vshll.u32 %v3598_v27, %v3732_v40  ;;  %2783 = vcosq.f32 %v556_v0 }
 0x16f   : > { %vm3811_vm15 = vcmp.le.f32.partialorder %v5388_v61, 0.7853982  ;;  %v3827_v17 = vadd.s32 %v981_v2, %v977_v20  ;;  %v3829_v60 = vsub.s32 32, %v1164_v56  ;;  %v1256_v21 = vand.u32 2139095040, %v3803_v9 }
 0x170   : > { %v886_v43 = vsel %vm3811_vm15, 0, %v884_v30  ;;  %v3832_v22 = vpop.eup %2781  ;;  %v3835_v53 = vmul.f32 0.15915494, %v3721_v13  ;;  %2785 = vsinq.f32 %v556_v0  ;;  %v646_v44 = vor.u32 %v645_v39, %v644_v11 }
 0x171   : > { %v650_v42 = vor.u32 4788187, %v649_v33  ;;  %v3838_v16 = vmul.f32 0.15915494, %v3749_v34  ;;  %v3841_v27 = vmul.f32 0.15915494, %v3753_v38  ;;  %v882_v40 = vsel %vm799_vm14, %v881_v35, %v880_v15 }
 0x172   : > { %v1093_v58 = vclz %v2559_v5  ;;  %vm792_vm0 = vcmp.eq.s32.totalorder %v3819_v47, 2  ;;  %v793_v28 = vxor.u32 2147483648, %v3817_v3  ;;  %v3847_v18 = vand.u32 3, %v557_v8 }
 0x173   : > { %v3849_v37 = vand.u32 3, %v886_v43  ;;  %v983_v14 = vadd.s32 536870912, %v3827_v17  ;;  %v5391_v46 = vmov 920167782   ;;  %v1257_v30 = vshrl.u32 %v1256_v21, 23 }
 0x174   : > { %v1177_v45 = vshrl.u32 %v5391_v46, %v3829_v60  ;;  %v885_v15 = vsel %vm3811_vm15, %v3181_v55, %v882_v40  ;;  %v651_v0 = vand.u32 2147483647, %v650_v42  ;;  %v653_v39 = vcvt.s32.f32 %v646_v44 }
 0x175   : > { %v5392_v33 = vmov 1326507024   ;;  %v2560_v61 = vadd.s32 4294967294, %v1093_v58  ;;  %v3861_v5 = vshrl.u32 %v1162_v7, 5  ;;  %v5393_v20 = vmov 2102212464  }
 0x176   : > { %v1180_v2 = vshrl.u32 %v5392_v33, %v3829_v60  ;;  %v1176_v8 = vshll.u32 %v5393_v20, %v1164_v56  ;;  %v1168_v43 = vshrl.u32 %v5331_v4, %v3829_v60  ;;  %v1171_v11 = vshrl.u32 %v5333_v62, %v3829_v60 }
 0x177   : > { %v1174_v48 = vshrl.u32 %v5393_v20, %v3829_v60  ;;  %v1179_v21 = vshll.u32 %v5391_v46, %v1164_v56  ;;  %vm789_vm1 = vcmp.eq.s32.totalorder %v3819_v47, 0  ;;  %v3872_v44 = vshrl.u32 %v983_v14, 30 }
 0x178   : > { %v1178_v42 = vor.u32 %v1177_v45, %v1176_v8  ;;  %v2566_v7 = vadd.s32 4294967169, %v1257_v30  ;;  %v1375_v40 = vadd.f32 0.5, %v3745_v51  ;;  %vm563_vm2 = vcmp.eq.s32.totalorder %v3847_v18, 0  ;;  %v2784_v25 = vpop.eup %2783 }
 0x179   : > { %vm566_vm3 = vcmp.eq.s32.totalorder %v3847_v18, 2  ;;  %v1167_v58 = vshll.u32 %v5335_v12, %v1164_v56  ;;  %v1170_v26 = vshll.u32 %v5331_v4, %v1164_v56  ;;  %v1173_v31 = vshll.u32 %v5333_v62, %v1164_v56 }
 0x17a   : > { %v1181_v35 = vor.u32 %v1180_v2, %v1179_v21  ;;  %2787 = vcosq.f32 %v885_v15  ;;  %v654_v1 = vmul.f32 %v653_v39, %v651_v0  ;;  %vm2561_vm4 = vcmp.lt.s32.totalorder %v2560_v61, 0  ;;  %v2786_v30 = vpop.eup %2785 }
 0x17b   : > { %v5394_v14 = vand.u32 2147483647, %v3656_v50  ;;  %vm788_vm5 = vcmp.lt.s32.totalorder %v3819_v47, 2  ;;  %vm573_vm6 = vcmp.lt.s32.totalorder %v3237_v41, 0  ;;  %v3884_v51 = vor.u32 %v1168_v43, %v1167_v58 }
 0x17c   : > { %v3886_v8 = vor.u32 %v1171_v11, %v1170_v26  ;;  %v3888_v4 = vor.u32 %v1174_v48, %v1173_v31  ;;  %vm1185_vm7 = vcmp.lt.s32.totalorder %v3861_v5, 4  ;;  %v794_v56 = vsel %vm792_vm0, %v793_v28, %v3832_v22 }
 0x17d   : > { %v1157_v45 = vand.u32 8388607, %v5394_v14  ;;  %2789 = vsinq.f32 %v885_v15  ;;  %v1191_v0 = vsel %vm1185_vm7, %v1178_v42, 920167782  ;;  %v1377_v39 = vfloor.f32 %v1375_v40 }
 0x17e   : > { %v3896_v2 = vsel %vm2561_vm4, 0, %v2560_v61  ;;  %v985_v43 = vshll.u32 %v3872_v44, 30  ;;  %v1195_v26 = vsel %vm1185_vm7, %v1181_v35, 1326507024  ;;  %v1263_v31 = vadd.s32 1, %v2566_v7 }
 0x17f   : > { %v564_v11 = vxor.u32 2147483648, %v2786_v30  ;;  %v567_v48 = vxor.u32 2147483648, %v2784_v25  ;;  %v5395_v21 = vand.u32 2147483647, %v3237_v41  ;;  %vm1182_vm9 = vcmp.lt.s32.totalorder %v3861_v5, 1 }
 0x180   : > { %vm1184_vm10 = vcmp.lt.s32.totalorder %v3861_v5, 3  ;;  %vm786_vm11 = vweird.f32 %v3169_v29  ;;  %vm560_vm12 = vweird.f32 %v3172_v36  ;;  %v655_v28 = vxor.u32 2147483648, %v654_v1 }
 0x181   : > { %vm3903_vm8 = vcmp.le.f32.partialorder %v5395_v21, 0.7853982  ;;  %v1158_v15 = vor.u32 8388608, %v1157_v45  ;;  %v1190_v61 = vsel %vm1182_vm9, %v3884_v51, %v3886_v8  ;;  %v1192_v35 = vsel %vm1184_vm10, %v3888_v4, %v1191_v0 }
 0x182   : > { %v1101_v7 = vsub.s32 4294967266, %v3896_v2  ;;  %v1194_v40 = vsel %vm1182_vm9, %v3886_v8, %v3888_v4  ;;  %v1196_v14 = vsel %vm1184_vm10, %v1178_v42, %v1195_v26  ;;  %v1379_v45 = vmul.f32 6.2831855, %v1377_v39 }
 0x183   : > { %v5398_v21 = vxor.u32 2147483648, %v3832_v22  ;;  %v3931_v12 = vsub.s32 %v3827_v17, %v985_v43  ;;  %vm1183_vm13 = vcmp.lt.s32.totalorder %v3861_v5, 2  ;;  %vm1264_vm14 = vcmp.gt.s32.totalorder %v1263_v31, 0 }
 0x184   : > { %v565_v0 = vsel %vm563_vm2, %v2784_v25, %v564_v11  ;;  %v568_v23 = vsel %vm566_vm3, %v567_v48, %v2786_v30  ;;  %v657_v42 = vsub.s32 4, %v3549_v52  ;;  %v1193_v22 = vsel %vm1183_vm13, %v1190_v61, %v1192_v35  ;;  %v2788_v43 = vpop.eup %2787 }
 0x185   : > { %v791_v62 = vsel %vm789_vm1, %v3817_v3, %v5398_v21  ;;  %vm562_vm15 = vcmp.lt.s32.totalorder %v3847_v18, 2  ;;  %v1197_v3 = vsel %vm1183_vm13, %v1194_v40, %v1196_v14  ;;  %v3944_v17 = vshll.u32 %v1158_v15, 8 }
 0x186   : > { %v3947_v39 = vsub.f32 %v3632_v24, %v1379_v45  ;;  %v795_v25 = vsel %vm788_vm5, %v791_v62, %v794_v56  ;;  %v656_v30 = vsel %vm573_vm6, %v655_v28, %v654_v1  ;;  %v1102_v26 = vadd.s32 127, %v1101_v7 }
 0x187   : > { %v1265_v11 = vsel %vm1264_vm14, %v1263_v31, 0  ;;  %v569_v48 = vsel %vm562_vm15, %v565_v0, %v568_v23  ;;  %v988_v18 = vsub.s32 0, %v3931_v12  ;;  %v2790_v15 = vpop.eup %2789  ;;  %vm892_vm0 = vcmp.eq.s32.totalorder %v3849_v37, 0 }
 0x188   : > { %5399 = vst [vmem:[#allocation19_spill] sm:$0xff] %v3947_v39  ;;  %v3955_v61 = vmul.u32.u64.low %v3944_v17, %v1193_v22  ;;  %v3956_v35 = vmul.u32.u64.high %v3944_v17, %v1193_v22, %v3955_v61  ;;  %v658_v62 = vsel %vm573_vm6, %v657_v42, %v3549_v52  ;;  %v659_v23 = vsel %vm3903_vm8, %v3237_v41, %v656_v30 }
 0x189   : > { %v3964_v24 = vmul.u32.u64.low %v3944_v17, %v1197_v3  ;;  %v3965_v1 = vmul.u32.u64.high %v3944_v17, %v1197_v3, %v3964_v24  ;;  %v1097_v47 = vsub.s32 32, %v3896_v2  ;;  %v1267_v56 = vand.u32 31, %v1265_v11 }
 0x18a   : > { %5400 = vst [vmem:[#allocation20_spill] sm:$0xff] %v3955_v61  ;;  %v1386_v31 = vand.u32 2139095040, %v3947_v39  ;;  %v3974_v28 = vsel %vm786_vm11, nan, %v795_v25  ;;  %v3978_v52 = vsel %vm560_vm12, nan, %v569_v48  ;;  %vm895_vm1 = vcmp.eq.s32.totalorder %v3849_v37, 2 }
 0x18b   : > { %v1103_v7 = vshll.u32 %v1102_v26, 23  ;;  %v660_v40 = vsel %vm3903_vm8, 0, %v658_v62  ;;  %v1081_v14 = vadd.s32 %v3586_v32, %v3593_v49  ;;  %v2555_v45 = vmin.u32 %v988_v18, %v3931_v12 }
 0x18c   : > { %v1387_v21 = vshrl.u32 %v1386_v31, 23  ;;  %v893_v0 = vxor.u32 2147483648, %v2790_v15  ;;  %v896_v29 = vxor.u32 2147483648, %v2788_v43  ;;  %2791 = vcosq.f32 %v659_v23 }
 0x18d   : > { %v1187_v36 = vsel %vm1185_vm7, %v3888_v4, 2102212464  ;;  %v1099_v42 = vshrl.u32 %v1081_v14, %v1097_v47  ;;  %v5401_v22 = vmov 683565275   ;;  %v3991_v25 = vsub.s32 32, %v1267_v56 }
 0x18e   : > { %v1166_v3 = vshrl.u32 %v5401_v22, %v3829_v60  ;;  %v1376_v58 = vadd.f32 0.5, %v3835_v53  ;;  %v3994_v30 = vand.u32 3, %v660_v40  ;;  %v1098_v32 = vshll.u32 %v3767_v54, %v3896_v2 }
 0x18f   : > { %v1104_v49 = vor.u32 4788187, %v1103_v7  ;;  %v2570_v26 = vadd.s32 4294967169, %v1387_v21  ;;  %v990_v48 = vclz %v2555_v45  ;;  %v1188_v60 = vsel %vm1184_vm10, %v3886_v8, %v1187_v36 }
 0x190   : > { %v1186_v4 = vsel %vm1182_vm9, %v1166_v3, %v3884_v51  ;;  %v1208_v18 = vadd.s32 1, %v3956_v35  ;;  %vm891_vm2 = vcmp.lt.s32.totalorder %v3849_v37, 2  ;;  %v894_v53 = vsel %vm892_vm0, %v2788_v43, %v893_v0 }
 0x191   : > { %v897_v54 = vsel %vm895_vm1, %v896_v29, %v2790_v15  ;;  %2793 = vsinq.f32 %v659_v23  ;;  %vm1207_vm3 = vc.u32 %v3965_v1, %v3955_v61  ;;  %v1100_v2 = vor.u32 %v1099_v42, %v1098_v32 }
 0x192   : > { %v5338_v51 = vand.u32 2147483647, %v3803_v9  ;;  %v1280_v8 = vshrl.u32 %v5391_v46, %v3991_v25  ;;  %v1378_v62 = vfloor.f32 %v1376_v58  ;;  %v1105_v24 = vand.u32 2147483647, %v1104_v49 }
 0x193   : > { %v1189_v47 = vsel %vm1183_vm13, %v1186_v4, %v1188_v60  ;;  %v1283_v43 = vshrl.u32 %v5392_v33, %v3991_v25  ;;  %v1393_v31 = vadd.s32 1, %v2570_v26  ;;  %v2556_v15 = vadd.s32 4294967294, %v990_v48 }
 0x194   : > { %v1209_v23 = vsel %vm1207_vm3, %v1208_v18, %v3956_v35  ;;  %v4020_v7 = vshrl.u32 %v1265_v11, 5  ;;  %v1279_v40 = vshll.u32 %v5393_v20, %v1267_v56  ;;  %v5402_v14 = vmov 2475754826  }
 0x195   : > { %v1271_v45 = vshrl.u32 %v5402_v14, %v3991_v25  ;;  %v5403_v21 = vmov 2131351028   ;;  %v1277_v5 = vshrl.u32 %v5393_v20, %v3991_v25  ;;  %v1282_v29 = vshll.u32 %v5391_v46, %v1267_v56 }
 0x196   : > { %v1274_v0 = vshrl.u32 %v5403_v21, %v3991_v25  ;;  %v1205_v36 = vmul.u32 %v3944_v17, %v1189_v47  ;;  %v1270_v42 = vshll.u32 %v5401_v22, %v1267_v56  ;;  %v1281_v35 = vor.u32 %v1280_v8, %v1279_v40  ;;  %v2792_v3 = vpop.eup %2791 }
 0x197   : > { %v1380_v11 = vmul.f32 6.2831855, %v1378_v62  ;;  %vm889_vm4 = vweird.f32 %v3181_v55  ;;  %vm1027_vm5 = vcmp.lt.s32.totalorder %v3387_v63, 0  ;;  %v1273_v58 = vshll.u32 %v5402_v14, %v1267_v56 }
 0x198   : > { %v1276_v32 = vshll.u32 %v5403_v21, %v1267_v56  ;;  %v1284_v49 = vor.u32 %v1283_v43, %v1282_v29  ;;  %vm1394_vm6 = vcmp.gt.s32.totalorder %v1393_v31, 0  ;;  %v1107_v26 = vcvt.s32.f32 %v1100_v2 }
 0x199   : > { %vm2557_vm7 = vcmp.lt.s32.totalorder %v2556_v15, 0  ;;  %v4036_v48 = vadd.s32 %v1209_v23, %v1205_v36  ;;  %v1260_v17 = vand.u32 8388607, %v5338_v51  ;;  %v4040_v4 = vor.u32 %v1271_v45, %v1270_v42 }
 0x19a   : > { %v4042_v60 = vor.u32 %v1274_v0, %v1273_v58  ;;  %v1278_v18 = vor.u32 %v1277_v5, %v1276_v32  ;;  %vm1288_vm8 = vcmp.lt.s32.totalorder %v4020_v7, 4  ;;  %v898_v8 = vsel %vm891_vm2, %v894_v53, %v897_v54 }
 0x19b   : > { %v1294_v56 = vsel %vm1288_vm8, %v1281_v35, 920167782  ;;  %v4050_v2 = vsub.f32 %v3721_v13, %v1380_v11  ;;  %v1395_v62 = vsel %vm1394_vm6, %v1393_v31, 0  ;;  %v2794_v47 = vpop.eup %2793  ;;  %v670_v43 = vxor.u32 2147483648, %v2792_v3 }
 0x19c   : > { %v1108_v23 = vmul.f32 %v1107_v26, %v1105_v24  ;;  %v1111_v40 = vsub.s32 4, %v3715_v10  ;;  %v1298_v45 = vsel %vm1288_vm8, %v1284_v49, 1326507024  ;;  %v4056_v0 = vsel %vm2557_vm7, 0, %v2556_v15 }
 0x19d   : > { %5404 = vst [vmem:[#allocation21_spill] sm:$0xff] %v4050_v2  ;;  %v1261_v37 = vor.u32 8388608, %v1260_v17  ;;  %vm1285_vm9 = vcmp.lt.s32.totalorder %v4020_v7, 1  ;;  %vm1287_vm10 = vcmp.lt.s32.totalorder %v4020_v7, 3  ;;  %v1211_v13 = vadd.s32 536870912, %v4036_v48 }
 0x19e   : > { %v1293_v53 = vsel %vm1285_vm9, %v4040_v4, %v4042_v60  ;;  %v1295_v54 = vsel %vm1287_vm10, %v1278_v18, %v1294_v56  ;;  %v1397_v24 = vand.u32 31, %v1395_v62  ;;  %v667_v31 = vxor.u32 2147483648, %v2794_v47 }
 0x19f   : > { %v1297_v15 = vsel %vm1285_vm9, %v4042_v60, %v1278_v18  ;;  %v1299_v5 = vsel %vm1287_vm10, %v1281_v35, %v1298_v45  ;;  %v1489_v29 = vand.u32 2139095040, %v4050_v2  ;;  %vm666_vm11 = vcmp.eq.s32.totalorder %v3994_v30, 0 }
 0x1a0   : > { %vm669_vm12 = vcmp.eq.s32.totalorder %v3994_v30, 2  ;;  %v1109_v36 = vxor.u32 2147483648, %v1108_v23  ;;  %vm1286_vm13 = vcmp.lt.s32.totalorder %v4020_v7, 2  ;;  %v4078_v42 = vsel %vm889_vm4, nan, %v898_v8 }
 0x1a1   : > { %5405 = vst [vmem:[#allocation22_spill] sm:$0xff] %v4078_v42  ;;  %v4083_v11 = vsel %vm1027_vm5, %v1111_v40, %v3715_v10  ;;  %v998_v35 = vsub.s32 4294967266, %v4056_v0  ;;  %v1296_v58 = vsel %vm1286_vm13, %v1293_v53, %v1295_v54  ;;  %v4088_v32 = vshrl.u32 %v1211_v13, 30 }
 0x1a2   : > { %v1300_v49 = vsel %vm1286_vm13, %v1297_v15, %v1299_v5  ;;  %v4092_v26 = vshll.u32 %v1261_v37, 8  ;;  %v4094_v55 = vsub.s32 32, %v1397_v24  ;;  %v4096_v17 = vsel %vm666_vm11, %v2792_v3, %v667_v31 }
 0x1a3   : > { %v4098_v8 = vsel %vm669_vm12, %v670_v43, %v2794_v47  ;;  %v978_v10 = vadd.s32 %v3735_v57, %v3742_v19  ;;  %v1490_v56 = vshrl.u32 %v1489_v29, 23  ;;  %v1110_v40 = vsel %vm1027_vm5, %v1109_v36, %v1108_v23 }
 0x1a4   : > { %v994_v45 = vsub.s32 32, %v4056_v0  ;;  %v4106_v13 = vmul.u32.u64.low %v4092_v26, %v1296_v58  ;;  %v4107_v53 = vmul.u32.u64.high %v4092_v26, %v1296_v58, %v4106_v13  ;;  %v995_v3 = vshll.u32 %v3931_v12, %v4056_v0 }
 0x1a5   : > { %v999_v37 = vadd.s32 127, %v998_v35  ;;  %v4113_v47 = vmul.u32.u64.low %v4092_v26, %v1300_v49  ;;  %v4114_v43 = vmul.u32.u64.high %v4092_v26, %v1300_v49, %v4113_v47  ;;  %v1213_v57 = vshll.u32 %v4088_v32, 30 }
 0x1a6   : > { %v1269_v19 = vshrl.u32 %v5401_v22, %v3991_v25  ;;  %v1409_v23 = vshll.u32 %v5393_v20, %v1397_v24  ;;  %v1410_v54 = vshrl.u32 %v5391_v46, %v4094_v55  ;;  %v5406_v31 = vand.u32 2147483647, %v3387_v63 }
 0x1a7   : > { %v1290_v12 = vsel %vm1288_vm8, %v1278_v18, 2102212464  ;;  %v4131_v5 = vshrl.u32 %v1395_v62, 5  ;;  %v2574_v29 = vadd.s32 4294967169, %v1490_v56  ;;  %v1400_v25 = vshll.u32 %v5401_v22, %v1397_v24 }
 0x1a8   : > { %vm4124_vm14 = vcmp.le.f32.partialorder %v5406_v31, 0.7853982  ;;  %v1403_v36 = vshll.u32 %v5402_v14, %v1397_v24  ;;  %v1412_v35 = vshll.u32 %v5391_v46, %v1397_v24  ;;  %v1413_v58 = vshrl.u32 %v5392_v33, %v4094_v55 }
 0x1a9   : > { %v1401_v49 = vshrl.u32 %v5402_v14, %v4094_v55  ;;  %v1404_v18 = vshrl.u32 %v5403_v21, %v4094_v55  ;;  %v1406_v47 = vshll.u32 %v5403_v21, %v1397_v24  ;;  %v1407_v62 = vshrl.u32 %v5393_v20, %v4094_v55 }
 0x1aa   : > { %v996_v56 = vshrl.u32 %v978_v10, %v994_v45  ;;  %v1000_v31 = vshll.u32 %v999_v37, 23  ;;  %v1411_v51 = vor.u32 %v1410_v54, %v1409_v23  ;;  %v1597_v0 = vadd.f32 0.5, %v3838_v16 }
 0x1ab   : > { %v1289_v42 = vsel %vm1285_vm9, %v1269_v19, %v4040_v4  ;;  %v5409_v9 = vand.u32 2147483647, %v3947_v39  ;;  %vm1418_vm15 = vcmp.lt.s32.totalorder %v4131_v5, 4  ;;  %v1496_v61 = vadd.s32 1, %v2574_v29 }
 0x1ac   : > { %v4153_v24 = vsub.s32 %v4036_v48, %v1213_v57  ;;  %v1291_v10 = vsel %vm1287_vm10, %v4042_v60, %v1290_v12  ;;  %v1311_v45 = vadd.s32 1, %v4107_v53  ;;  %v1414_v16 = vor.u32 %v1413_v58, %v1412_v35 }
 0x1ad   : > { %v1390_v6 = vand.u32 8388607, %v5409_v9  ;;  %vm665_vm0 = vcmp.lt.s32.totalorder %v3994_v30, 2  ;;  %vm1310_vm1 = vc.u32 %v4114_v43, %v4106_v13  ;;  %v1402_v4 = vor.u32 %v1401_v49, %v1400_v25 }
 0x1ae   : > { %v1405_v9 = vor.u32 %v1404_v18, %v1403_v36  ;;  %v1408_v37 = vor.u32 %v1407_v62, %v1406_v47  ;;  %vm1415_vm2 = vcmp.lt.s32.totalorder %v4131_v5, 1  ;;  %vm1417_vm3 = vcmp.lt.s32.totalorder %v4131_v5, 3 }
 0x1af   : > { %v1424_v48 = vsel %vm1418_vm15, %v1411_v51, 920167782  ;;  %v1599_v57 = vfloor.f32 %v1597_v0  ;;  %vm924_vm4 = vcmp.lt.s32.totalorder %v3483_v59, 0  ;;  %v1001_v60 = vor.u32 4788187, %v1000_v31 }
 0x1b0   : > { %v1292_v19 = vsel %vm1286_vm13, %v1289_v42, %v1291_v10  ;;  %v1391_v23 = vor.u32 8388608, %v1390_v6  ;;  %vm1497_vm5 = vcmp.gt.s32.totalorder %v1496_v61, 0  ;;  %v1113_v54 = vsel %vm4124_vm14, %v3387_v63, %v1110_v40 }
 0x1b1   : > { %v997_v12 = vor.u32 %v996_v56, %v995_v3  ;;  %v1216_v29 = vsub.s32 0, %v4153_v24  ;;  %v1428_v25 = vsel %vm1418_vm15, %v1414_v16, 1326507024  ;;  %v1312_v0 = vsel %vm1310_vm1, %v1311_v45, %v4107_v53 }
 0x1b2   : > { %vm1416_vm6 = vcmp.lt.s32.totalorder %v4131_v5, 2  ;;  %v1423_v6 = vsel %vm1415_vm2, %v1402_v4, %v1405_v9  ;;  %v1425_v7 = vsel %vm1417_vm3, %v1408_v37, %v1424_v48  ;;  %vm663_vm7 = vweird.f32 %v3237_v41 }
 0x1b3   : > { %v5410_v42 = vand.u32 2147483647, %v3483_v59  ;;  %v1008_v3 = vsub.s32 4, %v3872_v44  ;;  %v1308_v53 = vmul.u32 %v4092_v26, %v1292_v19  ;;  %v1498_v36 = vsel %vm1497_vm5, %v1496_v61, 0 }
 0x1b4   : > { %v1601_v35 = vmul.f32 6.2831855, %v1599_v57  ;;  %v1002_v58 = vand.u32 2147483647, %v1001_v60  ;;  %v1427_v49 = vsel %vm1415_vm2, %v1405_v9, %v1408_v37  ;;  %v1429_v18 = vsel %vm1417_vm3, %v1411_v51, %v1428_v25 }
 0x1b5   : > { %vm4187_vm8 = vcmp.le.f32.partialorder %v5410_v42, 0.7853982  ;;  %v4197_v47 = vshll.u32 %v1391_v23, 8  ;;  %2795 = vsinq.f32 %v1113_v54  ;;  %v2563_v62 = vmin.u32 %v1216_v29, %v4153_v24 }
 0x1b6   : > { %v4200_v56 = vadd.s32 %v1312_v0, %v1308_v53  ;;  %v1426_v31 = vsel %vm1416_vm6, %v1423_v6, %v1425_v7  ;;  %v1114_v61 = vsel %vm4124_vm14, 0, %v4083_v11  ;;  %v1004_v26 = vcvt.s32.f32 %v997_v12 }
 0x1b7   : > { %v1500_v10 = vand.u32 31, %v1498_v36  ;;  %v1598_v45 = vadd.f32 0.5, %v3841_v27  ;;  %v672_v51 = vsel %vm665_vm0, %v4096_v17, %v4098_v8  ;;  %v1399_v16 = vshrl.u32 %v5401_v22, %v4094_v55 }
 0x1b8   : > { %v1430_v48 = vsel %vm1416_vm6, %v1427_v49, %v1429_v18  ;;  %v4217_v57 = vsub.f32 %v3749_v34, %v1601_v35  ;;  %v1005_v15 = vmul.f32 %v1004_v26, %v1002_v58  ;;  %v1420_v11 = vsel %vm1418_vm15, %v1408_v37, 2102212464 }
 0x1b9   : > { %v4222_v27 = vmul.u32.u64.low %v4197_v47, %v1426_v31  ;;  %v4223_v60 = vmul.u32.u64.high %v4197_v47, %v1426_v31, %v4222_v27  ;;  %2797 = vcosq.f32 %v1113_v54  ;;  %v4229_v30 = vsel %vm924_vm4, %v1008_v3, %v3872_v44 }
 0x1ba   : > { %5413 = vst [vmem:[#allocation23_spill] sm:$0xff] %v4217_v57  ;;  %v1218_v55 = vclz %v2563_v62  ;;  %v1314_v17 = vadd.s32 536870912, %v4200_v56  ;;  %v4233_v34 = vmul.u32.u64.low %v4197_v47, %v1430_v48  ;;  %v4234_v8 = vmul.u32.u64.high %v4197_v47, %v1430_v48, %v4233_v34 }
 0x1bb   : > { %v4236_v19 = vsub.s32 32, %v1500_v10  ;;  %v1600_v37 = vfloor.f32 %v1598_v45  ;;  %v4238_v23 = vand.u32 3, %v1114_v61  ;;  %v1419_v54 = vsel %vm1415_vm2, %v1399_v16, %v1402_v4 }
 0x1bc   : > { %v1421_v12 = vsel %vm1417_vm3, %v1405_v9, %v1420_v11  ;;  %v1608_v44 = vand.u32 2139095040, %v4217_v57  ;;  %v4247_v29 = vsel %vm663_vm7, nan, %v672_v51  ;;  %v1006_v25 = vxor.u32 2147483648, %v1005_v15 }
 0x1bd   : > { %5414 = vst [vmem:[#allocation24_spill] sm:$0xff] %v4247_v29  ;;  %v1011_v0 = vsel %vm4187_vm8, 0, %v4229_v30  ;;  %v4254_v6 = vadd.f32 %v3974_v28, %v3978_v52  ;;  %v2564_v7 = vadd.s32 4294967294, %v1218_v55  ;;  %v4256_v4 = vshrl.u32 %v1314_v17, 30 }
 0x1be   : > { %v5346_v9 = vand.u32 2147483647, %v4050_v2  ;;  %v1609_v42 = vshrl.u32 %v1608_v44, 23  ;;  %v1422_v41 = vsel %vm1416_vm6, %v1419_v54, %v1421_v12  ;;  %v1512_v3 = vshll.u32 %v5393_v20, %v1500_v10 }
 0x1bf   : > { %5415 = vst [vmem:[#allocation25_spill] sm:$0xff] %v4254_v6  ;;  %v1513_v53 = vshrl.u32 %v5391_v46, %v4236_v19  ;;  %v1602_v35 = vmul.f32 6.2831855, %v1600_v37  ;;  %v2796_v58 = vpop.eup %2795  ;;  %v4264_v49 = vshrl.u32 %v1498_v36, 5  ;;  %v1515_v28 = vshll.u32 %v5391_v46, %v1500_v10 }
 0x1c0   : > { %v1516_v52 = vshrl.u32 %v5392_v33, %v4236_v19  ;;  %v2578_v18 = vadd.s32 4294967169, %v1609_v42  ;;  %v1441_v62 = vadd.s32 1, %v4223_v60  ;;  %v1503_v5 = vshll.u32 %v5401_v22, %v1500_v10 }
 0x1c1   : > { %v1504_v31 = vshrl.u32 %v5402_v14, %v4236_v19  ;;  %v1506_v61 = vshll.u32 %v5402_v14, %v1500_v10  ;;  %v1507_v26 = vshrl.u32 %v5403_v21, %v4236_v19  ;;  %v1509_v36 = vshll.u32 %v5403_v21, %v1500_v10 }
 0x1c2   : > { %v1510_v45 = vshrl.u32 %v5393_v20, %v4236_v19  ;;  %v1615_v51 = vadd.s32 1, %v2578_v18  ;;  %vm1120_vm9 = vcmp.eq.s32.totalorder %v4238_v23, 0  ;;  %v1121_v16 = vxor.u32 2147483648, %v2796_v58 }
 0x1c3   : > { %vm1440_vm10 = vc.u32 %v4234_v8, %v4222_v27  ;;  %v1514_v48 = vor.u32 %v1513_v53, %v1512_v3  ;;  %v4283_v11 = vsub.f32 %v3753_v38, %v1602_v35  ;;  %v2798_v55 = vpop.eup %2797  ;;  %v1007_v17 = vsel %vm924_vm4, %v1006_v25, %v1005_v15 }
 0x1c4   : > { %vm1123_vm11 = vcmp.eq.s32.totalorder %v4238_v23, 2  ;;  %v1493_v10 = vand.u32 8388607, %v5346_v9  ;;  %v1517_v34 = vor.u32 %v1516_v52, %v1515_v28  ;;  %vm1521_vm12 = vcmp.lt.s32.totalorder %v4264_v49, 4 }
 0x1c5   : > { %5416 = vst [vmem:[#allocation26_spill] sm:$0xff] %v4283_v11  ;;  %vm2565_vm13 = vcmp.lt.s32.totalorder %v2564_v7, 0  ;;  %v1316_v37 = vshll.u32 %v4256_v4, 30  ;;  %v1438_v54 = vmul.u32 %v4197_v47, %v1422_v41  ;;  %vm1616_vm14 = vcmp.gt.s32.totalorder %v1615_v51, 0 }
 0x1c6   : > { %vm1152_vm15 = vcmp.lt.s32.totalorder %v3656_v50, 0  ;;  %v1442_v38 = vsel %vm1440_vm10, %v1441_v62, %v4223_v60  ;;  %v1505_v12 = vor.u32 %v1504_v31, %v1503_v5  ;;  %v1508_v15 = vor.u32 %v1507_v26, %v1506_v61 }
 0x1c7   : > { %v1511_v44 = vor.u32 %v1510_v45, %v1509_v36  ;;  %vm1518_vm0 = vcmp.lt.s32.totalorder %v4264_v49, 1  ;;  %vm1520_vm1 = vcmp.lt.s32.totalorder %v4264_v49, 3  ;;  %v1527_v25 = vsel %vm1521_vm12, %v1514_v48, 920167782 }
 0x1c8   : > { %v1711_v42 = vand.u32 2139095040, %v4283_v11  ;;  %v1124_v3 = vxor.u32 2147483648, %v2798_v55  ;;  %v1494_v53 = vor.u32 8388608, %v1493_v10  ;;  %v1531_v47 = vsel %vm1521_vm12, %v1517_v34, 1326507024 }
 0x1c9   : > { %v1617_v41 = vsel %vm1616_vm14, %v1615_v51, 0  ;;  %v1010_v60 = vsel %vm4187_vm8, %v3483_v59, %v1007_v17  ;;  %v5417_v35 = vand.u32 2147483647, %v3656_v50  ;;  %v4312_v52 = vsel %vm2565_vm13, 0, %v2564_v7 }
 0x1ca   : > { %v4315_v18 = vsub.s32 %v4200_v56, %v1316_v37  ;;  %v4317_v62 = vadd.s32 %v1442_v38, %v1438_v54  ;;  %v1236_v5 = vsub.s32 4, %v4088_v32  ;;  %vm1519_vm3 = vcmp.lt.s32.totalorder %v4264_v49, 2 }
 0x1cb   : > { %vm4307_vm2 = vcmp.le.f32.partialorder %v5417_v35, 0.7853982  ;;  %v1526_v31 = vsel %vm1518_vm0, %v1505_v12, %v1508_v15  ;;  %v1528_v61 = vsel %vm1520_vm1, %v1511_v44, %v1527_v25  ;;  %v1530_v26 = vsel %vm1518_vm0, %v1508_v15, %v1511_v44 }
 0x1cc   : > { %v1532_v7 = vsel %vm1520_vm1, %v1514_v48, %v1531_v47  ;;  %v1619_v56 = vand.u32 31, %v1617_v41  ;;  %v1712_v36 = vshrl.u32 %v1711_v42, 23  ;;  %v4333_v45 = vand.u32 3, %v1011_v0  ;;  %v5420_v0 = vld [vmem:[#allocation20_spill] sm:$0xff] }
 0x1cd   : > { %v1226_v51 = vsub.s32 4294967266, %v4312_v52  ;;  %v4338_v17 = vsel %vm1120_vm9, %v2798_v55, %v1121_v16  ;;  %v4340_v10 = vshll.u32 %v1494_v53, 8  ;;  %v1319_v34 = vsub.s32 0, %v4315_v18 }
 0x1ce   : > { %v4345_v48 = vsel %vm1123_vm11, %v1124_v3, %v2796_v58  ;;  %v1444_v40 = vadd.s32 536870912, %v4317_v62  ;;  %v1529_v30 = vsel %vm1519_vm3, %v1526_v31, %v1528_v61  ;;  %2799 = vcosq.f32 %v1010_v60 }
 0x1cf   : > { %v1206_v37 = vadd.s32 %v5420_v0, %v3965_v1  ;;  %v1502_v16 = vshrl.u32 %v5401_v22, %v4236_v19  ;;  %v1533_v55 = vsel %vm1519_vm3, %v1530_v26, %v1532_v7  ;;  %v4359_v58 = vsel %vm1152_vm15, %v1236_v5, %v4088_v32 }
 0x1d0   : > { %v1523_v54 = vsel %vm1521_vm12, %v1511_v44, 2102212464  ;;  %v4363_v38 = vsub.s32 32, %v1619_v56  ;;  %v2582_v25 = vadd.s32 4294967169, %v1712_v36  ;;  %2801 = vsinq.f32 %v1010_v60 }
 0x1d1   : > { %v1227_v42 = vadd.s32 127, %v1226_v51  ;;  %v4366_v1 = vmul.u32.u64.low %v4340_v10, %v1529_v30  ;;  %v4367_v3 = vmul.u32.u64.high %v4340_v10, %v1529_v30, %v4366_v1  ;;  %v2567_v19 = vmin.u32 %v1319_v34, %v4315_v18 }
 0x1d2   : > { %v4371_v53 = vshrl.u32 %v1444_v40, 30  ;;  %v4374_v32 = vmul.u32.u64.low %v4340_v10, %v1533_v55  ;;  %v4375_v47 = vmul.u32.u64.high %v4340_v10, %v1533_v55, %v4374_v32  ;;  %v1222_v44 = vsub.s32 32, %v4312_v52 }
 0x1d3   : > { %5421 = vst [vmem:[#allocation20_spill] sm:$0xff] %v4366_v1  ;;  %v1239_v60 = vsel %vm4307_vm2, 0, %v4359_v58  ;;  %v1522_v35 = vsel %vm1518_vm0, %v1502_v16, %v1505_v12  ;;  %v1524_v5 = vsel %vm1520_vm1, %v1508_v15, %v1523_v54  ;;  %v1223_v31 = vshll.u32 %v4153_v24, %v4312_v52 }
 0x1d4   : > { %5422 = vst [vmem:[#allocation27_spill] sm:$0xff] %v4371_v53  ;;  %5423 = vst [vmem:[#allocation28_spill] sm:$0xff] %v4375_v47  ;;  %v1634_v61 = vshll.u32 %v5391_v46, %v1619_v56  ;;  %v1635_v26 = vshrl.u32 %v5392_v33, %v4363_v38  ;;  %v1718_v7 = vadd.s32 1, %v2582_v25  ;;  %v5344_v36 = vand.u32 2147483647, %v4217_v57 }
 0x1d5   : > { %v4391_v51 = vshrl.u32 %v1617_v41, 5  ;;  %v1631_v34 = vshll.u32 %v5393_v20, %v1619_v56  ;;  %v1632_v12 = vshrl.u32 %v5391_v46, %v4363_v38  ;;  %v1228_v40 = vshll.u32 %v1227_v42, 23 }
 0x1d6   : > { %v1321_v15 = vclz %v2567_v19  ;;  %v1446_v30 = vshll.u32 %v4371_v53, 30  ;;  %v1525_v24 = vsel %vm1519_vm3, %v1522_v35, %v1524_v5  ;;  %v1625_v52 = vshll.u32 %v5402_v14, %v1619_v56 }
 0x1d7   : > { %v1626_v0 = vshrl.u32 %v5403_v21, %v4363_v38  ;;  %v1628_v41 = vshll.u32 %v5403_v21, %v1619_v56  ;;  %v1629_v16 = vshrl.u32 %v5393_v20, %v4363_v38  ;;  %v1622_v55 = vshll.u32 %v5401_v22, %v1619_v56 }
 0x1d8   : > { %v1623_v58 = vshrl.u32 %v5402_v14, %v4363_v38  ;;  %v1636_v54 = vor.u32 %v1635_v26, %v1634_v61  ;;  %vm1719_vm4 = vcmp.gt.s32.totalorder %v1718_v7, 0  ;;  %v2800_v25 = vpop.eup %2799  ;;  %v1544_v49 = vadd.s32 1, %v4367_v3 }
 0x1d9   : > { %v1612_v42 = vand.u32 8388607, %v5344_v36  ;;  %v1633_v19 = vor.u32 %v1632_v12, %v1631_v34  ;;  %vm1640_vm5 = vcmp.lt.s32.totalorder %v4391_v51, 4  ;;  %v1224_v32 = vshrl.u32 %v1206_v37, %v1222_v44 }
 0x1da   : > { %v1229_v35 = vor.u32 4788187, %v1228_v40  ;;  %vm1017_vm6 = vcmp.eq.s32.totalorder %v4333_v45, 0  ;;  %vm1020_vm7 = vcmp.eq.s32.totalorder %v4333_v45, 2  ;;  %v4415_v56 = vsub.s32 %v4317_v62, %v1446_v30  ;;  %v2802_v5 = vpop.eup %2801 }
 0x1db   : > { %vm1543_vm8 = vc.u32 %v4375_v47, %v4366_v1  ;;  %v1541_v61 = vmul.u32 %v4340_v10, %v1525_v24  ;;  %v4420_v26 = vor.u32 %v1626_v0, %v1625_v52  ;;  %v1630_v34 = vor.u32 %v1629_v16, %v1628_v41 }
 0x1dc   : > { %v1720_v12 = vsel %vm1719_vm4, %v1718_v7, 0  ;;  %v1624_v37 = vor.u32 %v1623_v58, %v1622_v55  ;;  %vm1637_vm9 = vcmp.lt.s32.totalorder %v4391_v51, 1  ;;  %vm1639_vm10 = vcmp.lt.s32.totalorder %v4391_v51, 3 }
 0x1dd   : > { %v1650_v62 = vsel %vm1640_vm5, %v1636_v54, 1326507024  ;;  %v2568_v44 = vadd.s32 4294967294, %v1321_v15  ;;  %v1545_v40 = vsel %vm1543_vm8, %v1544_v49, %v4367_v3  ;;  %v1613_v30 = vor.u32 8388608, %v1612_v42 }
 0x1de   : > { %v1646_v10 = vsel %vm1640_vm5, %v1633_v19, 920167782  ;;  %v1225_v24 = vor.u32 %v1224_v32, %v1223_v31  ;;  %v1018_v52 = vxor.u32 2147483648, %v2802_v5  ;;  %v1021_v0 = vxor.u32 2147483648, %v2800_v25 }
 0x1df   : > { %v1722_v41 = vand.u32 31, %v1720_v12  ;;  %v1230_v7 = vand.u32 2147483647, %v1229_v35  ;;  %vm1638_vm11 = vcmp.lt.s32.totalorder %v4391_v51, 2  ;;  %v1649_v16 = vsel %vm1637_vm9, %v4420_v26, %v1630_v34 }
 0x1e0   : > { %v1651_v15 = vsel %vm1639_vm10, %v1633_v19, %v1650_v62  ;;  %v1449_v3 = vsub.s32 0, %v4415_v56  ;;  %v4437_v55 = vadd.s32 %v1545_v40, %v1541_v61  ;;  %v1645_v31 = vsel %vm1637_vm9, %v1624_v37, %v4420_v26  ;;  %v5425_v61 = vld [vmem:[#allocation13_spill] sm:$0xff]  ;;  %v5426_v62 = vld [vmem:[#allocation15_spill] sm:$0xff] }
 0x1e1   : > { %v1647_v58 = vsel %vm1639_vm10, %v1630_v34, %v1646_v10  ;;  %v4444_v54 = vand.u32 3, %v1239_v60  ;;  %vm2569_vm12 = vcmp.lt.s32.totalorder %v2568_v44, 0  ;;  %v4446_v49 = vshll.u32 %v1613_v30, 8 }
 0x1e2   : > { %v5345_v42 = vand.u32 2147483647, %v4283_v11  ;;  %v1232_v32 = vcvt.s32.f32 %v1225_v24  ;;  %v1652_v19 = vsel %vm1638_vm11, %v1649_v16, %v1651_v15  ;;  %v4451_v35 = vsub.s32 32, %v1722_v41 }
 0x1e3   : > { %5424 = vst [vmem:[#allocation29_spill] sm:$0xff] %v4444_v54  ;;  %v4455_v40 = vmul.f32 %v5426_v62, %v5425_v61  ;;  %v4459_v10 = vadd.s32 %v4106_v13, %v4114_v43  ;;  %v4463_v60 = vsel %vm1017_vm6, %v2800_v25, %v1018_v52  ;;  %v4467_v30 = vsel %vm1020_vm7, %v1021_v0, %v2802_v5 }
 0x1e4   : > { %v1648_v24 = vsel %vm1638_vm11, %v1645_v31, %v1647_v58  ;;  %v4471_v16 = vmul.f32 %v1232_v32, %v1230_v7  ;;  %v4473_v15 = vsel %vm2569_vm12, 0, %v2568_v44  ;;  %v2571_v36 = vmin.u32 %v1449_v3, %v4415_v56  ;;  %v5427_v32 = vld [vmem:[#allocation14_spill] sm:$0xff] }
 0x1e5   : > { %v1547_v13 = vadd.s32 536870912, %v4437_v55  ;;  %v1621_v43 = vshrl.u32 %v5401_v22, %v4363_v38  ;;  %v4480_v25 = vmul.u32.u64.low %v4446_v49, %v1652_v19  ;;  %v4481_v52 = vmul.u32.u64.high %v4446_v49, %v1652_v19, %v4480_v25 }
 0x1e6   : > { %v1715_v5 = vand.u32 8388607, %v5345_v42  ;;  %v4486_v0 = vmul.u32.u64.low %v4446_v49, %v1648_v24  ;;  %v4487_v7 = vmul.u32.u64.high %v4446_v49, %v1648_v24, %v4486_v0  ;;  %v1734_v44 = vshll.u32 %v5393_v20, %v1722_v41 }
 0x1e7   : > { %v1735_v3 = vshrl.u32 %v5391_v46, %v4451_v35  ;;  %v4493_v31 = vshrl.u32 %v1720_v12, 5  ;;  %v1737_v38 = vshll.u32 %v5391_v46, %v1722_v41  ;;  %v1738_v58 = vshrl.u32 %v5392_v33, %v4451_v35 }
 0x1e8   : > { %v4500_v19 = vmul.f32 %v5426_v62, %v5427_v32  ;;  %v1642_v24 = vsel %vm1640_vm5, %v1630_v34, 2102212464  ;;  %v1725_v25 = vshll.u32 %v5401_v22, %v1722_v41  ;;  %v1726_v42 = vshrl.u32 %v5402_v14, %v4451_v35 }
 0x1e9   : > { %v1819_v12 = vmul.f32 0.15915494, %v4455_v40  ;;  %v1728_v9 = vshll.u32 %v5402_v14, %v1722_v41  ;;  %v1729_v6 = vshrl.u32 %v5403_v21, %v4451_v35  ;;  %v1731_v29 = vshll.u32 %v5403_v21, %v1722_v41 }
 0x1ea   : > { %v1732_v62 = vshrl.u32 %v5393_v20, %v4451_v35  ;;  %v1234_v63 = vxor.u32 2147483648, %v4471_v16  ;;  %v1329_v34 = vsub.s32 4294967266, %v4473_v15  ;;  %v1641_v11 = vsel %vm1637_vm9, %v1621_v43, %v1624_v37 }
 0x1eb   : > { %v1736_v57 = vor.u32 %v1735_v3, %v1734_v44  ;;  %vm1016_vm13 = vcmp.lt.s32.totalorder %v4333_v45, 2  ;;  %vm1119_vm14 = vcmp.lt.s32.totalorder %v4238_v23, 2  ;;  %v1643_v2 = vsel %vm1639_vm10, %v4420_v26, %v1642_v24 }
 0x1ec   : > { %v1739_v41 = vor.u32 %v1738_v58, %v1737_v38  ;;  %vm1743_vm0 = vcmp.lt.s32.totalorder %v4493_v31, 4  ;;  %v1820_v1 = vmul.f32 0.15915494, %v4500_v19  ;;  %v1451_v47 = vclz %v2571_v36 }
 0x1ed   : > { %v4525_v53 = vshrl.u32 %v1547_v13, 30  ;;  %v1716_v39 = vor.u32 8388608, %v1715_v5  ;;  %v4527_v54 = vor.u32 %v1726_v42, %v1725_v25  ;;  %v4529_v37 = vor.u32 %v1729_v6, %v1728_v9 }
 0x1ee   : > { %v1733_v43 = vor.u32 %v1732_v62, %v1731_v29  ;;  %v1821_v44 = vadd.f32 0.5, %v1819_v12  ;;  %v1822_v3 = vadd.f32 0.5, %v1820_v1  ;;  %v1644_v32 = vsel %vm1638_vm11, %v1641_v11, %v1643_v2  ;;  %v5428_v29 = vld [vmem:[#allocation18_spill] sm:$0xff] }
 0x1ef   : > { %vm1740_vm1 = vcmp.lt.s32.totalorder %v4493_v31, 1  ;;  %vm1742_vm3 = vcmp.lt.s32.totalorder %v4493_v31, 3  ;;  %v1749_v36 = vsel %vm1743_vm0, %v1736_v57, 920167782  ;;  %v1663_v26 = vadd.s32 1, %v4487_v7 }
 0x1f0   : > { %v1753_v42 = vsel %vm1743_vm0, %v1739_v41, 1326507024  ;;  %v1823_v6 = vfloor.f32 %v1821_v44  ;;  %v1824_v9 = vfloor.f32 %v1822_v3  ;;  %vm1255_vm4 = vcmp.lt.s32.totalorder %v5428_v29, 0 }
 0x1f1   : > { %v1325_v1 = vsub.s32 32, %v4473_v15  ;;  %v1330_v51 = vadd.s32 127, %v1329_v34  ;;  %v1549_v2 = vshll.u32 %v4525_v53, 30  ;;  %vm1662_vm5 = vc.u32 %v4481_v52, %v4486_v0 }
 0x1f2   : > { %vm1741_vm6 = vcmp.lt.s32.totalorder %v4493_v31, 2  ;;  %v1748_v11 = vsel %vm1740_vm1, %v4527_v54, %v4529_v37  ;;  %v1750_v13 = vsel %vm1742_vm3, %v1733_v43, %v1749_v36  ;;  %v1825_v5 = vmul.f32 6.2831855, %v1823_v6 }
 0x1f3   : > { %vm1014_vm7 = vweird.f32 %v3483_v59  ;;  %v2572_v38 = vadd.s32 4294967294, %v1451_v47  ;;  %v1660_v58 = vmul.u32 %v4446_v49, %v1644_v32  ;;  %v1752_v24 = vsel %vm1740_vm1, %v4529_v37, %v1733_v43 }
 0x1f4   : > { %v1754_v25 = vsel %vm1742_vm3, %v1736_v57, %v1753_v42  ;;  %v1664_v12 = vsel %vm1662_vm5, %v1663_v26, %v4487_v7  ;;  %v4560_v62 = vshll.u32 %v1716_v39, 8  ;;  %v1826_v34 = vmul.f32 6.2831855, %v1824_v9 }
 0x1f5   : > { %v4563_v41 = vsub.f32 %v4455_v40, %v1825_v5  ;;  %v5429_v44 = vand.u32 2147483647, %v5428_v29  ;;  %v1339_v49 = vsub.s32 4, %v4256_v4  ;;  %v1023_v57 = vsel %vm1016_vm13, %v4463_v60, %v4467_v30 }
 0x1f6   : > { %v4580_v39 = vsel %vm1119_vm14, %v4338_v17, %v4345_v48  ;;  %v1751_v40 = vsel %vm1741_vm6, %v1748_v11, %v1750_v13  ;;  %v1235_v7 = vsel %vm1152_vm15, %v1234_v63, %v4471_v16  ;;  %v1327_v32 = vshrl.u32 %v4459_v10, %v1325_v1 }
 0x1f7   : > { %vm4567_vm8 = vcmp.le.f32.partialorder %v5429_v44, 0.7853982  ;;  %5432 = vst [vmem:[#allocation13_spill] sm:$0xff] %v4580_v39  ;;  %v4589_v3 = vsub.s32 %v4437_v55, %v1549_v2  ;;  %v1755_v45 = vsel %vm1741_vm6, %v1752_v24, %v1754_v25  ;;  %v1326_v23 = vshll.u32 %v4315_v18, %v4473_v15 }
 0x1f8   : > { %v1331_v17 = vshll.u32 %v1330_v51, 23  ;;  %v4595_v48 = vadd.s32 %v1664_v12, %v1660_v58  ;;  %v1832_v60 = vand.u32 2139095040, %v4563_v41  ;;  %vm2573_vm9 = vcmp.lt.s32.totalorder %v2572_v38, 0 }
 0x1f9   : > { %v4599_v30 = vmul.u32.u64.low %v4560_v62, %v1751_v40  ;;  %v4600_v63 = vmul.u32.u64.high %v4560_v62, %v1751_v40, %v4599_v30  ;;  %v4604_v55 = vsub.f32 %v4500_v19, %v1826_v34  ;;  %v1724_v10 = vshrl.u32 %v5401_v22, %v4451_v35 }
 0x1fa   : > { %v4609_v16 = vmul.u32.u64.low %v4560_v62, %v1755_v45  ;;  %v4610_v18 = vmul.u32.u64.high %v4560_v62, %v1755_v45, %v4609_v16  ;;  %v1833_v15 = vshrl.u32 %v1832_v60, 23  ;;  %v1328_v36 = vor.u32 %v1327_v32, %v1326_v23 }
 0x1fb   : > { %v1340_v26 = vsel %vm1255_vm4, %v1339_v49, %v4256_v4  ;;  %v1552_v42 = vsub.s32 0, %v4589_v3  ;;  %v1745_v6 = vsel %vm1743_vm0, %v1733_v43, 2102212464  ;;  %v1238_v19 = vsel %vm4307_vm2, %v3656_v50, %v1235_v7 }
 0x1fc   : > { %v1332_v35 = vor.u32 4788187, %v1331_v17  ;;  %v1666_v9 = vadd.s32 536870912, %v4595_v48  ;;  %v2586_v1 = vadd.s32 4294967169, %v1833_v15  ;;  %v4624_v51 = vsel %vm1014_vm7, nan, %v1023_v57 }
 0x1fd   : > { %5433 = vst [vmem:[#allocation15_spill] sm:$0xff] %v4624_v51  ;;  %v1439_v4 = vadd.s32 %v4222_v27, %v4234_v8  ;;  %v1454_v2 = vsel %vm2573_vm9, 0, %v2572_v38  ;;  %v1935_v11 = vand.u32 2139095040, %v4604_v55  ;;  %v1744_v28 = vsel %vm1740_vm1, %v1724_v10, %v4527_v54 }
 0x1fe   : > { %v1455_v43 = vsub.s32 32, %v1454_v2  ;;  %v1746_v13 = vsel %vm1742_vm3, %v4529_v37, %v1745_v6  ;;  %v1839_v5 = vadd.s32 1, %v2586_v1  ;;  %2803 = vcosq.f32 %v1238_v19 }
 0x1ff   : > { %v1335_v59 = vcvt.s32.f32 %v1328_v36  ;;  %v1342_v58 = vsel %vm4567_vm8, 0, %v1340_v26  ;;  %v2575_v27 = vmin.u32 %v1552_v42, %v4589_v3  ;;  %v1333_v8 = vand.u32 2147483647, %v1332_v35 }
 0x200   : > { %v1459_v38 = vsub.s32 4294967266, %v1454_v2  ;;  %v4639_v24 = vshrl.u32 %v1666_v9, 30  ;;  %vm1840_vm15 = vcmp.gt.s32.totalorder %v1839_v5, 0  ;;  %v1747_v54 = vsel %vm1741_vm6, %v1744_v28, %v1746_v13  ;;  %v5434_v28 = vld [vmem:[#allocation16_spill] sm:$0xff] }
 0x201   : > { %v1766_v25 = vadd.s32 1, %v4600_v63  ;;  %v5363_v37 = vand.u32 2147483647, %v4563_v41  ;;  %v1936_v12 = vshrl.u32 %v1935_v11, 23  ;;  %v1456_v34 = vshll.u32 %v4415_v56, %v1454_v2 }
 0x202   : > { %v1457_v44 = vshrl.u32 %v1439_v4, %v1455_v43  ;;  %vm1765_vm2 = vc.u32 %v4610_v18, %v4599_v30  ;;  %v1841_v49 = vsel %vm1840_vm15, %v1839_v5, 0  ;;  %2805 = vsinq.f32 %v1238_v19 }
 0x203   : > { %v4648_v57 = vand.u32 3, %v1342_v58  ;;  %v1554_v40 = vclz %v2575_v27  ;;  %v1843_v7 = vand.u32 31, %v1841_v49  ;;  %v4650_v32 = vmul.f32 %v1335_v59, %v1333_v8 }
 0x204   : > { %v4652_v31 = vadd.s32 127, %v1459_v38  ;;  %v1668_v45 = vshll.u32 %v4639_v24, 30  ;;  %v1763_v23 = vmul.u32 %v4560_v62, %v1747_v54  ;;  %v1767_v56 = vsel %vm1765_vm2, %v1766_v25, %v4600_v63  ;;  %v5435_v25 = vld [vmem:[#allocation14_spill] sm:$0xff] }
 0x205   : > { %v1836_v17 = vand.u32 8388607, %v5363_v37  ;;  %v1844_v60 = vsub.s32 32, %v1843_v7  ;;  %v2590_v10 = vadd.s32 4294967169, %v1936_v12  ;;  %v4659_v16 = vor.u32 %v1457_v44, %v1456_v34 }
 0x206   : > { %v1846_v15 = vshll.u32 %v5401_v22, %v1843_v7  ;;  %v1849_v36 = vshll.u32 %v5402_v14, %v1843_v7  ;;  %v1855_v26 = vshll.u32 %v5393_v20, %v1843_v7  ;;  %v4664_v42 = vadd.s32 4294967294, %v1554_v40 }
 0x207   : > { %v1842_v6 = vshrl.u32 %v1841_v49, 5  ;;  %v1847_v62 = vshrl.u32 %v5402_v14, %v1844_v60  ;;  %v1852_v63 = vshll.u32 %v5403_v21, %v1843_v7  ;;  %v4668_v19 = vadd.s32 %v1767_v56, %v1763_v23 }
 0x208   : > { %v1850_v35 = vshrl.u32 %v5403_v21, %v1844_v60  ;;  %v1853_v9 = vshrl.u32 %v5393_v20, %v1844_v60  ;;  %v1856_v1 = vshrl.u32 %v5391_v46, %v1844_v60  ;;  %v4673_v4 = vpop.eup %2803  ;;  %v4676_v2 = vsub.s32 %v4595_v48, %v1668_v45 }
 0x209   : > { %v1837_v11 = vor.u32 8388608, %v1836_v17  ;;  %v1942_v43 = vadd.s32 1, %v2590_v10  ;;  %v4680_v13 = vmul.f32 %v5434_v28, %v5425_v61  ;;  %v1848_v5 = vor.u32 %v1847_v62, %v1846_v15 }
 0x20a   : > { %v1851_v59 = vor.u32 %v1850_v35, %v1849_v36  ;;  %v1857_v58 = vor.u32 %v1856_v1, %v1855_v26  ;;  %v1858_v27 = vshll.u32 %v5391_v46, %v1843_v7  ;;  %v1845_v8 = vshrl.u32 %v5401_v22, %v1844_v60 }
 0x20b   : > { %v1854_v38 = vor.u32 %v1853_v9, %v1852_v63  ;;  %v1859_v54 = vshrl.u32 %v5392_v33, %v1844_v60  ;;  %vm1861_vm10 = vcmp.lt.s32.totalorder %v1842_v6, 1  ;;  %v1769_v48 = vadd.s32 536870912, %v4668_v19 }
 0x20c   : > { %vm1863_vm11 = vcmp.lt.s32.totalorder %v1842_v6, 3  ;;  %vm1864_vm12 = vcmp.lt.s32.totalorder %v1842_v6, 4  ;;  %v4688_v12 = vmul.f32 %v5434_v28, %v5435_v25  ;;  %v4690_v61 = vpop.eup %2805  ;;  %v1671_v34 = vsub.s32 0, %v4676_v2 }
 0x20d   : > { %v1860_v44 = vor.u32 %v1859_v54, %v1858_v27  ;;  %vm1862_vm13 = vcmp.lt.s32.totalorder %v1842_v6, 2  ;;  %v1866_v49 = vsel %vm1864_vm12, %v1854_v38, 2102212464  ;;  %v1869_v40 = vsel %vm1861_vm10, %v1848_v5, %v1851_v59 }
 0x20e   : > { %v1870_v7 = vsel %vm1864_vm12, %v1857_v58, 920167782  ;;  %v1877_v45 = vshll.u32 %v1837_v11, 8  ;;  %vm1943_vm14 = vcmp.gt.s32.totalorder %v1942_v43, 0  ;;  %v1865_v23 = vsel %vm1861_vm10, %v1845_v8, %v1848_v5 }
 0x20f   : > { %v1867_v56 = vsel %vm1863_vm11, %v1851_v59, %v1866_v49  ;;  %v1871_v17 = vsel %vm1863_vm11, %v1854_v38, %v1870_v7  ;;  %v1873_v60 = vsel %vm1861_vm10, %v1851_v59, %v1854_v38  ;;  %v4700_v10 = vshrl.u32 %v1769_v48, 30 }
 0x210   : > { %v1872_v15 = vsel %vm1862_vm13, %v1869_v40, %v1871_v17  ;;  %v1874_v36 = vsel %vm1864_vm12, %v1860_v44, 1326507024  ;;  %v5362_v26 = vand.u32 2147483647, %v4604_v55  ;;  %v1461_v62 = vshll.u32 %v4652_v31, 23 }
 0x211   : > { %v1875_v63 = vsel %vm1863_vm11, %v1857_v58, %v1874_v36  ;;  %v1944_v35 = vsel %vm1943_vm14, %v1942_v43, 0  ;;  %v2043_v9 = vmul.f32 0.15915494, %v4680_v13  ;;  %v1868_v1 = vsel %vm1862_vm13, %v1865_v23, %v1867_v56 }
 0x212   : > { %v1876_v11 = vsel %vm1862_vm13, %v1873_v60, %v1875_v63  ;;  %v4710_v28 = vmul.u32.u64.low %v1877_v45, %v1872_v15  ;;  %v4711_v5 = vmul.u32.u64.high %v1877_v45, %v1872_v15, %v4710_v28  ;;  %v4715_v59 = vmin.u32 %v1671_v34, %v4676_v2 }
 0x213   : > { %v4717_v27 = vmul.u32.u64.low %v1877_v45, %v1876_v11  ;;  %v4718_v8 = vmul.u32.u64.high %v1877_v45, %v1876_v11, %v4717_v27  ;;  %v2044_v31 = vmul.f32 0.15915494, %v4688_v12  ;;  %vm2577_vm0 = vcmp.lt.s32.totalorder %v4664_v42, 0 }
 0x214   : > { %v1771_v43 = vshll.u32 %v4700_v10, 30  ;;  %v1939_v6 = vand.u32 8388607, %v5362_v26  ;;  %v1946_v58 = vand.u32 31, %v1944_v35  ;;  %v4725_v38 = vor.u32 4788187, %v1461_v62 }
 0x215   : > { %v1465_v54 = vcvt.s32.f32 %v4659_v16  ;;  %v1884_v48 = vmul.u32 %v1877_v45, %v1868_v1  ;;  %v2045_v25 = vadd.f32 0.5, %v2043_v9  ;;  %v1887_v34 = vadd.s32 1, %v4711_v5 }
 0x216   : > { %v1945_v44 = vshrl.u32 %v1944_v35, 5  ;;  %v1947_v49 = vsub.s32 32, %v1946_v58  ;;  %v1949_v40 = vshll.u32 %v5401_v22, %v1946_v58  ;;  %v4731_v7 = vsel %vm2577_vm0, 0, %v4664_v42 }
 0x217   : > { %v1673_v23 = vclz %v4715_v59  ;;  %vm1886_vm1 = vc.u32 %v4718_v8, %v4710_v28  ;;  %v4736_v56 = vadd.f32 0.5, %v2044_v31  ;;  %v4739_v17 = vsub.s32 %v4668_v19, %v1771_v43 }
 0x218   : > { %v1888_v45 = vsel %vm1886_vm1, %v1887_v34, %v4711_v5  ;;  %v1940_v60 = vor.u32 8388608, %v1939_v6  ;;  %v1950_v15 = vshrl.u32 %v5402_v14, %v1947_v49  ;;  %v1952_v42 = vshll.u32 %v5402_v14, %v1946_v58 }
 0x219   : > { %v4743_v36 = vadd.s32 %v1888_v45, %v1884_v48  ;;  %v1953_v62 = vshrl.u32 %v5403_v21, %v1947_v49  ;;  %v2047_v63 = vfloor.f32 %v2045_v25  ;;  %v1955_v9 = vshll.u32 %v5403_v21, %v1946_v58 }
 0x21a   : > { %v1951_v35 = vor.u32 %v1950_v15, %v1949_v40  ;;  %v1956_v1 = vshrl.u32 %v5393_v20, %v1947_v49  ;;  %vm1964_vm3 = vcmp.lt.s32.totalorder %v1945_v44, 1  ;;  %v1948_v19 = vshrl.u32 %v5401_v22, %v1947_v49 }
 0x21b   : > { %v1954_v11 = vor.u32 %v1953_v62, %v1952_v42  ;;  %v1958_v5 = vshll.u32 %v5393_v20, %v1946_v58  ;;  %v1959_v59 = vshrl.u32 %v5391_v46, %v1947_v49  ;;  %v1961_v31 = vshll.u32 %v5391_v46, %v1946_v58  ;;  %v5436_v62 = vld [vmem:[#allocation29_spill] sm:$0xff] }
 0x21c   : > { %v1957_v27 = vor.u32 %v1956_v1, %v1955_v9  ;;  %v1962_v43 = vshrl.u32 %v5392_v33, %v1947_v49  ;;  %vm1967_vm5 = vcmp.lt.s32.totalorder %v1945_v44, 4  ;;  %v1890_v6 = vadd.s32 536870912, %v4743_v36 }
 0x21d   : > { %v1960_v48 = vor.u32 %v1959_v59, %v1958_v5  ;;  %vm1966_vm6 = vcmp.lt.s32.totalorder %v1945_v44, 3  ;;  %v1980_v25 = vshll.u32 %v1940_v60, 8  ;;  %vm1965_vm7 = vcmp.lt.s32.totalorder %v1945_v44, 2  ;;  %v5437_v59 = vld [vmem:[#allocation19_spill] sm:$0xff] }
 0x21e   : > { %v1963_v34 = vor.u32 %v1962_v43, %v1961_v31  ;;  %v1969_v40 = vsel %vm1967_vm5, %v1957_v27, 2102212464  ;;  %v1972_v45 = vsel %vm1964_vm3, %v1951_v35, %v1954_v11  ;;  %v1968_v15 = vsel %vm1964_vm3, %v1948_v19, %v1951_v35 }
 0x21f   : > { %v1970_v42 = vsel %vm1966_vm6, %v1954_v11, %v1969_v40  ;;  %v1973_v58 = vsel %vm1967_vm5, %v1960_v48, 920167782  ;;  %v1976_v49 = vsel %vm1964_vm3, %v1954_v11, %v1957_v27  ;;  %vm1248_vm9 = vcmp.eq.s32.totalorder %v5436_v62, 2 }
 0x220   : > { %v1774_v9 = vsub.s32 0, %v4739_v17  ;;  %v1974_v60 = vsel %vm1966_vm6, %v1957_v27, %v1973_v58  ;;  %v1977_v1 = vsel %vm1967_vm5, %v1963_v34, 1326507024  ;;  %v2049_v5 = vmul.f32 6.2831855, %v2047_v63 }
 0x221   : > { %vm1385_vm15 = vcmp.lt.s32.totalorder %v5437_v59, 0  ;;  %v4766_v31 = vshrl.u32 %v1890_v6, 30  ;;  %v1975_v35 = vsel %vm1965_vm7, %v1972_v45, %v1974_v60  ;;  %v1978_v19 = vsel %vm1966_vm6, %v1960_v48, %v1977_v1  ;;  %v5441_v60 = vld [vmem:[#allocation27_spill] sm:$0xff]  ;;  %v5442_v1 = vld [vmem:[#allocation28_spill] sm:$0xff] }
 0x222   : > { %v2048_v43 = vfloor.f32 %v4736_v56  ;;  %v1971_v11 = vsel %vm1965_vm7, %v1968_v15, %v1970_v42  ;;  %v1979_v40 = vsel %vm1965_vm7, %v1976_v49, %v1978_v19  ;;  %v1463_v63 = vand.u32 2147483647, %v4725_v38 }
 0x223   : > { %v4773_v26 = vmul.u32.u64.low %v1980_v25, %v1975_v35  ;;  %v4774_v37 = vmul.u32.u64.high %v1980_v25, %v1975_v35, %v4773_v26  ;;  %v2580_v27 = vadd.s32 4294967294, %v1673_v23  ;;  %v1249_v45 = vxor.u32 2147483648, %v4673_v4 }
 0x224   : > { %v4778_v34 = vmul.u32.u64.low %v1980_v25, %v1979_v40  ;;  %v4779_v6 = vmul.u32.u64.high %v1980_v25, %v1979_v40, %v4778_v34  ;;  %v1562_v48 = vsub.s32 4294967266, %v4731_v7  ;;  %v2583_v56 = vmin.u32 %v1774_v9, %v4739_v17 }
 0x225   : > { %v4785_v15 = vsub.f32 %v4680_v13, %v2049_v5  ;;  %v1337_v44 = vxor.u32 2147483648, %v4650_v32  ;;  %vm1245_vm2 = vcmp.eq.s32.totalorder %v5436_v62, 0  ;;  %v1246_v42 = vxor.u32 2147483648, %v4690_v61  ;;  %v5443_v13 = vld [vmem:[#allocation20_spill] sm:$0xff] }
 0x226   : > { %v1892_v38 = vshll.u32 %v4766_v31, 30  ;;  %v1987_v23 = vmul.u32 %v1980_v25, %v1971_v11  ;;  %v5438_v58 = vand.u32 2147483647, %v5437_v59  ;;  %v1469_v9 = vsub.s32 4, %v5441_v60 }
 0x227   : > { %v1542_v5 = vadd.s32 %v5443_v13, %v5442_v1  ;;  %v1990_v35 = vadd.s32 1, %v4774_v37  ;;  %v2050_v19 = vmul.f32 6.2831855, %v2048_v43  ;;  %v1466_v40 = vmul.f32 %v1465_v54, %v1463_v63 }
 0x228   : > { %vm4793_vm10 = vcmp.le.f32.partialorder %v5438_v58, 0.7853982  ;;  %v1558_v34 = vsub.s32 32, %v4731_v7  ;;  %vm2581_vm11 = vcmp.lt.s32.totalorder %v2580_v27, 0  ;;  %vm1989_vm12 = vc.u32 %v4779_v6, %v4773_v26 }
 0x229   : > { %v1563_v25 = vadd.s32 127, %v1562_v48  ;;  %v1776_v11 = vclz %v2583_v56  ;;  %v1991_v58 = vsel %vm1989_vm12, %v1990_v35, %v4774_v37  ;;  %v2056_v51 = vand.u32 2139095040, %v4785_v15 }
 0x22a   : > { %v1338_v1 = vsel %vm1255_vm4, %v1337_v44, %v4650_v32  ;;  %v4814_v16 = vsel %vm1248_vm9, %v1249_v45, %v4690_v61  ;;  %v4817_v54 = vsub.s32 %v4743_v36, %v1892_v38  ;;  %v1992_v43 = vadd.s32 %v1991_v58, %v1987_v23 }
 0x22b   : > { %v1470_v63 = vsel %vm1385_vm15, %v1469_v9, %v5441_v60  ;;  %v1676_v37 = vsel %vm2581_vm11, 0, %v2580_v27  ;;  %v4823_v48 = vsub.f32 %v4688_v12, %v2050_v19  ;;  %v2057_v56 = vshrl.u32 %v2056_v51, 23 }
 0x22c   : > { %v1467_v13 = vxor.u32 2147483648, %v1466_v40  ;;  %v1559_v32 = vshll.u32 %v4589_v3, %v4731_v7  ;;  %v1560_v44 = vshrl.u32 %v1542_v5, %v1558_v34  ;;  %v1993_v61 = vadd.s32 536870912, %v1992_v43 }
 0x22d   : > { %v1564_v45 = vshll.u32 %v1563_v25, 23  ;;  %v1661_v36 = vadd.s32 %v4486_v0, %v4481_v52  ;;  %v2584_v38 = vadd.s32 4294967294, %v1776_v11  ;;  %v2594_v23 = vadd.s32 4294967169, %v2057_v56 }
 0x22e   : > { %v1677_v35 = vsub.s32 32, %v1676_v37  ;;  %v1681_v58 = vsub.s32 4294967266, %v1676_v37  ;;  %v1895_v27 = vsub.s32 0, %v4817_v54  ;;  %v4830_v60 = vshrl.u32 %v1993_v61, 30 }
 0x22f   : > { %v1341_v51 = vsel %vm4567_vm8, %v5428_v29, %v1338_v1  ;;  %v4838_v3 = vsel %vm1245_vm2, %v4673_v4, %v1246_v42  ;;  %v2063_v12 = vadd.s32 1, %v2594_v23  ;;  %v2159_v52 = vand.u32 2139095040, %v4823_v48 }
 0x230   : > { %5444 = vst [vmem:[#allocation16_spill] sm:$0xff] %v4838_v3  ;;  %v1468_v0 = vsel %vm1385_vm15, %v1467_v13, %v1466_v40  ;;  %v1472_v7 = vsel %vm4793_vm10, 0, %v1470_v63  ;;  %v4845_v9 = vor.u32 %v1560_v44, %v1559_v32  ;;  %v1995_v5 = vshll.u32 %v4830_v60, 30 }
 0x231   : > { %v4848_v47 = vor.u32 4788187, %v1564_v45  ;;  %v1678_v19 = vshll.u32 %v4676_v2, %v1676_v37  ;;  %vm2585_vm4 = vcmp.lt.s32.totalorder %v2584_v38, 0  ;;  %vm2064_vm8 = vcmp.gt.s32.totalorder %v2063_v12, 0 }
 0x232   : > { %v1679_v4 = vshrl.u32 %v1661_v36, %v1677_v35  ;;  %v1682_v42 = vadd.s32 127, %v1681_v58  ;;  %v2587_v34 = vmin.u32 %v1895_v27, %v4817_v54  ;;  %v5364_v25 = vand.u32 2147483647, %v4785_v15 }
 0x233   : > { %2807 = vcosq.f32 %v1341_v51  ;;  %v4853_v40 = vsub.s32 %v1992_v43, %v1995_v5  ;;  %v2065_v11 = vsel %vm2064_vm8, %v2063_v12, 0  ;;  %v2160_v1 = vshrl.u32 %v2159_v52, 23 }
 0x234   : > { %2809 = vsinq.f32 %v1341_v51  ;;  %v4858_v63 = vsel %vm4793_vm10, %v5437_v59, %v1468_v0  ;;  %v4860_v2 = vand.u32 3, %v1472_v7  ;;  %v4862_v37 = vsel %vm2585_vm4, 0, %v2584_v38 }
 0x235   : > { %v1764_v43 = vadd.s32 %v4599_v30, %v4610_v18  ;;  %v2067_v32 = vand.u32 31, %v2065_v11  ;;  %v4868_v44 = vor.u32 %v1679_v4, %v1678_v19  ;;  %v1683_v61 = vshll.u32 %v1682_v42, 23 }
 0x236   : > { %v1897_v45 = vclz %v2587_v34  ;;  %v2060_v49 = vand.u32 8388607, %v5364_v25  ;;  %v1784_v36 = vsub.s32 4294967266, %v4862_v37  ;;  %v1998_v38 = vsub.s32 0, %v4853_v40 }
 0x237   : > { %v2068_v23 = vsub.s32 32, %v2067_v32  ;;  %v2598_v35 = vadd.s32 4294967169, %v2160_v1  ;;  %v2066_v58 = vshrl.u32 %v2065_v11, 5  ;;  %v2070_v27 = vshll.u32 %v5401_v22, %v2067_v32 }
 0x238   : > { %v2073_v51 = vshll.u32 %v5402_v14, %v2067_v32  ;;  %v2076_v30 = vshll.u32 %v5403_v21, %v2067_v32  ;;  %v2079_v0 = vshll.u32 %v5393_v20, %v2067_v32  ;;  %v2588_v7 = vadd.s32 4294967294, %v1897_v45 }
 0x239   : > { %v2071_v18 = vshrl.u32 %v5402_v14, %v2068_v23  ;;  %v2074_v12 = vshrl.u32 %v5403_v21, %v2068_v23  ;;  %v2077_v52 = vshrl.u32 %v5393_v20, %v2068_v23  ;;  %v2061_v5 = vor.u32 8388608, %v2060_v49 }
 0x23a   : > { %v2080_v19 = vshrl.u32 %v5391_v46, %v2068_v23  ;;  %v2082_v4 = vshll.u32 %v5391_v46, %v2067_v32  ;;  %v4883_v42 = vor.u32 4788187, %v1683_v61  ;;  %v2591_v34 = vmin.u32 %v1998_v38, %v4853_v40 }
 0x23b   : > { %v2083_v11 = vshrl.u32 %v5392_v33, %v2068_v23  ;;  %v2166_v1 = vadd.s32 1, %v2598_v35  ;;  %v1780_v25 = vsub.s32 32, %v4862_v37  ;;  %v2069_v13 = vshrl.u32 %v5401_v22, %v2068_v23 }
 0x23c   : > { %v2072_v56 = vor.u32 %v2071_v18, %v2070_v27  ;;  %v2075_v29 = vor.u32 %v2074_v12, %v2073_v51  ;;  %v2078_v45 = vor.u32 %v2077_v52, %v2076_v30  ;;  %v2081_v49 = vor.u32 %v2080_v19, %v2079_v0 }
 0x23d   : > { %v4889_v50 = vpop.eup %2807  ;;  %v2084_v39 = vor.u32 %v2083_v11, %v2082_v4  ;;  %vm2085_vm13 = vcmp.lt.s32.totalorder %v2066_v58, 1  ;;  %v1785_v61 = vadd.s32 127, %v1784_v36  ;;  %vm2589_vm14 = vcmp.lt.s32.totalorder %v2588_v7, 0 }
 0x23e   : > { %v4891_v32 = vpop.eup %2809  ;;  %v2101_v38 = vshll.u32 %v2061_v5, 8  ;;  %v2156_v3 = vand.u32 2147483647, %v4823_v48  ;;  %v2000_v35 = vclz %v2591_v34  ;;  %vm2087_vm0 = vcmp.lt.s32.totalorder %v2066_v58, 3 }
 0x23f   : > { %vm2088_vm1 = vcmp.lt.s32.totalorder %v2066_v58, 4  ;;  %vm2167_vm3 = vcmp.gt.s32.totalorder %v2166_v1, 0  ;;  %vm2086_vm5 = vcmp.lt.s32.totalorder %v2066_v58, 2  ;;  %v2089_v23 = vsel %vm2085_vm13, %v2069_v13, %v2072_v56 }
 0x240   : > { %v2090_v27 = vsel %vm2088_vm1, %v2078_v45, 2102212464  ;;  %v2093_v51 = vsel %vm2085_vm13, %v2072_v56, %v2075_v29  ;;  %v2094_v18 = vsel %vm2088_vm1, %v2081_v49, 920167782  ;;  %v2097_v12 = vsel %vm2085_vm13, %v2075_v29, %v2078_v45 }
 0x241   : > { %v2091_v30 = vsel %vm2087_vm0, %v2075_v29, %v2090_v27  ;;  %v2098_v36 = vsel %vm2088_vm1, %v2084_v39, 1326507024  ;;  %v1781_v52 = vshll.u32 %v4739_v17, %v4862_v37  ;;  %v1782_v0 = vshrl.u32 %v1764_v43, %v1780_v25 }
 0x242   : > { %v1786_v5 = vshll.u32 %v1785_v61, 23  ;;  %v2095_v19 = vsel %vm2087_vm0, %v2078_v45, %v2094_v18  ;;  %v2592_v4 = vadd.s32 4294967294, %v2000_v35  ;;  %v2099_v13 = vsel %vm2087_vm0, %v2081_v49, %v2098_v36 }
 0x243   : > { %v2096_v34 = vsel %vm2086_vm5, %v2093_v51, %v2095_v19  ;;  %v2168_v56 = vsel %vm2167_vm3, %v2166_v1, 0  ;;  %v4905_v11 = vsel %vm2589_vm14, 0, %v2588_v7  ;;  %v2092_v29 = vsel %vm2086_vm5, %v2089_v23, %v2091_v30 }
 0x244   : > { %v2100_v39 = vsel %vm2086_vm5, %v2097_v12, %v2099_v13  ;;  %v2163_v17 = vand.u32 8388607, %v2156_v3  ;;  %v4914_v43 = vmul.u32.u64.low %v2101_v38, %v2096_v34  ;;  %v4915_v45 = vmul.u32.u64.high %v2101_v38, %v2096_v34, %v4914_v43 }
 0x245   : > { %v4911_v25 = vmul.u32.u64.low %v2101_v38, %v2100_v39  ;;  %v4912_v37 = vmul.u32.u64.high %v2101_v38, %v2100_v39, %v4911_v25  ;;  %v5445_v49 = vand.u32 2147483647, %v4848_v47  ;;  %v5446_v1 = vcvt.s32.f32 %v4845_v9 }
 0x246   : > { %v1685_v61 = vand.u32 2147483647, %v4883_v42  ;;  %v1687_v58 = vcvt.s32.f32 %v4868_v44  ;;  %v2170_v35 = vand.u32 31, %v2168_v56  ;;  %v4926_v23 = vor.u32 %v1782_v0, %v1781_v52  ;;  %v5451_v42 = vld [vmem:[#allocation23_spill] sm:$0xff] }
 0x247   : > { %v4922_v7 = vmul.f32 %v5446_v1, %v5445_v49  ;;  %v4928_v27 = vor.u32 4788187, %v1786_v5  ;;  %v1885_v51 = vadd.s32 %v4710_v28, %v4718_v8  ;;  %vm2593_vm6 = vcmp.lt.s32.totalorder %v2592_v4, 0 }
 0x248   : > { %v1901_v30 = vsub.s32 32, %v4905_v11  ;;  %v1905_v47 = vsub.s32 4294967266, %v4905_v11  ;;  %v2108_v9 = vmul.u32 %v2101_v38, %v2092_v29  ;;  %v2171_v18 = vsub.s32 32, %v2170_v35 }
 0x249   : > { %v1988_v12 = vadd.s32 %v4773_v26, %v4779_v6  ;;  %vm2110_vm7 = vc.u32 %v4912_v37, %v4914_v43  ;;  %v2111_v36 = vadd.s32 1, %v4915_v45  ;;  %v2164_v52 = vor.u32 8388608, %v2163_v17 }
 0x24a   : > { %v4939_v0 = vsel %vm2593_vm6, 0, %v2592_v4  ;;  %v2173_v28 = vshll.u32 %v5401_v22, %v2170_v35  ;;  %v2174_v8 = vshrl.u32 %v5402_v14, %v2171_v18  ;;  %v2176_v5 = vshll.u32 %v5402_v14, %v2170_v35 }
 0x24b   : > { %v2112_v38 = vsel %vm2110_vm7, %v2111_v36, %v4915_v45  ;;  %v2169_v19 = vshrl.u32 %v2168_v56, 5  ;;  %v2177_v34 = vshrl.u32 %v5403_v21, %v2171_v18  ;;  %v2179_v26 = vshll.u32 %v5403_v21, %v2170_v35 }
 0x24c   : > { %v1902_v6 = vshll.u32 %v4817_v54, %v4905_v11  ;;  %v1903_v13 = vshrl.u32 %v1885_v51, %v1901_v30  ;;  %v1906_v29 = vadd.s32 127, %v1905_v47  ;;  %v2113_v4 = vadd.s32 %v2112_v38, %v2108_v9 }
 0x24d   : > { %v2004_v39 = vsub.s32 32, %v4939_v0  ;;  %v2008_v17 = vsub.s32 4294967266, %v4939_v0  ;;  %v2180_v25 = vshrl.u32 %v5393_v20, %v2171_v18  ;;  %v4952_v14 = vshll.u32 %v2164_v52, 8 }
 0x24e   : > { %v2114_v45 = vadd.s32 536870912, %v2113_v4  ;;  %v2175_v56 = vor.u32 %v2174_v8, %v2173_v28  ;;  %v2178_v49 = vor.u32 %v2177_v34, %v2176_v5  ;;  %v2182_v1 = vshll.u32 %v5393_v20, %v2170_v35  ;;  %v5447_v28 = vld [vmem:[#allocation21_spill] sm:$0xff] }
 0x24f   : > { %v2172_v21 = vshrl.u32 %v5401_v22, %v2171_v18  ;;  %v2181_v36 = vor.u32 %v2180_v25, %v2179_v26  ;;  %v2183_v54 = vshrl.u32 %v5391_v46, %v2171_v18  ;;  %vm2188_vm9 = vcmp.lt.s32.totalorder %v2169_v19, 1 }
 0x250   : > { %v4957_v11 = vshrl.u32 %v2114_v45, 30  ;;  %v2185_v51 = vshll.u32 %v5391_v46, %v2170_v35  ;;  %v2186_v30 = vshrl.u32 %v5392_v33, %v2171_v18  ;;  %vm2191_vm15 = vcmp.lt.s32.totalorder %v2169_v19, 4 }
 0x251   : > { %v2009_v47 = vadd.s32 127, %v2008_v17  ;;  %v2184_v9 = vor.u32 %v2183_v54, %v2182_v1  ;;  %vm2190_vm2 = vcmp.lt.s32.totalorder %v2169_v19, 3  ;;  %v2193_v52 = vsel %vm2191_vm15, %v2181_v36, 2102212464 }
 0x252   : > { %vm1488_vm10 = vcmp.lt.s32.totalorder %v5447_v28, 0  ;;  %v2116_v20 = vshll.u32 %v4957_v11, 30  ;;  %v2187_v22 = vor.u32 %v2186_v30, %v2185_v51  ;;  %vm2189_vm11 = vcmp.lt.s32.totalorder %v2169_v19, 2 }
 0x253   : > { %v2196_v8 = vsel %vm2188_vm9, %v2175_v56, %v2178_v49  ;;  %v2192_v5 = vsel %vm2188_vm9, %v2172_v21, %v2175_v56  ;;  %v2194_v46 = vsel %vm2190_vm2, %v2178_v49, %v2193_v52  ;;  %v2197_v33 = vsel %vm2191_vm15, %v2184_v9, 920167782 }
 0x254   : > { %v2200_v35 = vsel %vm2188_vm9, %v2178_v49, %v2181_v36  ;;  %v1907_v18 = vshll.u32 %v1906_v29, 23  ;;  %v4969_v38 = vsub.s32 %v2113_v4, %v2116_v20  ;;  %v2198_v34 = vsel %vm2190_vm2, %v2181_v36, %v2197_v33 }
 0x255   : > { %v2201_v26 = vsel %vm2191_vm15, %v2187_v22, 1326507024  ;;  %v2005_v17 = vshll.u32 %v4853_v40, %v4939_v0  ;;  %v2006_v25 = vshrl.u32 %v1988_v12, %v2004_v39  ;;  %v2199_v45 = vsel %vm2189_vm11, %v2196_v8, %v2198_v34 }
 0x256   : > { %v2202_v56 = vsel %vm2190_vm2, %v2184_v9, %v2201_v26  ;;  %v2010_v1 = vshll.u32 %v2009_v47, 23  ;;  %v2119_v21 = vsub.s32 0, %v4969_v38  ;;  %v2195_v49 = vsel %vm2189_vm11, %v2192_v5, %v2194_v46 }
 0x257   : > { %v2203_v29 = vsel %vm2189_vm11, %v2200_v35, %v2202_v56  ;;  %v5448_v4 = vand.u32 2147483647, %v5447_v28  ;;  %v4991_v0 = vmul.u32.u64.low %v4952_v14, %v2199_v45  ;;  %v4992_v39 = vmul.u32.u64.high %v4952_v14, %v2199_v45, %v4991_v0 }
 0x258   : > { %v4987_v40 = vmul.u32.u64.low %v4952_v14, %v2203_v29  ;;  %v4988_v12 = vmul.u32.u64.high %v4952_v14, %v2203_v29, %v4987_v40  ;;  %v1352_v54 = vxor.u32 2147483648, %v4889_v50  ;;  %2811 = vcosq.f32 %v4858_v63 }
 0x259   : > { %vm4982_vm12 = vcmp.le.f32.partialorder %v5448_v4, 0.7853982  ;;  %v1572_v19 = vsub.s32 4, %v4525_v53  ;;  %v2595_v51 = vmin.u32 %v2119_v21, %v4969_v38  ;;  %v1570_v30 = vxor.u32 2147483648, %v4922_v7 }
 0x25a   : > { %v1688_v47 = vmul.f32 %v1687_v58, %v1685_v61  ;;  %v1904_v9 = vor.u32 %v1903_v13, %v1902_v6  ;;  %v1908_v52 = vor.u32 4788187, %v1907_v18  ;;  %v1788_v20 = vand.u32 2147483647, %v4928_v27 }
 0x25b   : > { %v1790_v22 = vcvt.s32.f32 %v4926_v23  ;;  %v2121_v8 = vclz %v2595_v51  ;;  %v2211_v5 = vmul.u32 %v4952_v14, %v2195_v49  ;;  %v2007_v46 = vor.u32 %v2006_v25, %v2005_v17 }
 0x25c   : > { %v2011_v33 = vor.u32 4788187, %v2010_v1  ;;  %vm2213_vm4 = vc.u32 %v4988_v12, %v4991_v0  ;;  %v2214_v35 = vadd.s32 1, %v4992_v39  ;;  %2813 = vsinq.f32 %v4858_v63 }
 0x25d   : > { %v1573_v44 = vsel %vm1488_vm10, %v1572_v19, %v4525_v53  ;;  %vm1607_vm8 = vcmp.lt.s32.totalorder %v5451_v42, 0  ;;  %v2596_v61 = vadd.s32 4294967294, %v2121_v8  ;;  %v1571_v58 = vsel %vm1488_vm10, %v1570_v30, %v4922_v7  ;;  %v5455_v19 = vld [vmem:[#allocation26_spill] sm:$0xff] }
 0x25e   : > { %v1909_v23 = vand.u32 2147483647, %v1908_v52  ;;  %v1911_v27 = vcvt.s32.f32 %v1904_v9  ;;  %v2215_v6 = vsel %vm2213_vm4, %v2214_v35, %v4992_v39  ;;  %v1689_v13 = vxor.u32 2147483648, %v1688_v47 }
 0x25f   : > { %v2109_v14 = vadd.s32 %v4914_v43, %v4912_v37  ;;  %vm2597_vm13 = vcmp.lt.s32.totalorder %v2596_v61, 0  ;;  %v2216_v63 = vadd.s32 %v2215_v6, %v2211_v5  ;;  %v1791_v18 = vmul.f32 %v1790_v22, %v1788_v20 }
 0x260   : > { %v2012_v34 = vand.u32 2147483647, %v2011_v33  ;;  %v2014_v53 = vcvt.s32.f32 %v2007_v46  ;;  %v2124_v26 = vsel %vm2597_vm13, 0, %v2596_v61  ;;  %v1349_v7 = vxor.u32 2147483648, %v4891_v32 }
 0x261   : > { %v2125_v17 = vsub.s32 32, %v2124_v26  ;;  %v2126_v25 = vshll.u32 %v4969_v38, %v2124_v26  ;;  %v2129_v45 = vsub.s32 4294967266, %v2124_v26  ;;  %v2217_v56 = vadd.s32 536870912, %v2216_v63 }
 0x262   : > { %v1575_v1 = vsel %vm4982_vm12, 0, %v1573_v44  ;;  %v5452_v21 = vand.u32 2147483647, %v5451_v42  ;;  %v1912_v43 = vmul.f32 %v1911_v27, %v1909_v23  ;;  %v2812_v49 = vpop.eup %2811  ;;  %vm1481_vm0 = vcmp.eq.s32.totalorder %v4860_v2, 2 }
 0x263   : > { %v1574_v38 = vsel %vm4982_vm12, %v5447_v28, %v1571_v58  ;;  %v2127_v29 = vshrl.u32 %v2109_v14, %v2125_v17  ;;  %v2130_v4 = vadd.s32 127, %v2129_v45  ;;  %v5035_v40 = vshrl.u32 %v2217_v56, 30 }
 0x264   : > { %vm5027_vm14 = vcmp.le.f32.partialorder %v5452_v21, 0.7853982  ;;  %v1690_v39 = vsel %vm1607_vm8, %v1689_v13, %v1688_v47  ;;  %v5456_v51 = vand.u32 2147483647, %v5455_v19  ;;  %vm1710_vm3 = vcmp.lt.s32.totalorder %v5455_v19, 0 }
 0x265   : > { %v1792_v9 = vxor.u32 2147483648, %v1791_v18  ;;  %v2015_v52 = vmul.f32 %v2014_v53, %v2012_v34  ;;  %v2128_v20 = vor.u32 %v2127_v29, %v2126_v25  ;;  %v2131_v36 = vshll.u32 %v2130_v4, 23 }
 0x266   : > { %vm5041_vm1 = vcmp.le.f32.partialorder %v5456_v51, 0.7853982  ;;  %v2219_v22 = vshll.u32 %v5035_v40, 30  ;;  %2815 = vcosq.f32 %v1574_v38  ;;  %v5047_v8 = vand.u32 3, %v1575_v1  ;;  %v2814_v5 = vpop.eup %2813 }
 0x267   : > { %vm1831_vm5 = vcmp.lt.s32.totalorder %v4563_v41, 0  ;;  %v1913_v47 = vxor.u32 2147483648, %v1912_v43  ;;  %v1693_v46 = vsel %vm5027_vm14, %v5451_v42, %v1690_v39  ;;  %v2132_v33 = vor.u32 4788187, %v2131_v36 }
 0x268   : > { %v2135_v35 = vcvt.s32.f32 %v2128_v20  ;;  %v5053_v44 = vsub.s32 %v2216_v63, %v2219_v22  ;;  %v1482_v61 = vxor.u32 2147483648, %v2812_v49  ;;  %2817 = vsinq.f32 %v1574_v38 }
 0x269   : > { %v1691_v58 = vsub.s32 4, %v4639_v24  ;;  %v1793_v23 = vsel %vm1710_vm3, %v1792_v9, %v1791_v18  ;;  %vm1477_vm6 = vcmp.lt.s32.totalorder %v4860_v2, 2  ;;  %v5459_v27 = vand.u32 2147483647, %v4563_v41 }
 0x26a   : > { %v2016_v13 = vxor.u32 2147483648, %v2015_v52  ;;  %v2133_v14 = vand.u32 2147483647, %v2132_v33  ;;  %v2222_v63 = vsub.s32 0, %v5053_v44  ;;  %2819 = vcosq.f32 %v1693_v46 }
 0x26b   : > { %vm5061_vm7 = vcmp.le.f32.partialorder %v5459_v27, 0.7853982  ;;  %v1794_v34 = vsub.s32 4, %v4700_v10  ;;  %v1914_v53 = vsel %vm1831_vm5, %v1913_v47, %v1912_v43  ;;  %vm1934_vm9 = vcmp.lt.s32.totalorder %v4604_v55, 0 }
 0x26c   : > { %2821 = vsinq.f32 %v1693_v46  ;;  %v1796_v18 = vsel %vm5041_vm1, %v5455_v19, %v1793_v23  ;;  %v2136_v26 = vmul.f32 %v2135_v35, %v2133_v14  ;;  %v2599_v17 = vmin.u32 %v2222_v63, %v5053_v44 }
 0x26d   : > { %vm1478_vm15 = vcmp.eq.s32.totalorder %v4860_v2, 0  ;;  %v1479_v25 = vxor.u32 2147483648, %v2814_v5  ;;  %v5462_v45 = vand.u32 2147483647, %v4604_v55  ;;  %vm2055_vm10 = vcmp.lt.s32.totalorder %v4785_v15, 0 }
 0x26e   : > { %vm1475_vm11 = vweird.f32 %v5437_v59  ;;  %v1917_v1 = vsel %vm5061_vm7, %v4563_v41, %v1914_v53  ;;  %v2017_v21 = vsel %vm1934_vm9, %v2016_v13, %v2015_v52  ;;  %v2137_v43 = vxor.u32 2147483648, %v2136_v26 }
 0x26f   : > { %vm5077_vm2 = vcmp.le.f32.partialorder %v5462_v45, 0.7853982  ;;  %v2224_v38 = vclz %v2599_v17  ;;  %v1483_v29 = vsel %vm1481_vm0, %v1482_v61, %v2814_v5  ;;  %v1692_v4 = vsel %vm1607_vm8, %v1691_v58, %v4639_v24 }
 0x270   : > { %v1795_v39 = vsel %vm1710_vm3, %v1794_v34, %v4700_v10  ;;  %2823 = vcosq.f32 %v1796_v18  ;;  %vm1584_vm12 = vcmp.eq.s32.totalorder %v5047_v8, 2  ;;  %v5465_v51 = vand.u32 2147483647, %v4785_v15  ;;  %v2816_v36 = vpop.eup %2815 }
 0x271   : > { %2825 = vsinq.f32 %v1796_v18  ;;  %v2138_v52 = vsel %vm2055_vm10, %v2137_v43, %v2136_v26  ;;  %v2600_v20 = vadd.s32 4294967294, %v2224_v38  ;;  %v1480_v24 = vsel %vm1478_vm15, %v2812_v49, %v1479_v25 }
 0x272   : > { %vm5099_vm4 = vcmp.le.f32.partialorder %v5465_v51, 0.7853982  ;;  %vm1581_vm8 = vcmp.eq.s32.totalorder %v5047_v8, 0  ;;  %v1915_v10 = vsub.s32 4, %v4766_v31  ;;  %2827 = vcosq.f32 %v1917_v1  ;;  %v2818_v46 = vpop.eup %2817 }
 0x273   : > { %v2020_v22 = vsel %vm5077_vm2, %v4604_v55, %v2017_v21  ;;  %v1694_v47 = vsel %vm5027_vm14, 0, %v1692_v4  ;;  %2829 = vsinq.f32 %v1917_v1  ;;  %v2212_v5 = vadd.s32 %v4991_v0, %v4988_v12 }
 0x274   : > { %vm2601_vm13 = vcmp.lt.s32.totalorder %v2600_v20, 0  ;;  %v1797_v49 = vsel %vm5041_vm1, 0, %v1795_v39  ;;  %v2018_v33 = vsub.s32 4, %v4830_v60  ;;  %v2141_v35 = vsel %vm5099_vm4, %v4785_v15, %v2138_v52  ;;  %v2820_v27 = vpop.eup %2819 }
 0x275   : > { %v2227_v61 = vsel %vm2601_vm13, 0, %v2600_v20  ;;  %2831 = vcosq.f32 %v2020_v22  ;;  %v1484_v12 = vsel %vm1477_vm6, %v1480_v24, %v1483_v29  ;;  %v5125_v0 = vand.u32 3, %v1694_v47 }
 0x276   : > { %v2228_v58 = vsub.s32 32, %v2227_v61  ;;  %v2229_v37 = vshll.u32 %v5053_v44, %v2227_v61  ;;  %v2232_v23 = vsub.s32 4294967266, %v2227_v61  ;;  %v1916_v30 = vsel %vm1831_vm5, %v1915_v10, %v4766_v31  ;;  %v2822_v13 = vpop.eup %2821 }
 0x277   : > { %2833 = vsinq.f32 %v2020_v22  ;;  %v1585_v14 = vxor.u32 2147483648, %v2816_v36  ;;  %v1582_v53 = vxor.u32 2147483648, %v2818_v46  ;;  %v5130_v18 = vand.u32 3, %v1797_v49 }
 0x278   : > { %2835 = vcosq.f32 %v2141_v35  ;;  %v2230_v63 = vshrl.u32 %v2212_v5, %v2228_v58  ;;  %v2233_v34 = vadd.s32 127, %v2232_v23  ;;  %v2139_v44 = vsub.s32 4, %v4957_v11 }
 0x279   : > { %2837 = vsinq.f32 %v2141_v35  ;;  %v1918_v2 = vsel %vm5061_vm7, 0, %v1916_v30  ;;  %v2019_v26 = vsel %vm1934_vm9, %v2018_v33, %v4830_v60  ;;  %v5140_v45 = vsel %vm1475_vm11, nan, %v1484_v12 }
 0x27a   : > { %v2231_v31 = vor.u32 %v2230_v63, %v2229_v37  ;;  %v2234_v17 = vshll.u32 %v2233_v34, 23  ;;  %v2824_v25 = vpop.eup %2823  ;;  %vm1699_vm14 = vcmp.lt.s32.totalorder %v5125_v0, 2  ;;  %v1701_v1 = vxor.u32 2147483648, %v2822_v13 }
 0x27b   : > { %v1704_v21 = vxor.u32 2147483648, %v2820_v27  ;;  %v2826_v43 = vpop.eup %2825  ;;  %vm1700_vm0 = vcmp.eq.s32.totalorder %v5125_v0, 0  ;;  %vm1703_vm1 = vcmp.eq.s32.totalorder %v5125_v0, 2  ;;  %vm1580_vm3 = vcmp.lt.s32.totalorder %v5047_v8, 2 }
 0x27c   : > { %v2235_v6 = vor.u32 4788187, %v2234_v17  ;;  %v2238_v38 = vcvt.s32.f32 %v2231_v31  ;;  %v2828_v29 = vpop.eup %2827  ;;  %v1586_v60 = vsel %vm1584_vm12, %v1585_v14, %v2818_v46  ;;  %vm1697_vm5 = vweird.f32 %v5451_v42  ;;  %v5470_v14 = vld [vmem:[#allocation12_spill] sm:$0xff] }
 0x27d   : > { %v1922_v59 = vand.u32 3, %v1918_v2  ;;  %v2021_v4 = vsel %vm5077_vm2, 0, %v2019_v26  ;;  %v2140_v39 = vsel %vm2055_vm10, %v2139_v44, %v4957_v11  ;;  %v2830_v51 = vpop.eup %2829  ;;  %v1583_v52 = vsel %vm1581_vm8, %v2816_v36, %v1582_v53 }
 0x27e   : > { %vm1802_vm6 = vcmp.lt.s32.totalorder %v5130_v18, 2  ;;  %vm1806_vm7 = vcmp.eq.s32.totalorder %v5130_v18, 2  ;;  %v2236_v20 = vand.u32 2147483647, %v2235_v6  ;;  %v1702_v24 = vsel %vm1700_vm0, %v2820_v27, %v1701_v1  ;;  %v5471_v6 = vld [vmem:[#allocation16_spill] sm:$0xff] }
 0x27f   : > { %v1705_v56 = vsel %vm1703_vm1, %v1704_v21, %v2822_v13  ;;  %v1804_v10 = vxor.u32 2147483648, %v2826_v43  ;;  %v1807_v22 = vxor.u32 2147483648, %v2824_v25  ;;  %v2832_v47 = vpop.eup %2831  ;;  %v1928_v5 = vxor.u32 2147483648, %v2828_v29 }
 0x280   : > { %v5162_v11 = vand.u32 3, %v2021_v4  ;;  %v2142_v36 = vsel %vm5099_vm4, 0, %v2140_v39  ;;  %v2239_v46 = vmul.f32 %v2238_v38, %v2236_v20  ;;  %vm1803_vm2 = vcmp.eq.s32.totalorder %v5130_v18, 0  ;;  %v5476_v4 = vld [vmem:[#allocation13_spill] sm:$0xff] }
 0x281   : > { %v2834_v49 = vpop.eup %2833  ;;  %v1925_v33 = vxor.u32 2147483648, %v2830_v51  ;;  %vm1927_vm10 = vcmp.eq.s32.totalorder %v1922_v59, 2  ;;  %vm2158_vm11 = vcmp.lt.s32.totalorder %v4823_v48, 0  ;;  %vm1244_vm12 = vcmp.lt.s32.totalorder %v5436_v62, 2 }
 0x282   : > { %v2836_v35 = vpop.eup %2835  ;;  %vm1348_vm8 = vcmp.eq.s32.totalorder %v4648_v57, 0  ;;  %vm1351_vm13 = vcmp.eq.s32.totalorder %v4648_v57, 2  ;;  %vm1924_vm4 = vcmp.eq.s32.totalorder %v1922_v59, 0  ;;  %vm5175_vm0 = vcmp.le.f32.partialorder %v2156_v3, 0.7853982 }
 0x283   : > { %v2240_v61 = vxor.u32 2147483648, %v2239_v46  ;;  %v2242_v58 = vsub.s32 4, %v5035_v40  ;;  %v2838_v37 = vpop.eup %2837  ;;  %v1706_v23 = vsel %vm1699_vm14, %v1702_v24, %v1705_v56  ;;  %v1808_v27 = vsel %vm1806_vm7, %v1807_v22, %v2826_v43  ;;  %v5478_v24 = vld [vmem:[#allocation25_spill] sm:$0xff] }
 0x284   : > { %vm1923_vm1 = vcmp.lt.s32.totalorder %v1922_v59, 2  ;;  %v2146_v12 = vand.u32 3, %v2142_v36  ;;  %v1805_v30 = vsel %vm1803_vm2, %v2824_v25, %v1804_v10  ;;  %v1929_v3 = vsel %vm1927_vm10, %v1928_v5, %v2830_v51 }
 0x285   : > { %vm2027_vm15 = vcmp.eq.s32.totalorder %v5162_v11, 0  ;;  %v2241_v13 = vsel %vm2158_vm11, %v2240_v61, %v2239_v46  ;;  %vm1117_vm9 = vweird.f32 %v5470_v14  ;;  %v1926_v63 = vsel %vm1924_vm4, %v2828_v29, %v1925_v33  ;;  %v2330_v14 = vld [vmem:[%s336_s26] sm:$0xff] }
 0x286   : > { %v2028_v0 = vxor.u32 2147483648, %v2834_v49  ;;  %v2031_v34 = vxor.u32 2147483648, %v2832_v47  ;;  %v2244_v53 = vsel %vm5175_vm0, %v4823_v48, %v2241_v13  ;;  %v2149_v44 = vxor.u32 2147483648, %v2838_v37 }
 0x287   : > { %v2152_v2 = vxor.u32 2147483648, %v2836_v35  ;;  %v2243_v26 = vsel %vm2158_vm11, %v2242_v58, %v5035_v40  ;;  %2839 = vcosq.f32 %v2244_v53  ;;  %vm2030_vm14 = vcmp.eq.s32.totalorder %v5162_v11, 2 }
 0x288   : > { %vm2148_vm7 = vcmp.eq.s32.totalorder %v2146_v12, 0  ;;  %vm2151_vm2 = vcmp.eq.s32.totalorder %v2146_v12, 2  ;;  %2841 = vsinq.f32 %v2244_v53  ;;  %v1587_v31 = vsel %vm1580_vm3, %v1583_v52, %v1586_v60 }
 0x289   : > { %v1707_v17 = vsel %vm1697_vm5, nan, %v1706_v23  ;;  %v1809_v25 = vsel %vm1802_vm6, %v1805_v30, %v1808_v27  ;;  %vm1921_vm10 = vweird.f32 %v4563_v41  ;;  %v1930_v1 = vsel %vm1923_vm1, %v1926_v63, %v1929_v3 }
 0x28a   : > { %vm2026_vm11 = vcmp.lt.s32.totalorder %v5162_v11, 2  ;;  %vm2147_vm4 = vcmp.lt.s32.totalorder %v2146_v12, 2  ;;  %v2245_v40 = vsel %vm5175_vm0, 0, %v2243_v26  ;;  %v2029_v8 = vsel %vm2027_vm15, %v2832_v47, %v2028_v0  ;;  %v5480_v11 = vld [vmem:[#allocation18_spill] sm:$0xff] }
 0x28b   : > { %v2032_v21 = vsel %vm2030_vm14, %v2031_v34, %v2834_v49  ;;  %v2150_v43 = vsel %vm2148_vm7, %v2836_v35, %v2149_v44  ;;  %v2153_v42 = vsel %vm2151_vm2, %v2152_v2, %v2838_v37  ;;  %v1251_v18 = vsel %vm1244_vm12, %v5471_v6, %v4814_v16  ;;  %v2331_v34 = vld [vmem:[%s336_s26 + $0x8] sm:$0xff] }
 0x28c   : > { %v1350_v41 = vsel %vm1348_vm8, %v4889_v50, %v1349_v7  ;;  %v1353_v38 = vsel %vm1351_vm13, %v1352_v54, %v4891_v32  ;;  %v1811_v29 = vadd.f32 %v1707_v17, %v5140_v45  ;;  %vm5472_vm3 = vweird.f32 %v5447_v28  ;;  %v5474_v32 = vld [vmem:[#allocation24_spill] sm:$0xff]  ;;  %v5475_v54 = vld [vmem:[#allocation22_spill] sm:$0xff] }
 0x28d   : > { %v1588_v60 = vsel %vm5472_vm3, nan, %v1587_v31  ;;  %vm5473_vm5 = vweird.f32 %v5455_v19  ;;  %v1931_v16 = vsel %vm1921_vm10, nan, %v1930_v1  ;;  %v2249_v59 = vand.u32 3, %v2245_v40  ;;  %v5477_v19 = vld [vmem:[#allocation17_spill] sm:$0xff] }
 0x28e   : > { %v1810_v62 = vsel %vm5473_vm5, nan, %v1809_v25  ;;  %vm2024_vm6 = vweird.f32 %v4604_v55  ;;  %v2033_v7 = vsel %vm2026_vm11, %v2029_v8, %v2032_v21  ;;  %vm2145_vm15 = vweird.f32 %v4785_v15  ;;  %v5479_v15 = vld [vmem:[#allocation15_spill] sm:$0xff] }
 0x28f   : > { %v2154_v50 = vsel %vm2147_vm4, %v2150_v43, %v2153_v42  ;;  %v901_v45 = vadd.f32 %v5475_v54, %v5474_v32  ;;  %v1127_v28 = vsel %vm1117_vm9, nan, %v5476_v4  ;;  %vm1242_vm12 = vweird.f32 %v5477_v19 }
 0x290   : > { %vm1347_vm8 = vcmp.lt.s32.totalorder %v4648_v57, 2  ;;  %v1252_v39 = vsel %vm1242_vm12, nan, %v1251_v18  ;;  %v1812_v51 = vadd.f32 %v1810_v62, %v1588_v60  ;;  %v2035_v52 = vadd.f32 %v1931_v16, %v1811_v29 }
 0x291   : > { %v1354_v55 = vsel %vm1347_vm8, %v1350_v41, %v1353_v38  ;;  %v2840_v20 = vpop.eup %2839  ;;  %v1128_v56 = vadd.f32 %v5479_v15, %v5478_v24  ;;  %v2034_v10 = vsel %vm2024_vm6, nan, %v2033_v7  ;;  %v2155_v22 = vsel %vm2145_vm15, nan, %v2154_v50 }
 0x292   : > { %vm2254_vm13 = vcmp.eq.s32.totalorder %v2249_v59, 2  ;;  %v2842_v47 = vpop.eup %2841  ;;  %v1129_v5 = vadd.f32 %v1127_v28, %v901_v45  ;;  %vm1345_vm0 = vweird.f32 %v5480_v11  ;;  %vm2251_vm9 = vcmp.eq.s32.totalorder %v2249_v59, 0 }
 0x293   : > { %v2255_v36 = vxor.u32 2147483648, %v2840_v20  ;;  %v1355_v46 = vsel %vm1345_vm0, nan, %v1354_v55  ;;  %v1356_v49 = vadd.f32 %v1252_v39, %v1128_v56  ;;  %vm2250_vm1 = vcmp.lt.s32.totalorder %v2249_v59, 2 }
 0x294   : > { %v2252_v57 = vxor.u32 2147483648, %v2842_v47  ;;  %v2036_v33 = vadd.f32 %v2034_v10, %v1812_v51  ;;  %vm2248_vm14 = vweird.f32 %v4823_v48  ;;  %v2259_v9 = vadd.f32 %v2155_v22, %v2035_v52 }
 0x295   : > { %v2256_v35 = vsel %vm2254_vm13, %v2255_v36, %v2842_v47  ;;  %v1357_v58 = vadd.f32 %v1355_v46, %v1129_v5  ;;  %vm2274_vm7 = vcmask 130048  }
 0x296   : > { %v2253_v61 = vsel %vm2251_vm9, %v2840_v20, %v2252_v57  ;;  %v2261_v12 = vsub.f32 %v1356_v49, %v2259_v9 }
 0x297   : > { %v2257_v37 = vsel %vm2250_vm1, %v2253_v61, %v2256_v35 }
 0x298   : > { %v2258_v23 = vsel %vm2248_vm14, nan, %v2257_v37 }
 0x299   : > { %v2260_v27 = vadd.f32 %v2258_v23, %v2036_v33 }
 0x29b   : > { %v2262_v30 = vsub.f32 %v1357_v58, %v2260_v27 }
 0x29d   : > { %v2263_v3 = vpack.c.bf16 %v2262_v30, %v2261_v12 }
 0x29f   : > { %2614 = vmatmul.mubr.msk.bf16.vlgmr.msra.gmra.mrb[0].mxu0 %vm2274_vm7, %v2263_v3 }
 0x372   : > { %v2312_v13 = vpop.f32.mrb[0].mxu0 }
 0x373   : > { %v2328_v48 = vmul.f32 0.088388346, %v2312_v13  ;;  %v2615_v63 = vpop.f32.mrb[1].mxu0 }
 0x374   : > { %v2315_v0 = vpop.f32.mrb[2].mxu0 }
 0x375   : > { %v2332_v53 = vadd.f32 %v2330_v14, %v2328_v48  ;;  %v2329_v44 = vmul.f32 0.088388346, %v2315_v0  ;;  %v2616_v2 = vpop.f32.mrb[3].mxu0 }
 0x377   : > { %2334 = vst [vmem:[%s387_s12] sm:$0xff] %v2332_v53  ;;  %v2333_v26 = vadd.f32 %v2331_v34, %v2329_v44 }
 0x379   : > { %2335 = vst [vmem:[%s387_s12 + $0x8] sm:$0xff] %v2333_v26 }
 0x37a   : > { %2884 = shalt.err (!%p2881_p4)
}
 0x37b   : > { %s2885_s13 = scalar_lea.hbm %s5254_s29, 256  ;;  %s2889_s6 = scalar_lea.hbm %s5312_s4, 1024 }
 0x37c   : > { %p2886_p5 = scmp.ne.s32.totalorder %s5254_s29, %s2885_s13  ;;  %p2890_p3 = scmp.lt.u32.totalorder %s5254_s29, %s5312_s4 }
 0x37d   : > { %p2891_p2 = scmp.lt.u32.totalorder %s2889_s6, %s2885_s13  ;;  %p2893_p8 = scmp.lt.u32.totalorder %s2885_s13, %s5254_s29 }
 0x37e   : > { %p2887_p9 = pnand %p2886_p5, %p5481_p7 }
 0x37f   : > { %p2892_p6 = por %p2891_p2, %p2890_p3 }
 0x380   : > { %p2888_p12 = pneg %p2887_p9 }
 0x381   : > { %p2894_p10 = por %p2893_p8, %p2892_p6 }
 0x383   : > { %p2895_p11 = pnand %p2894_p10, %p2888_p12 }
 0x385   : > { %2898 = shalt.err (!%p2895_p11)
}
 0x386   : > { %s2988_s12 = smov 128   ;;  %s2989_s27 = smov 256  }
 0x387   : > { %s2990_s18 = smov 8  }
 0x388   : > { %2683 = dma.vmem_to_hbm [thread:$0]  (%p5481_p7), %s5249_s23, 256, %s5254_s29, %s2337_s14, %s2988_s12, %s2989_s27, %s2990_s18  }
 0x389 PF: > { %p2689_p13 = scmp.ge.s32.totalorder %s2969_s22, 2  ;;  %s2369_s19 = sand.u32 1, %s2941_s15  }
 0x38a   : > { %p5482_p0 = scmp.ne.s32.totalorder %s5373_s8, 0  ;;  %s2370_s5 = scalar_lea.sflag [#allocation5], %s2369_s19 }
 0x38c   : > { %p2686_p1 = pnand %p2689_p13, %p5482_p0 }
 0x38e   : > { %2936 = dma.done.wait (!%p2686_p1), %s2370_s5, 256  }
 0x38f   : > { %2938 = vsyncadd (!%p2686_p1), %s2370_s5, 4294967040  ;;  %s20_s22 = sadd.s32 1, %s2969_s22   ;;  %s5483_s30 = sld [smem:[#allocation10_spill]] }
 0x390   : > { %p17_p4 = scmp.ge.s32.totalorder %s20_s22, 6   ;;  %s5484_s28 = sld [smem:[#allocation11_spill]] }
 0x391   : > { %s5485_s15 = smov %s2945_s16  ;;  %s5486_s16 = smov %s2949_s17 }
 0x392   : > { %s5487_s17 = smov %s3092_s9  ;;  %s5488_s18 = smov %s2961_s20 }
 0x393   : > { %s5489_s19 = smov %s2965_s21  ;;  %19 = sbr.rel (!%p17_p4) target bundleno = 9 (0x9), region = 141 }
 0x395   : > { %s5490_s20 = smov %s5483_s30 }
 0x396   : > { %s5491_s21 = smov %s5484_s28 }
 0x39a   :  { %2375 = vsyncpa [#allocation4], 1 }
 0x39b   :  { %2377 = vsyncpa [#allocation4 + $0x1], 1 }
 0x39c   :  { %2378 = vsyncpa [#allocation5], 1 }
 0x39d   :  { %2380 = vsyncpa [#allocation5 + $0x1], 1 }

</bundles_post_ra>
